<compile_context>
chip_gen: v7x
topology: tpu7x:2x2x1
jax: 0.10.0
libtpu: 0.0.40
codegen_flags: <defaults>
</compile_context>

<pallas_src>
import functools

import jax
import jax.numpy as jnp
from jax import lax
from jax.experimental import pallas as pl
from jax.experimental.pallas import tpu as pltpu


def _interp_matrix(out_size: int, in_size: int) -> jnp.ndarray:
    """Dense 1-D linear interpolation matrix matching PyTorch
    F.interpolate(mode='linear', align_corners=False)."""
    scale = in_size / out_size
    o = jnp.arange(out_size, dtype=jnp.float32)
    src = jnp.maximum((o + 0.5) * scale - 0.5, 0.0)      # PyTorch clamps at 0
    i0 = jnp.clip(jnp.floor(src).astype(jnp.int32), 0, in_size - 1)
    i1 = jnp.clip(i0 + 1, 0, in_size - 1)
    lam = src - i0.astype(jnp.float32)
    oh0 = jax.nn.one_hot(i0, in_size, dtype=jnp.float32)
    oh1 = jax.nn.one_hot(i1, in_size, dtype=jnp.float32)
    return (1.0 - lam)[:, None] * oh0 + lam[:, None] * oh1   # [out, in]


def _disp_kernel(x_ref, wwt_ref, wd_ref, o_ref, *, th_in, din, dout):
    """One (batch, H-tile) per grid step.

    x_ref  : [Hin+2, Din, Win]   cost volume, one batch element, H edge-padded
    wwt_ref: [Win, Wout]         W-axis interpolation matrix (transposed)
    wd_ref : [Dout, Din]         D-axis interpolation matrix
    o_ref  : [3*th_in, Wout]     regressed disparity for this output H tile
    """
    j = pl.program_id(1)
    base = j * th_in                              # first padded-H row of tile

    wwt = wwt_ref[...]                            # [Win, Wout]
    wd = wd_ref[...]                              # [Dout, Din]
    win = wwt.shape[0]
    disp = lax.broadcasted_iota(jnp.int32, (dout, 1), 0).astype(jnp.float32)

    # --- load the (th_in + 2)-row input slab with one dynamic read -----------
    slab = x_ref[pl.ds(base, th_in + 2)]          # [th_in+2, Din, Win]

    # --- W-axis 3x upsample: one 2D matmul, M=(th_in+2)*Din, N=Wout ----------
    y = jnp.dot(slab.reshape(((th_in + 2) * din, win)), wwt,
                preferred_element_type=jnp.float32)   # [(th_in+2)*Din, Wout]

    def d_upsample(i):
        # D-axis upsample of padded-H row (base + i): [Dout,Din] @ [Din,Wout]
        return jnp.dot(wd, y[i * din:(i + 1) * din, :],
                       preferred_element_type=jnp.float32)    # [Dout, Wout]

    def softreg(u):
        # Fused Softmin(dim=D) + disparity regression; VPU/EUP/XLU only.
        mn = jnp.min(u, axis=0, keepdims=True)
        e = jnp.exp(mn - u)                       # softmin(u) = softmax(-u)
        den = jnp.sum(e, axis=0, keepdims=True)
        num = jnp.sum(disp * e, axis=0, keepdims=True)
        return num / den                          # exact divide -> [1, Wout]

    # --- H-axis 3x lerp (align_corners=False) + softmin, streamed per row ----
    # padded row base+k+1 is original row base+k; its 3 output rows are
    #   3k   : (1/3) u[k-1] + (2/3) u[k]
    #   3k+1 :            u[k]
    #   3k+2 : (2/3) u[k]   + (1/3) u[k+1]
    # (the boundary clamps are baked into the H edge-padding).
    c13 = jnp.float32(1.0 / 3.0)
    c23 = jnp.float32(2.0 / 3.0)
    u_prev = d_upsample(0)
    u_cur = d_upsample(1)
    for k in range(th_in):                        # static, short unroll
        u_next = d_upsample(k + 2)
        o_ref[3 * k:3 * k + 1, :] = softreg(c13 * u_prev + c23 * u_cur)
        o_ref[3 * k + 1:3 * k + 2, :] = softreg(u_cur)
        o_ref[3 * k + 2:3 * k + 3, :] = softreg(c23 * u_cur + c13 * u_next)
        u_prev, u_cur = u_cur, u_next


def _pick_tile_rows(hin: int) -> int:
    """Input-H rows per grid step.  The output tile (3*th_in, Wout) needs its
    sublane dim to be a multiple of 8 (or cover the whole output); the smallest
    aligned divisor keeps the unrolled loop short and maximizes grid steps."""
    cands = [t for t in range(8, hin + 1, 8) if hin % t == 0]
    return cands[0] if cands else hin


def _vmem_limit_bytes(hin, win, din, dout, th_in):
    wout = 3 * win
    f32 = 4
    resident = (2 * (hin + 2) * din * win          # x block (double-buffered)
                + 2 * 3 * th_in * wout             # out block (double-buffered)
                + 2 * (win * wout + dout * din))   # interpolation weights
    working = ((th_in + 2) * din * win             # slab
               + (th_in + 2) * din * wout          # W-upsampled slab
               + 6 * dout * wout)                  # rolling u_* + softmin temps
    need = (resident + working) * f32 + (8 << 20)  # headroom for spills/pipeline
    try:
        cap = int(pltpu.get_tpu_info().vmem_capacity_bytes)
    except Exception:                              # interpret mode / older jax
        cap = 64 << 20
    return int(min(max(need, 32 << 20), int(cap * 0.9)))


@functools.partial(jax.jit, static_argnames=("maxdisp", "tile_rows"))
def disp_forward(x: jnp.ndarray, maxdisp: int, tile_rows=None) -> jnp.ndarray:
    """Pallas implementation of Disp.forward.  x: [B, 1, D_in, H_in, W_in]."""
    B, C, Din, Hin, Win = x.shape
    assert C == 1
    Hout, Wout, Dout = 3 * Hin, 3 * Win, maxdisp

    th_in = tile_rows if tile_rows is not None else _pick_tile_rows(Hin)
    assert Hin % th_in == 0
    tile_h = 3 * th_in
    n_h = Hin // th_in

    # Layout plumbing (XLA): [B, 1, D, H, W] -> [B, H, D, W] (D on sublanes,
    # W on lanes), then edge-pad H so the kernel needs no boundary clamps.
    # TODO(synk): for very large volumes, block the H axis / manually DMA the
    # (th_in+2)-row slab instead of keeping the whole padded volume in VMEM.
    xr = jnp.transpose(x[:, 0], (0, 2, 1, 3)).astype(jnp.float32)
    xr = jnp.concatenate([xr[:, :1], xr, xr[:, -1:]], axis=1)  # [B, Hin+2, D, W]

    wwt = _interp_matrix(Wout, Win).T        # [Win, Wout]
    wd = _interp_matrix(Dout, Din)           # [Dout, Din]

    kernel = functools.partial(_disp_kernel, th_in=th_in, din=Din, dout=Dout)

    return pl.pallas_call(
        kernel,
        out_shape=jax.ShapeDtypeStruct((B, Hout, Wout), jnp.float32),
        grid=(B, n_h),
        in_specs=[
            pl.BlockSpec((None, Hin + 2, Din, Win), lambda b, j: (b, 0, 0, 0)),
            pl.BlockSpec((Win, Wout), lambda b, j: (0, 0)),
            pl.BlockSpec((Dout, Din), lambda b, j: (0, 0)),
        ],
        out_specs=pl.BlockSpec((None, tile_h, Wout), lambda b, j: (b, j, 0)),
        compiler_params=pltpu.CompilerParams(
            dimension_semantics=("parallel", "parallel"),
            vmem_limit_bytes=_vmem_limit_bytes(Hin, Win, Din, Dout, th_in),
        ),
    )(xr, wwt, wd)


def _reference(x: jnp.ndarray, maxdisp: int) -> jnp.ndarray:
    """Pure-JAX reference (dense interp matrices on all three axes)."""
    B, C, Din, Hin, Win = x.shape
    Hout, Wout = 3 * Hin, 3 * Win
    Wd = _interp_matrix(maxdisp, Din)
    Wh = _interp_matrix(Hout, Hin)
    Ww = _interp_matrix(Wout, Win)
    up = jnp.einsum("bdhw,Dd,Hh,Ww->bDHW",
                    x[:, 0].astype(jnp.float32), Wd, Wh, Ww)   # trilinear
    p = jax.nn.softmax(-up, axis=1)                            # Softmin(dim=1)
    disp = jnp.arange(maxdisp, dtype=jnp.float32)[None, :, None, None]
    return jnp.sum(p * disp, axis=1)


if __name__ == "__main__":
    key = jax.random.PRNGKey(0)
    B, Din, Hin, Win = 2, 8, 16, 8
    maxdisp = 3 * Din  # 24 (cost-volume depth is maxdisp/3, as in the model)

    x = jax.random.normal(key, (B, 1, Din, Hin, Win), dtype=jnp.float32)

    out = disp_forward(x, maxdisp=maxdisp)      # th_in=8 -> grid (2, 2)
    out = jax.block_until_ready(out)

    ref = _reference(x, maxdisp)
    assert out.shape == (B, 3 * Hin, 3 * Win), out.shape
    max_err = float(jnp.max(jnp.abs(out - ref)))
    assert jnp.allclose(out, ref, atol=2e-3, rtol=1e-3), max_err
    print("KERNEL_OK")
</pallas_src>

<mosaic_0001>
module attributes {stable_mosaic.version = 11 : i64} {
  func.func @_disp_kernel(%arg0: i32, %arg1: i32, %arg2: memref<1x18x8x8xf32, #tpu.memory_space<vmem>>, %arg3: memref<8x24xf32, #tpu.memory_space<vmem>>, %arg4: memref<24x8xf32, #tpu.memory_space<vmem>>, %arg5: memref<1x24x24xf32, #tpu.memory_space<vmem>>) attributes {dimension_semantics = [#tpu.dimension_semantics<parallel>, #tpu.dimension_semantics<parallel>], iteration_bounds = array<i64: 2, 2>, scalar_prefetch = 0 : i64, scratch_operands = 0 : i64, tpu.core_type = #tpu.core_type<tc>, window_params = [{transform_indices = @transform_0, window_bounds = array<i64: 1, 18, 8, 8>}, {pipeline_mode = #tpu.pipeline_mode<synchronous>, transform_indices = @transform_1, window_bounds = array<i64: 8, 24>}, {pipeline_mode = #tpu.pipeline_mode<synchronous>, transform_indices = @transform_2, window_bounds = array<i64: 24, 8>}, {transform_indices = @transform_3, window_bounds = array<i64: 1, 24, 24>}]} {
    %c8_i32 = arith.constant 8 : i32
    %0 = arith.muli %arg1, %c8_i32 : i32
    %c0 = arith.constant 0 : index
    %c0_0 = arith.constant 0 : index
    %1 = vector.load %arg3[%c0, %c0_0] : memref<8x24xf32, #tpu.memory_space<vmem>>, vector<8x24xf32>
    %c0_1 = arith.constant 0 : index
    %c0_2 = arith.constant 0 : index
    %2 = vector.load %arg4[%c0_1, %c0_2] : memref<24x8xf32, #tpu.memory_space<vmem>>, vector<24x8xf32>
    %3 = tpu.iota {dimensions = array<i32: 0>} : vector<24x1xi32>
    %4 = arith.sitofp %3 : vector<24x1xi32> to vector<24x1xf32>
    %c0_3 = arith.constant 0 : index
    %5 = arith.index_cast %0 : i32 to index
    %c0_4 = arith.constant 0 : index
    %c0_5 = arith.constant 0 : index
    %6 = vector.load %arg2[%c0_3, %5, %c0_4, %c0_5] : memref<1x18x8x8xf32, #tpu.memory_space<vmem>>, vector<1x10x8x8xf32>
    %7 = vector.shape_cast %6 : vector<1x10x8x8xf32> to vector<10x8x8xf32>
    %8 = vector.shape_cast %7 : vector<10x8x8xf32> to vector<80x8xf32>
    %cst = arith.constant dense<0.000000e+00> : vector<80x24xf32>
    %9 = tpu.matmul %8, %1, %cst {dimension_numbers = #tpu.dot_dimension_numbers<[1], [0], [0], [1], [0, 0, 1, 1], [], []>} : vector<80x8xf32>, vector<8x24xf32>, vector<80x24xf32> -> vector<80x24xf32>
    %10 = vector.extract_strided_slice %9 {offsets = [0, 0], sizes = [8, 24], strides = [1, 1]} : vector<80x24xf32> to vector<8x24xf32>
    %cst_6 = arith.constant dense<0.000000e+00> : vector<24x24xf32>
    %11 = tpu.matmul %2, %10, %cst_6 {dimension_numbers = #tpu.dot_dimension_numbers<[1], [0], [0], [1], [0, 0, 1, 1], [], []>} : vector<24x8xf32>, vector<8x24xf32>, vector<24x24xf32> -> vector<24x24xf32>
    %12 = vector.extract_strided_slice %9 {offsets = [8, 0], sizes = [8, 24], strides = [1, 1]} : vector<80x24xf32> to vector<8x24xf32>
    %cst_7 = arith.constant dense<0.000000e+00> : vector<24x24xf32>
    %13 = tpu.matmul %2, %12, %cst_7 {dimension_numbers = #tpu.dot_dimension_numbers<[1], [0], [0], [1], [0, 0, 1, 1], [], []>} : vector<24x8xf32>, vector<8x24xf32>, vector<24x24xf32> -> vector<24x24xf32>
    %14 = vector.extract_strided_slice %9 {offsets = [16, 0], sizes = [8, 24], strides = [1, 1]} : vector<80x24xf32> to vector<8x24xf32>
    %cst_8 = arith.constant dense<0.000000e+00> : vector<24x24xf32>
    %15 = tpu.matmul %2, %14, %cst_8 {dimension_numbers = #tpu.dot_dimension_numbers<[1], [0], [0], [1], [0, 0, 1, 1], [], []>} : vector<24x8xf32>, vector<8x24xf32>, vector<24x24xf32> -> vector<24x24xf32>
    %cst_9 = arith.constant 0.333333343 : f32
    %16 = vector.broadcast %cst_9 : f32 to vector<24x24xf32>
    %17 = arith.mulf %16, %11 : vector<24x24xf32>
    %cst_10 = arith.constant 0.666666686 : f32
    %18 = vector.broadcast %cst_10 : f32 to vector<24x24xf32>
    %19 = arith.mulf %18, %13 : vector<24x24xf32>
    %20 = arith.addf %17, %19 : vector<24x24xf32>
    %cst_11 = arith.constant dense<0x7F800000> : vector<24xf32>
    %21 = vector.multi_reduction <minimumf>, %20, %cst_11 [0] : vector<24x24xf32> to vector<24xf32>
    %22 = vector.shape_cast %21 : vector<24xf32> to vector<1x24xf32>
    %23 = vector.broadcast %22 : vector<1x24xf32> to vector<24x24xf32>
    %24 = arith.subf %23, %20 : vector<24x24xf32>
    %25 = math.exp %24 : vector<24x24xf32>
    %cst_12 = arith.constant dense<0.000000e+00> : vector<24xf32>
    %26 = vector.multi_reduction <add>, %25, %cst_12 [0] : vector<24x24xf32> to vector<24xf32>
    %27 = vector.shape_cast %26 : vector<24xf32> to vector<1x24xf32>
    %28 = vector.broadcast %4 : vector<24x1xf32> to vector<24x24xf32>
    %29 = arith.mulf %28, %25 : vector<24x24xf32>
    %cst_13 = arith.constant dense<0.000000e+00> : vector<24xf32>
    %30 = vector.multi_reduction <add>, %29, %cst_13 [0] : vector<24x24xf32> to vector<24xf32>
    %31 = vector.shape_cast %30 : vector<24xf32> to vector<1x24xf32>
    %32 = arith.divf %31, %27 : vector<1x24xf32>
    %c0_14 = arith.constant 0 : index
    %c0_15 = arith.constant 0 : index
    %c0_16 = arith.constant 0 : index
    %33 = vector.load %arg5[%c0_14, %c0_15, %c0_16] : memref<1x24x24xf32, #tpu.memory_space<vmem>>, vector<1x1x24xf32>
    %34 = vector.shape_cast %33 : vector<1x1x24xf32> to vector<1x24xf32>
    %35 = vector.shape_cast %32 : vector<1x24xf32> to vector<1x1x24xf32>
    tpu.vector_store %arg5[%c0_14, %c0_15, %c0_16], %35 {strides = array<i32>} : memref<1x24x24xf32, #tpu.memory_space<vmem>>, vector<1x1x24xf32>,
    %cst_17 = arith.constant dense<0x7F800000> : vector<24xf32>
    %36 = vector.multi_reduction <minimumf>, %13, %cst_17 [0] : vector<24x24xf32> to vector<24xf32>
    %37 = vector.shape_cast %36 : vector<24xf32> to vector<1x24xf32>
    %38 = vector.broadcast %37 : vector<1x24xf32> to vector<24x24xf32>
    %39 = arith.subf %38, %13 : vector<24x24xf32>
    %40 = math.exp %39 : vector<24x24xf32>
    %cst_18 = arith.constant dense<0.000000e+00> : vector<24xf32>
    %41 = vector.multi_reduction <add>, %40, %cst_18 [0] : vector<24x24xf32> to vector<24xf32>
    %42 = vector.shape_cast %41 : vector<24xf32> to vector<1x24xf32>
    %43 = vector.broadcast %4 : vector<24x1xf32> to vector<24x24xf32>
    %44 = arith.mulf %43, %40 : vector<24x24xf32>
    %cst_19 = arith.constant dense<0.000000e+00> : vector<24xf32>
    %45 = vector.multi_reduction <add>, %44, %cst_19 [0] : vector<24x24xf32> to vector<24xf32>
    %46 = vector.shape_cast %45 : vector<24xf32> to vector<1x24xf32>
    %47 = arith.divf %46, %42 : vector<1x24xf32>
    %c0_20 = arith.constant 0 : index
    %c1 = arith.constant 1 : index
    %c0_21 = arith.constant 0 : index
    %48 = vector.load %arg5[%c0_20, %c1, %c0_21] : memref<1x24x24xf32, #tpu.memory_space<vmem>>, vector<1x1x24xf32>
    %49 = vector.shape_cast %48 : vector<1x1x24xf32> to vector<1x24xf32>
    %50 = vector.shape_cast %47 : vector<1x24xf32> to vector<1x1x24xf32>
    tpu.vector_store %arg5[%c0_20, %c1, %c0_21], %50 {strides = array<i32>} : memref<1x24x24xf32, #tpu.memory_space<vmem>>, vector<1x1x24xf32>,
    %cst_22 = arith.constant 0.666666686 : f32
    %51 = vector.broadcast %cst_22 : f32 to vector<24x24xf32>
    %52 = arith.mulf %51, %13 : vector<24x24xf32>
    %cst_23 = arith.constant 0.333333343 : f32
    %53 = vector.broadcast %cst_23 : f32 to vector<24x24xf32>
    %54 = arith.mulf %53, %15 : vector<24x24xf32>
    %55 = arith.addf %52, %54 : vector<24x24xf32>
    %cst_24 = arith.constant dense<0x7F800000> : vector<24xf32>
    %56 = vector.multi_reduction <minimumf>, %55, %cst_24 [0] : vector<24x24xf32> to vector<24xf32>
    %57 = vector.shape_cast %56 : vector<24xf32> to vector<1x24xf32>
    %58 = vector.broadcast %57 : vector<1x24xf32> to vector<24x24xf32>
    %59 = arith.subf %58, %55 : vector<24x24xf32>
    %60 = math.exp %59 : vector<24x24xf32>
    %cst_25 = arith.constant dense<0.000000e+00> : vector<24xf32>
    %61 = vector.multi_reduction <add>, %60, %cst_25 [0] : vector<24x24xf32> to vector<24xf32>
    %62 = vector.shape_cast %61 : vector<24xf32> to vector<1x24xf32>
    %63 = vector.broadcast %4 : vector<24x1xf32> to vector<24x24xf32>
    %64 = arith.mulf %63, %60 : vector<24x24xf32>
    %cst_26 = arith.constant dense<0.000000e+00> : vector<24xf32>
    %65 = vector.multi_reduction <add>, %64, %cst_26 [0] : vector<24x24xf32> to vector<24xf32>
    %66 = vector.shape_cast %65 : vector<24xf32> to vector<1x24xf32>
    %67 = arith.divf %66, %62 : vector<1x24xf32>
    %c0_27 = arith.constant 0 : index
    %c2 = arith.constant 2 : index
    %c0_28 = arith.constant 0 : index
    %68 = vector.load %arg5[%c0_27, %c2, %c0_28] : memref<1x24x24xf32, #tpu.memory_space<vmem>>, vector<1x1x24xf32>
    %69 = vector.shape_cast %68 : vector<1x1x24xf32> to vector<1x24xf32>
    %70 = vector.shape_cast %67 : vector<1x24xf32> to vector<1x1x24xf32>
    tpu.vector_store %arg5[%c0_27, %c2, %c0_28], %70 {strides = array<i32>} : memref<1x24x24xf32, #tpu.memory_space<vmem>>, vector<1x1x24xf32>,
    %71 = vector.extract_strided_slice %9 {offsets = [24, 0], sizes = [8, 24], strides = [1, 1]} : vector<80x24xf32> to vector<8x24xf32>
    %cst_29 = arith.constant dense<0.000000e+00> : vector<24x24xf32>
    %72 = tpu.matmul %2, %71, %cst_29 {dimension_numbers = #tpu.dot_dimension_numbers<[1], [0], [0], [1], [0, 0, 1, 1], [], []>} : vector<24x8xf32>, vector<8x24xf32>, vector<24x24xf32> -> vector<24x24xf32>
    %cst_30 = arith.constant 0.333333343 : f32
    %73 = vector.broadcast %cst_30 : f32 to vector<24x24xf32>
    %74 = arith.mulf %73, %13 : vector<24x24xf32>
    %cst_31 = arith.constant 0.666666686 : f32
    %75 = vector.broadcast %cst_31 : f32 to vector<24x24xf32>
    %76 = arith.mulf %75, %15 : vector<24x24xf32>
    %77 = arith.addf %74, %76 : vector<24x24xf32>
    %cst_32 = arith.constant dense<0x7F800000> : vector<24xf32>
    %78 = vector.multi_reduction <minimumf>, %77, %cst_32 [0] : vector<24x24xf32> to vector<24xf32>
    %79 = vector.shape_cast %78 : vector<24xf32> to vector<1x24xf32>
    %80 = vector.broadcast %79 : vector<1x24xf32> to vector<24x24xf32>
    %81 = arith.subf %80, %77 : vector<24x24xf32>
    %82 = math.exp %81 : vector<24x24xf32>
    %cst_33 = arith.constant dense<0.000000e+00> : vector<24xf32>
    %83 = vector.multi_reduction <add>, %82, %cst_33 [0] : vector<24x24xf32> to vector<24xf32>
    %84 = vector.shape_cast %83 : vector<24xf32> to vector<1x24xf32>
    %85 = vector.broadcast %4 : vector<24x1xf32> to vector<24x24xf32>
    %86 = arith.mulf %85, %82 : vector<24x24xf32>
    %cst_34 = arith.constant dense<0.000000e+00> : vector<24xf32>
    %87 = vector.multi_reduction <add>, %86, %cst_34 [0] : vector<24x24xf32> to vector<24xf32>
    %88 = vector.shape_cast %87 : vector<24xf32> to vector<1x24xf32>
    %89 = arith.divf %88, %84 : vector<1x24xf32>
    %c0_35 = arith.constant 0 : index
    %c3 = arith.constant 3 : index
    %c0_36 = arith.constant 0 : index
    %90 = vector.load %arg5[%c0_35, %c3, %c0_36] : memref<1x24x24xf32, #tpu.memory_space<vmem>>, vector<1x1x24xf32>
    %91 = vector.shape_cast %90 : vector<1x1x24xf32> to vector<1x24xf32>
    %92 = vector.shape_cast %89 : vector<1x24xf32> to vector<1x1x24xf32>
    tpu.vector_store %arg5[%c0_35, %c3, %c0_36], %92 {strides = array<i32>} : memref<1x24x24xf32, #tpu.memory_space<vmem>>, vector<1x1x24xf32>,
    %cst_37 = arith.constant dense<0x7F800000> : vector<24xf32>
    %93 = vector.multi_reduction <minimumf>, %15, %cst_37 [0] : vector<24x24xf32> to vector<24xf32>
    %94 = vector.shape_cast %93 : vector<24xf32> to vector<1x24xf32>
    %95 = vector.broadcast %94 : vector<1x24xf32> to vector<24x24xf32>
    %96 = arith.subf %95, %15 : vector<24x24xf32>
    %97 = math.exp %96 : vector<24x24xf32>
    %cst_38 = arith.constant dense<0.000000e+00> : vector<24xf32>
    %98 = vector.multi_reduction <add>, %97, %cst_38 [0] : vector<24x24xf32> to vector<24xf32>
    %99 = vector.shape_cast %98 : vector<24xf32> to vector<1x24xf32>
    %100 = vector.broadcast %4 : vector<24x1xf32> to vector<24x24xf32>
    %101 = arith.mulf %100, %97 : vector<24x24xf32>
    %cst_39 = arith.constant dense<0.000000e+00> : vector<24xf32>
    %102 = vector.multi_reduction <add>, %101, %cst_39 [0] : vector<24x24xf32> to vector<24xf32>
    %103 = vector.shape_cast %102 : vector<24xf32> to vector<1x24xf32>
    %104 = arith.divf %103, %99 : vector<1x24xf32>
    %c0_40 = arith.constant 0 : index
    %c4 = arith.constant 4 : index
    %c0_41 = arith.constant 0 : index
    %105 = vector.load %arg5[%c0_40, %c4, %c0_41] : memref<1x24x24xf32, #tpu.memory_space<vmem>>, vector<1x1x24xf32>
    %106 = vector.shape_cast %105 : vector<1x1x24xf32> to vector<1x24xf32>
    %107 = vector.shape_cast %104 : vector<1x24xf32> to vector<1x1x24xf32>
    tpu.vector_store %arg5[%c0_40, %c4, %c0_41], %107 {strides = array<i32>} : memref<1x24x24xf32, #tpu.memory_space<vmem>>, vector<1x1x24xf32>,
    %cst_42 = arith.constant 0.666666686 : f32
    %108 = vector.broadcast %cst_42 : f32 to vector<24x24xf32>
    %109 = arith.mulf %108, %15 : vector<24x24xf32>
    %cst_43 = arith.constant 0.333333343 : f32
    %110 = vector.broadcast %cst_43 : f32 to vector<24x24xf32>
    %111 = arith.mulf %110, %72 : vector<24x24xf32>
    %112 = arith.addf %109, %111 : vector<24x24xf32>
    %cst_44 = arith.constant dense<0x7F800000> : vector<24xf32>
    %113 = vector.multi_reduction <minimumf>, %112, %cst_44 [0] : vector<24x24xf32> to vector<24xf32>
    %114 = vector.shape_cast %113 : vector<24xf32> to vector<1x24xf32>
    %115 = vector.broadcast %114 : vector<1x24xf32> to vector<24x24xf32>
    %116 = arith.subf %115, %112 : vector<24x24xf32>
    %117 = math.exp %116 : vector<24x24xf32>
    %cst_45 = arith.constant dense<0.000000e+00> : vector<24xf32>
    %118 = vector.multi_reduction <add>, %117, %cst_45 [0] : vector<24x24xf32> to vector<24xf32>
    %119 = vector.shape_cast %118 : vector<24xf32> to vector<1x24xf32>
    %120 = vector.broadcast %4 : vector<24x1xf32> to vector<24x24xf32>
    %121 = arith.mulf %120, %117 : vector<24x24xf32>
    %cst_46 = arith.constant dense<0.000000e+00> : vector<24xf32>
    %122 = vector.multi_reduction <add>, %121, %cst_46 [0] : vector<24x24xf32> to vector<24xf32>
    %123 = vector.shape_cast %122 : vector<24xf32> to vector<1x24xf32>
    %124 = arith.divf %123, %119 : vector<1x24xf32>
    %c0_47 = arith.constant 0 : index
    %c5 = arith.constant 5 : index
    %c0_48 = arith.constant 0 : index
    %125 = vector.load %arg5[%c0_47, %c5, %c0_48] : memref<1x24x24xf32, #tpu.memory_space<vmem>>, vector<1x1x24xf32>
    %126 = vector.shape_cast %125 : vector<1x1x24xf32> to vector<1x24xf32>
    %127 = vector.shape_cast %124 : vector<1x24xf32> to vector<1x1x24xf32>
    tpu.vector_store %arg5[%c0_47, %c5, %c0_48], %127 {strides = array<i32>} : memref<1x24x24xf32, #tpu.memory_space<vmem>>, vector<1x1x24xf32>,
    %128 = vector.extract_strided_slice %9 {offsets = [32, 0], sizes = [8, 24], strides = [1, 1]} : vector<80x24xf32> to vector<8x24xf32>
    %cst_49 = arith.constant dense<0.000000e+00> : vector<24x24xf32>
    %129 = tpu.matmul %2, %128, %cst_49 {dimension_numbers = #tpu.dot_dimension_numbers<[1], [0], [0], [1], [0, 0, 1, 1], [], []>} : vector<24x8xf32>, vector<8x24xf32>, vector<24x24xf32> -> vector<24x24xf32>
    %cst_50 = arith.constant 0.333333343 : f32
    %130 = vector.broadcast %cst_50 : f32 to vector<24x24xf32>
    %131 = arith.mulf %130, %15 : vector<24x24xf32>
    %cst_51 = arith.constant 0.666666686 : f32
    %132 = vector.broadcast %cst_51 : f32 to vector<24x24xf32>
    %133 = arith.mulf %132, %72 : vector<24x24xf32>
    %134 = arith.addf %131, %133 : vector<24x24xf32>
    %cst_52 = arith.constant dense<0x7F800000> : vector<24xf32>
    %135 = vector.multi_reduction <minimumf>, %134, %cst_52 [0] : vector<24x24xf32> to vector<24xf32>
    %136 = vector.shape_cast %135 : vector<24xf32> to vector<1x24xf32>
    %137 = vector.broadcast %136 : vector<1x24xf32> to vector<24x24xf32>
    %138 = arith.subf %137, %134 : vector<24x24xf32>
    %139 = math.exp %138 : vector<24x24xf32>
    %cst_53 = arith.constant dense<0.000000e+00> : vector<24xf32>
    %140 = vector.multi_reduction <add>, %139, %cst_53 [0] : vector<24x24xf32> to vector<24xf32>
    %141 = vector.shape_cast %140 : vector<24xf32> to vector<1x24xf32>
    %142 = vector.broadcast %4 : vector<24x1xf32> to vector<24x24xf32>
    %143 = arith.mulf %142, %139 : vector<24x24xf32>
    %cst_54 = arith.constant dense<0.000000e+00> : vector<24xf32>
    %144 = vector.multi_reduction <add>, %143, %cst_54 [0] : vector<24x24xf32> to vector<24xf32>
    %145 = vector.shape_cast %144 : vector<24xf32> to vector<1x24xf32>
    %146 = arith.divf %145, %141 : vector<1x24xf32>
    %c0_55 = arith.constant 0 : index
    %c6 = arith.constant 6 : index
    %c0_56 = arith.constant 0 : index
    %147 = vector.load %arg5[%c0_55, %c6, %c0_56] : memref<1x24x24xf32, #tpu.memory_space<vmem>>, vector<1x1x24xf32>
    %148 = vector.shape_cast %147 : vector<1x1x24xf32> to vector<1x24xf32>
    %149 = vector.shape_cast %146 : vector<1x24xf32> to vector<1x1x24xf32>
    tpu.vector_store %arg5[%c0_55, %c6, %c0_56], %149 {strides = array<i32>} : memref<1x24x24xf32, #tpu.memory_space<vmem>>, vector<1x1x24xf32>,
    %cst_57 = arith.constant dense<0x7F800000> : vector<24xf32>
    %150 = vector.multi_reduction <minimumf>, %72, %cst_57 [0] : vector<24x24xf32> to vector<24xf32>
    %151 = vector.shape_cast %150 : vector<24xf32> to vector<1x24xf32>
    %152 = vector.broadcast %151 : vector<1x24xf32> to vector<24x24xf32>
    %153 = arith.subf %152, %72 : vector<24x24xf32>
    %154 = math.exp %153 : vector<24x24xf32>
    %cst_58 = arith.constant dense<0.000000e+00> : vector<24xf32>
    %155 = vector.multi_reduction <add>, %154, %cst_58 [0] : vector<24x24xf32> to vector<24xf32>
    %156 = vector.shape_cast %155 : vector<24xf32> to vector<1x24xf32>
    %157 = vector.broadcast %4 : vector<24x1xf32> to vector<24x24xf32>
    %158 = arith.mulf %157, %154 : vector<24x24xf32>
    %cst_59 = arith.constant dense<0.000000e+00> : vector<24xf32>
    %159 = vector.multi_reduction <add>, %158, %cst_59 [0] : vector<24x24xf32> to vector<24xf32>
    %160 = vector.shape_cast %159 : vector<24xf32> to vector<1x24xf32>
    %161 = arith.divf %160, %156 : vector<1x24xf32>
    %c0_60 = arith.constant 0 : index
    %c7 = arith.constant 7 : index
    %c0_61 = arith.constant 0 : index
    %162 = vector.load %arg5[%c0_60, %c7, %c0_61] : memref<1x24x24xf32, #tpu.memory_space<vmem>>, vector<1x1x24xf32>
    %163 = vector.shape_cast %162 : vector<1x1x24xf32> to vector<1x24xf32>
    %164 = vector.shape_cast %161 : vector<1x24xf32> to vector<1x1x24xf32>
    tpu.vector_store %arg5[%c0_60, %c7, %c0_61], %164 {strides = array<i32>} : memref<1x24x24xf32, #tpu.memory_space<vmem>>, vector<1x1x24xf32>,
    %cst_62 = arith.constant 0.666666686 : f32
    %165 = vector.broadcast %cst_62 : f32 to vector<24x24xf32>
    %166 = arith.mulf %165, %72 : vector<24x24xf32>
    %cst_63 = arith.constant 0.333333343 : f32
    %167 = vector.broadcast %cst_63 : f32 to vector<24x24xf32>
    %168 = arith.mulf %167, %129 : vector<24x24xf32>
    %169 = arith.addf %166, %168 : vector<24x24xf32>
    %cst_64 = arith.constant dense<0x7F800000> : vector<24xf32>
    %170 = vector.multi_reduction <minimumf>, %169, %cst_64 [0] : vector<24x24xf32> to vector<24xf32>
    %171 = vector.shape_cast %170 : vector<24xf32> to vector<1x24xf32>
    %172 = vector.broadcast %171 : vector<1x24xf32> to vector<24x24xf32>
    %173 = arith.subf %172, %169 : vector<24x24xf32>
    %174 = math.exp %173 : vector<24x24xf32>
    %cst_65 = arith.constant dense<0.000000e+00> : vector<24xf32>
    %175 = vector.multi_reduction <add>, %174, %cst_65 [0] : vector<24x24xf32> to vector<24xf32>
    %176 = vector.shape_cast %175 : vector<24xf32> to vector<1x24xf32>
    %177 = vector.broadcast %4 : vector<24x1xf32> to vector<24x24xf32>
    %178 = arith.mulf %177, %174 : vector<24x24xf32>
    %cst_66 = arith.constant dense<0.000000e+00> : vector<24xf32>
    %179 = vector.multi_reduction <add>, %178, %cst_66 [0] : vector<24x24xf32> to vector<24xf32>
    %180 = vector.shape_cast %179 : vector<24xf32> to vector<1x24xf32>
    %181 = arith.divf %180, %176 : vector<1x24xf32>
    %c0_67 = arith.constant 0 : index
    %c8 = arith.constant 8 : index
    %c0_68 = arith.constant 0 : index
    %182 = vector.load %arg5[%c0_67, %c8, %c0_68] : memref<1x24x24xf32, #tpu.memory_space<vmem>>, vector<1x1x24xf32>
    %183 = vector.shape_cast %182 : vector<1x1x24xf32> to vector<1x24xf32>
    %184 = vector.shape_cast %181 : vector<1x24xf32> to vector<1x1x24xf32>
    tpu.vector_store %arg5[%c0_67, %c8, %c0_68], %184 {strides = array<i32>} : memref<1x24x24xf32, #tpu.memory_space<vmem>>, vector<1x1x24xf32>,
    %185 = vector.extract_strided_slice %9 {offsets = [40, 0], sizes = [8, 24], strides = [1, 1]} : vector<80x24xf32> to vector<8x24xf32>
    %cst_69 = arith.constant dense<0.000000e+00> : vector<24x24xf32>
    %186 = tpu.matmul %2, %185, %cst_69 {dimension_numbers = #tpu.dot_dimension_numbers<[1], [0], [0], [1], [0, 0, 1, 1], [], []>} : vector<24x8xf32>, vector<8x24xf32>, vector<24x24xf32> -> vector<24x24xf32>
    %cst_70 = arith.constant 0.333333343 : f32
    %187 = vector.broadcast %cst_70 : f32 to vector<24x24xf32>
    %188 = arith.mulf %187, %72 : vector<24x24xf32>
    %cst_71 = arith.constant 0.666666686 : f32
    %189 = vector.broadcast %cst_71 : f32 to vector<24x24xf32>
    %190 = arith.mulf %189, %129 : vector<24x24xf32>
    %191 = arith.addf %188, %190 : vector<24x24xf32>
    %cst_72 = arith.constant dense<0x7F800000> : vector<24xf32>
    %192 = vector.multi_reduction <minimumf>, %191, %cst_72 [0] : vector<24x24xf32> to vector<24xf32>
    %193 = vector.shape_cast %192 : vector<24xf32> to vector<1x24xf32>
    %194 = vector.broadcast %193 : vector<1x24xf32> to vector<24x24xf32>
    %195 = arith.subf %194, %191 : vector<24x24xf32>
    %196 = math.exp %195 : vector<24x24xf32>
    %cst_73 = arith.constant dense<0.000000e+00> : vector<24xf32>
    %197 = vector.multi_reduction <add>, %196, %cst_73 [0] : vector<24x24xf32> to vector<24xf32>
    %198 = vector.shape_cast %197 : vector<24xf32> to vector<1x24xf32>
    %199 = vector.broadcast %4 : vector<24x1xf32> to vector<24x24xf32>
    %200 = arith.mulf %199, %196 : vector<24x24xf32>
    %cst_74 = arith.constant dense<0.000000e+00> : vector<24xf32>
    %201 = vector.multi_reduction <add>, %200, %cst_74 [0] : vector<24x24xf32> to vector<24xf32>
    %202 = vector.shape_cast %201 : vector<24xf32> to vector<1x24xf32>
    %203 = arith.divf %202, %198 : vector<1x24xf32>
    %c0_75 = arith.constant 0 : index
    %c9 = arith.constant 9 : index
    %c0_76 = arith.constant 0 : index
    %204 = vector.load %arg5[%c0_75, %c9, %c0_76] : memref<1x24x24xf32, #tpu.memory_space<vmem>>, vector<1x1x24xf32>
    %205 = vector.shape_cast %204 : vector<1x1x24xf32> to vector<1x24xf32>
    %206 = vector.shape_cast %203 : vector<1x24xf32> to vector<1x1x24xf32>
    tpu.vector_store %arg5[%c0_75, %c9, %c0_76], %206 {strides = array<i32>} : memref<1x24x24xf32, #tpu.memory_space<vmem>>, vector<1x1x24xf32>,
    %cst_77 = arith.constant dense<0x7F800000> : vector<24xf32>
    %207 = vector.multi_reduction <minimumf>, %129, %cst_77 [0] : vector<24x24xf32> to vector<24xf32>
    %208 = vector.shape_cast %207 : vector<24xf32> to vector<1x24xf32>
    %209 = vector.broadcast %208 : vector<1x24xf32> to vector<24x24xf32>
    %210 = arith.subf %209, %129 : vector<24x24xf32>
    %211 = math.exp %210 : vector<24x24xf32>
    %cst_78 = arith.constant dense<0.000000e+00> : vector<24xf32>
    %212 = vector.multi_reduction <add>, %211, %cst_78 [0] : vector<24x24xf32> to vector<24xf32>
    %213 = vector.shape_cast %212 : vector<24xf32> to vector<1x24xf32>
    %214 = vector.broadcast %4 : vector<24x1xf32> to vector<24x24xf32>
    %215 = arith.mulf %214, %211 : vector<24x24xf32>
    %cst_79 = arith.constant dense<0.000000e+00> : vector<24xf32>
    %216 = vector.multi_reduction <add>, %215, %cst_79 [0] : vector<24x24xf32> to vector<24xf32>
    %217 = vector.shape_cast %216 : vector<24xf32> to vector<1x24xf32>
    %218 = arith.divf %217, %213 : vector<1x24xf32>
    %c0_80 = arith.constant 0 : index
    %c10 = arith.constant 10 : index
    %c0_81 = arith.constant 0 : index
    %219 = vector.load %arg5[%c0_80, %c10, %c0_81] : memref<1x24x24xf32, #tpu.memory_space<vmem>>, vector<1x1x24xf32>
    %220 = vector.shape_cast %219 : vector<1x1x24xf32> to vector<1x24xf32>
    %221 = vector.shape_cast %218 : vector<1x24xf32> to vector<1x1x24xf32>
    tpu.vector_store %arg5[%c0_80, %c10, %c0_81], %221 {strides = array<i32>} : memref<1x24x24xf32, #tpu.memory_space<vmem>>, vector<1x1x24xf32>,
    %cst_82 = arith.constant 0.666666686 : f32
    %222 = vector.broadcast %cst_82 : f32 to vector<24x24xf32>
    %223 = arith.mulf %222, %129 : vector<24x24xf32>
    %cst_83 = arith.constant 0.333333343 : f32
    %224 = vector.broadcast %cst_83 : f32 to vector<24x24xf32>
    %225 = arith.mulf %224, %186 : vector<24x24xf32>
    %226 = arith.addf %223, %225 : vector<24x24xf32>
    %cst_84 = arith.constant dense<0x7F800000> : vector<24xf32>
    %227 = vector.multi_reduction <minimumf>, %226, %cst_84 [0] : vector<24x24xf32> to vector<24xf32>
    %228 = vector.shape_cast %227 : vector<24xf32> to vector<1x24xf32>
    %229 = vector.broadcast %228 : vector<1x24xf32> to vector<24x24xf32>
    %230 = arith.subf %229, %226 : vector<24x24xf32>
    %231 = math.exp %230 : vector<24x24xf32>
    %cst_85 = arith.constant dense<0.000000e+00> : vector<24xf32>
    %232 = vector.multi_reduction <add>, %231, %cst_85 [0] : vector<24x24xf32> to vector<24xf32>
    %233 = vector.shape_cast %232 : vector<24xf32> to vector<1x24xf32>
    %234 = vector.broadcast %4 : vector<24x1xf32> to vector<24x24xf32>
    %235 = arith.mulf %234, %231 : vector<24x24xf32>
    %cst_86 = arith.constant dense<0.000000e+00> : vector<24xf32>
    %236 = vector.multi_reduction <add>, %235, %cst_86 [0] : vector<24x24xf32> to vector<24xf32>
    %237 = vector.shape_cast %236 : vector<24xf32> to vector<1x24xf32>
    %238 = arith.divf %237, %233 : vector<1x24xf32>
    %c0_87 = arith.constant 0 : index
    %c11 = arith.constant 11 : index
    %c0_88 = arith.constant 0 : index
    %239 = vector.load %arg5[%c0_87, %c11, %c0_88] : memref<1x24x24xf32, #tpu.memory_space<vmem>>, vector<1x1x24xf32>
    %240 = vector.shape_cast %239 : vector<1x1x24xf32> to vector<1x24xf32>
    %241 = vector.shape_cast %238 : vector<1x24xf32> to vector<1x1x24xf32>
    tpu.vector_store %arg5[%c0_87, %c11, %c0_88], %241 {strides = array<i32>} : memref<1x24x24xf32, #tpu.memory_space<vmem>>, vector<1x1x24xf32>,
    %242 = vector.extract_strided_slice %9 {offsets = [48, 0], sizes = [8, 24], strides = [1, 1]} : vector<80x24xf32> to vector<8x24xf32>
    %cst_89 = arith.constant dense<0.000000e+00> : vector<24x24xf32>
    %243 = tpu.matmul %2, %242, %cst_89 {dimension_numbers = #tpu.dot_dimension_numbers<[1], [0], [0], [1], [0, 0, 1, 1], [], []>} : vector<24x8xf32>, vector<8x24xf32>, vector<24x24xf32> -> vector<24x24xf32>
    %cst_90 = arith.constant 0.333333343 : f32
    %244 = vector.broadcast %cst_90 : f32 to vector<24x24xf32>
    %245 = arith.mulf %244, %129 : vector<24x24xf32>
    %cst_91 = arith.constant 0.666666686 : f32
    %246 = vector.broadcast %cst_91 : f32 to vector<24x24xf32>
    %247 = arith.mulf %246, %186 : vector<24x24xf32>
    %248 = arith.addf %245, %247 : vector<24x24xf32>
    %cst_92 = arith.constant dense<0x7F800000> : vector<24xf32>
    %249 = vector.multi_reduction <minimumf>, %248, %cst_92 [0] : vector<24x24xf32> to vector<24xf32>
    %250 = vector.shape_cast %249 : vector<24xf32> to vector<1x24xf32>
    %251 = vector.broadcast %250 : vector<1x24xf32> to vector<24x24xf32>
    %252 = arith.subf %251, %248 : vector<24x24xf32>
    %253 = math.exp %252 : vector<24x24xf32>
    %cst_93 = arith.constant dense<0.000000e+00> : vector<24xf32>
    %254 = vector.multi_reduction <add>, %253, %cst_93 [0] : vector<24x24xf32> to vector<24xf32>
    %255 = vector.shape_cast %254 : vector<24xf32> to vector<1x24xf32>
    %256 = vector.broadcast %4 : vector<24x1xf32> to vector<24x24xf32>
    %257 = arith.mulf %256, %253 : vector<24x24xf32>
    %cst_94 = arith.constant dense<0.000000e+00> : vector<24xf32>
    %258 = vector.multi_reduction <add>, %257, %cst_94 [0] : vector<24x24xf32> to vector<24xf32>
    %259 = vector.shape_cast %258 : vector<24xf32> to vector<1x24xf32>
    %260 = arith.divf %259, %255 : vector<1x24xf32>
    %c0_95 = arith.constant 0 : index
    %c12 = arith.constant 12 : index
    %c0_96 = arith.constant 0 : index
    %261 = vector.load %arg5[%c0_95, %c12, %c0_96] : memref<1x24x24xf32, #tpu.memory_space<vmem>>, vector<1x1x24xf32>
    %262 = vector.shape_cast %261 : vector<1x1x24xf32> to vector<1x24xf32>
    %263 = vector.shape_cast %260 : vector<1x24xf32> to vector<1x1x24xf32>
    tpu.vector_store %arg5[%c0_95, %c12, %c0_96], %263 {strides = array<i32>} : memref<1x24x24xf32, #tpu.memory_space<vmem>>, vector<1x1x24xf32>,
    %cst_97 = arith.constant dense<0x7F800000> : vector<24xf32>
    %264 = vector.multi_reduction <minimumf>, %186, %cst_97 [0] : vector<24x24xf32> to vector<24xf32>
    %265 = vector.shape_cast %264 : vector<24xf32> to vector<1x24xf32>
    %266 = vector.broadcast %265 : vector<1x24xf32> to vector<24x24xf32>
    %267 = arith.subf %266, %186 : vector<24x24xf32>
    %268 = math.exp %267 : vector<24x24xf32>
    %cst_98 = arith.constant dense<0.000000e+00> : vector<24xf32>
    %269 = vector.multi_reduction <add>, %268, %cst_98 [0] : vector<24x24xf32> to vector<24xf32>
    %270 = vector.shape_cast %269 : vector<24xf32> to vector<1x24xf32>
    %271 = vector.broadcast %4 : vector<24x1xf32> to vector<24x24xf32>
    %272 = arith.mulf %271, %268 : vector<24x24xf32>
    %cst_99 = arith.constant dense<0.000000e+00> : vector<24xf32>
    %273 = vector.multi_reduction <add>, %272, %cst_99 [0] : vector<24x24xf32> to vector<24xf32>
    %274 = vector.shape_cast %273 : vector<24xf32> to vector<1x24xf32>
    %275 = arith.divf %274, %270 : vector<1x24xf32>
    %c0_100 = arith.constant 0 : index
    %c13 = arith.constant 13 : index
    %c0_101 = arith.constant 0 : index
    %276 = vector.load %arg5[%c0_100, %c13, %c0_101] : memref<1x24x24xf32, #tpu.memory_space<vmem>>, vector<1x1x24xf32>
    %277 = vector.shape_cast %276 : vector<1x1x24xf32> to vector<1x24xf32>
    %278 = vector.shape_cast %275 : vector<1x24xf32> to vector<1x1x24xf32>
    tpu.vector_store %arg5[%c0_100, %c13, %c0_101], %278 {strides = array<i32>} : memref<1x24x24xf32, #tpu.memory_space<vmem>>, vector<1x1x24xf32>,
    %cst_102 = arith.constant 0.666666686 : f32
    %279 = vector.broadcast %cst_102 : f32 to vector<24x24xf32>
    %280 = arith.mulf %279, %186 : vector<24x24xf32>
    %cst_103 = arith.constant 0.333333343 : f32
    %281 = vector.broadcast %cst_103 : f32 to vector<24x24xf32>
    %282 = arith.mulf %281, %243 : vector<24x24xf32>
    %283 = arith.addf %280, %282 : vector<24x24xf32>
    %cst_104 = arith.constant dense<0x7F800000> : vector<24xf32>
    %284 = vector.multi_reduction <minimumf>, %283, %cst_104 [0] : vector<24x24xf32> to vector<24xf32>
    %285 = vector.shape_cast %284 : vector<24xf32> to vector<1x24xf32>
    %286 = vector.broadcast %285 : vector<1x24xf32> to vector<24x24xf32>
    %287 = arith.subf %286, %283 : vector<24x24xf32>
    %288 = math.exp %287 : vector<24x24xf32>
    %cst_105 = arith.constant dense<0.000000e+00> : vector<24xf32>
    %289 = vector.multi_reduction <add>, %288, %cst_105 [0] : vector<24x24xf32> to vector<24xf32>
    %290 = vector.shape_cast %289 : vector<24xf32> to vector<1x24xf32>
    %291 = vector.broadcast %4 : vector<24x1xf32> to vector<24x24xf32>
    %292 = arith.mulf %291, %288 : vector<24x24xf32>
    %cst_106 = arith.constant dense<0.000000e+00> : vector<24xf32>
    %293 = vector.multi_reduction <add>, %292, %cst_106 [0] : vector<24x24xf32> to vector<24xf32>
    %294 = vector.shape_cast %293 : vector<24xf32> to vector<1x24xf32>
    %295 = arith.divf %294, %290 : vector<1x24xf32>
    %c0_107 = arith.constant 0 : index
    %c14 = arith.constant 14 : index
    %c0_108 = arith.constant 0 : index
    %296 = vector.load %arg5[%c0_107, %c14, %c0_108] : memref<1x24x24xf32, #tpu.memory_space<vmem>>, vector<1x1x24xf32>
    %297 = vector.shape_cast %296 : vector<1x1x24xf32> to vector<1x24xf32>
    %298 = vector.shape_cast %295 : vector<1x24xf32> to vector<1x1x24xf32>
    tpu.vector_store %arg5[%c0_107, %c14, %c0_108], %298 {strides = array<i32>} : memref<1x24x24xf32, #tpu.memory_space<vmem>>, vector<1x1x24xf32>,
    %299 = vector.extract_strided_slice %9 {offsets = [56, 0], sizes = [8, 24], strides = [1, 1]} : vector<80x24xf32> to vector<8x24xf32>
    %cst_109 = arith.constant dense<0.000000e+00> : vector<24x24xf32>
    %300 = tpu.matmul %2, %299, %cst_109 {dimension_numbers = #tpu.dot_dimension_numbers<[1], [0], [0], [1], [0, 0, 1, 1], [], []>} : vector<24x8xf32>, vector<8x24xf32>, vector<24x24xf32> -> vector<24x24xf32>
    %cst_110 = arith.constant 0.333333343 : f32
    %301 = vector.broadcast %cst_110 : f32 to vector<24x24xf32>
    %302 = arith.mulf %301, %186 : vector<24x24xf32>
    %cst_111 = arith.constant 0.666666686 : f32
    %303 = vector.broadcast %cst_111 : f32 to vector<24x24xf32>
    %304 = arith.mulf %303, %243 : vector<24x24xf32>
    %305 = arith.addf %302, %304 : vector<24x24xf32>
    %cst_112 = arith.constant dense<0x7F800000> : vector<24xf32>
    %306 = vector.multi_reduction <minimumf>, %305, %cst_112 [0] : vector<24x24xf32> to vector<24xf32>
    %307 = vector.shape_cast %306 : vector<24xf32> to vector<1x24xf32>
    %308 = vector.broadcast %307 : vector<1x24xf32> to vector<24x24xf32>
    %309 = arith.subf %308, %305 : vector<24x24xf32>
    %310 = math.exp %309 : vector<24x24xf32>
    %cst_113 = arith.constant dense<0.000000e+00> : vector<24xf32>
    %311 = vector.multi_reduction <add>, %310, %cst_113 [0] : vector<24x24xf32> to vector<24xf32>
    %312 = vector.shape_cast %311 : vector<24xf32> to vector<1x24xf32>
    %313 = vector.broadcast %4 : vector<24x1xf32> to vector<24x24xf32>
    %314 = arith.mulf %313, %310 : vector<24x24xf32>
    %cst_114 = arith.constant dense<0.000000e+00> : vector<24xf32>
    %315 = vector.multi_reduction <add>, %314, %cst_114 [0] : vector<24x24xf32> to vector<24xf32>
    %316 = vector.shape_cast %315 : vector<24xf32> to vector<1x24xf32>
    %317 = arith.divf %316, %312 : vector<1x24xf32>
    %c0_115 = arith.constant 0 : index
    %c15 = arith.constant 15 : index
    %c0_116 = arith.constant 0 : index
    %318 = vector.load %arg5[%c0_115, %c15, %c0_116] : memref<1x24x24xf32, #tpu.memory_space<vmem>>, vector<1x1x24xf32>
    %319 = vector.shape_cast %318 : vector<1x1x24xf32> to vector<1x24xf32>
    %320 = vector.shape_cast %317 : vector<1x24xf32> to vector<1x1x24xf32>
    tpu.vector_store %arg5[%c0_115, %c15, %c0_116], %320 {strides = array<i32>} : memref<1x24x24xf32, #tpu.memory_space<vmem>>, vector<1x1x24xf32>,
    %cst_117 = arith.constant dense<0x7F800000> : vector<24xf32>
    %321 = vector.multi_reduction <minimumf>, %243, %cst_117 [0] : vector<24x24xf32> to vector<24xf32>
    %322 = vector.shape_cast %321 : vector<24xf32> to vector<1x24xf32>
    %323 = vector.broadcast %322 : vector<1x24xf32> to vector<24x24xf32>
    %324 = arith.subf %323, %243 : vector<24x24xf32>
    %325 = math.exp %324 : vector<24x24xf32>
    %cst_118 = arith.constant dense<0.000000e+00> : vector<24xf32>
    %326 = vector.multi_reduction <add>, %325, %cst_118 [0] : vector<24x24xf32> to vector<24xf32>
    %327 = vector.shape_cast %326 : vector<24xf32> to vector<1x24xf32>
    %328 = vector.broadcast %4 : vector<24x1xf32> to vector<24x24xf32>
    %329 = arith.mulf %328, %325 : vector<24x24xf32>
    %cst_119 = arith.constant dense<0.000000e+00> : vector<24xf32>
    %330 = vector.multi_reduction <add>, %329, %cst_119 [0] : vector<24x24xf32> to vector<24xf32>
    %331 = vector.shape_cast %330 : vector<24xf32> to vector<1x24xf32>
    %332 = arith.divf %331, %327 : vector<1x24xf32>
    %c0_120 = arith.constant 0 : index
    %c16 = arith.constant 16 : index
    %c0_121 = arith.constant 0 : index
    %333 = vector.load %arg5[%c0_120, %c16, %c0_121] : memref<1x24x24xf32, #tpu.memory_space<vmem>>, vector<1x1x24xf32>
    %334 = vector.shape_cast %333 : vector<1x1x24xf32> to vector<1x24xf32>
    %335 = vector.shape_cast %332 : vector<1x24xf32> to vector<1x1x24xf32>
    tpu.vector_store %arg5[%c0_120, %c16, %c0_121], %335 {strides = array<i32>} : memref<1x24x24xf32, #tpu.memory_space<vmem>>, vector<1x1x24xf32>,
    %cst_122 = arith.constant 0.666666686 : f32
    %336 = vector.broadcast %cst_122 : f32 to vector<24x24xf32>
    %337 = arith.mulf %336, %243 : vector<24x24xf32>
    %cst_123 = arith.constant 0.333333343 : f32
    %338 = vector.broadcast %cst_123 : f32 to vector<24x24xf32>
    %339 = arith.mulf %338, %300 : vector<24x24xf32>
    %340 = arith.addf %337, %339 : vector<24x24xf32>
    %cst_124 = arith.constant dense<0x7F800000> : vector<24xf32>
    %341 = vector.multi_reduction <minimumf>, %340, %cst_124 [0] : vector<24x24xf32> to vector<24xf32>
    %342 = vector.shape_cast %341 : vector<24xf32> to vector<1x24xf32>
    %343 = vector.broadcast %342 : vector<1x24xf32> to vector<24x24xf32>
    %344 = arith.subf %343, %340 : vector<24x24xf32>
    %345 = math.exp %344 : vector<24x24xf32>
    %cst_125 = arith.constant dense<0.000000e+00> : vector<24xf32>
    %346 = vector.multi_reduction <add>, %345, %cst_125 [0] : vector<24x24xf32> to vector<24xf32>
    %347 = vector.shape_cast %346 : vector<24xf32> to vector<1x24xf32>
    %348 = vector.broadcast %4 : vector<24x1xf32> to vector<24x24xf32>
    %349 = arith.mulf %348, %345 : vector<24x24xf32>
    %cst_126 = arith.constant dense<0.000000e+00> : vector<24xf32>
    %350 = vector.multi_reduction <add>, %349, %cst_126 [0] : vector<24x24xf32> to vector<24xf32>
    %351 = vector.shape_cast %350 : vector<24xf32> to vector<1x24xf32>
    %352 = arith.divf %351, %347 : vector<1x24xf32>
    %c0_127 = arith.constant 0 : index
    %c17 = arith.constant 17 : index
    %c0_128 = arith.constant 0 : index
    %353 = vector.load %arg5[%c0_127, %c17, %c0_128] : memref<1x24x24xf32, #tpu.memory_space<vmem>>, vector<1x1x24xf32>
    %354 = vector.shape_cast %353 : vector<1x1x24xf32> to vector<1x24xf32>
    %355 = vector.shape_cast %352 : vector<1x24xf32> to vector<1x1x24xf32>
    tpu.vector_store %arg5[%c0_127, %c17, %c0_128], %355 {strides = array<i32>} : memref<1x24x24xf32, #tpu.memory_space<vmem>>, vector<1x1x24xf32>,
    %356 = vector.extract_strided_slice %9 {offsets = [64, 0], sizes = [8, 24], strides = [1, 1]} : vector<80x24xf32> to vector<8x24xf32>
    %cst_129 = arith.constant dense<0.000000e+00> : vector<24x24xf32>
    %357 = tpu.matmul %2, %356, %cst_129 {dimension_numbers = #tpu.dot_dimension_numbers<[1], [0], [0], [1], [0, 0, 1, 1], [], []>} : vector<24x8xf32>, vector<8x24xf32>, vector<24x24xf32> -> vector<24x24xf32>
    %cst_130 = arith.constant 0.333333343 : f32
    %358 = vector.broadcast %cst_130 : f32 to vector<24x24xf32>
    %359 = arith.mulf %358, %243 : vector<24x24xf32>
    %cst_131 = arith.constant 0.666666686 : f32
    %360 = vector.broadcast %cst_131 : f32 to vector<24x24xf32>
    %361 = arith.mulf %360, %300 : vector<24x24xf32>
    %362 = arith.addf %359, %361 : vector<24x24xf32>
    %cst_132 = arith.constant dense<0x7F800000> : vector<24xf32>
    %363 = vector.multi_reduction <minimumf>, %362, %cst_132 [0] : vector<24x24xf32> to vector<24xf32>
    %364 = vector.shape_cast %363 : vector<24xf32> to vector<1x24xf32>
    %365 = vector.broadcast %364 : vector<1x24xf32> to vector<24x24xf32>
    %366 = arith.subf %365, %362 : vector<24x24xf32>
    %367 = math.exp %366 : vector<24x24xf32>
    %cst_133 = arith.constant dense<0.000000e+00> : vector<24xf32>
    %368 = vector.multi_reduction <add>, %367, %cst_133 [0] : vector<24x24xf32> to vector<24xf32>
    %369 = vector.shape_cast %368 : vector<24xf32> to vector<1x24xf32>
    %370 = vector.broadcast %4 : vector<24x1xf32> to vector<24x24xf32>
    %371 = arith.mulf %370, %367 : vector<24x24xf32>
    %cst_134 = arith.constant dense<0.000000e+00> : vector<24xf32>
    %372 = vector.multi_reduction <add>, %371, %cst_134 [0] : vector<24x24xf32> to vector<24xf32>
    %373 = vector.shape_cast %372 : vector<24xf32> to vector<1x24xf32>
    %374 = arith.divf %373, %369 : vector<1x24xf32>
    %c0_135 = arith.constant 0 : index
    %c18 = arith.constant 18 : index
    %c0_136 = arith.constant 0 : index
    %375 = vector.load %arg5[%c0_135, %c18, %c0_136] : memref<1x24x24xf32, #tpu.memory_space<vmem>>, vector<1x1x24xf32>
    %376 = vector.shape_cast %375 : vector<1x1x24xf32> to vector<1x24xf32>
    %377 = vector.shape_cast %374 : vector<1x24xf32> to vector<1x1x24xf32>
    tpu.vector_store %arg5[%c0_135, %c18, %c0_136], %377 {strides = array<i32>} : memref<1x24x24xf32, #tpu.memory_space<vmem>>, vector<1x1x24xf32>,
    %cst_137 = arith.constant dense<0x7F800000> : vector<24xf32>
    %378 = vector.multi_reduction <minimumf>, %300, %cst_137 [0] : vector<24x24xf32> to vector<24xf32>
    %379 = vector.shape_cast %378 : vector<24xf32> to vector<1x24xf32>
    %380 = vector.broadcast %379 : vector<1x24xf32> to vector<24x24xf32>
    %381 = arith.subf %380, %300 : vector<24x24xf32>
    %382 = math.exp %381 : vector<24x24xf32>
    %cst_138 = arith.constant dense<0.000000e+00> : vector<24xf32>
    %383 = vector.multi_reduction <add>, %382, %cst_138 [0] : vector<24x24xf32> to vector<24xf32>
    %384 = vector.shape_cast %383 : vector<24xf32> to vector<1x24xf32>
    %385 = vector.broadcast %4 : vector<24x1xf32> to vector<24x24xf32>
    %386 = arith.mulf %385, %382 : vector<24x24xf32>
    %cst_139 = arith.constant dense<0.000000e+00> : vector<24xf32>
    %387 = vector.multi_reduction <add>, %386, %cst_139 [0] : vector<24x24xf32> to vector<24xf32>
    %388 = vector.shape_cast %387 : vector<24xf32> to vector<1x24xf32>
    %389 = arith.divf %388, %384 : vector<1x24xf32>
    %c0_140 = arith.constant 0 : index
    %c19 = arith.constant 19 : index
    %c0_141 = arith.constant 0 : index
    %390 = vector.load %arg5[%c0_140, %c19, %c0_141] : memref<1x24x24xf32, #tpu.memory_space<vmem>>, vector<1x1x24xf32>
    %391 = vector.shape_cast %390 : vector<1x1x24xf32> to vector<1x24xf32>
    %392 = vector.shape_cast %389 : vector<1x24xf32> to vector<1x1x24xf32>
    tpu.vector_store %arg5[%c0_140, %c19, %c0_141], %392 {strides = array<i32>} : memref<1x24x24xf32, #tpu.memory_space<vmem>>, vector<1x1x24xf32>,
    %cst_142 = arith.constant 0.666666686 : f32
    %393 = vector.broadcast %cst_142 : f32 to vector<24x24xf32>
    %394 = arith.mulf %393, %300 : vector<24x24xf32>
    %cst_143 = arith.constant 0.333333343 : f32
    %395 = vector.broadcast %cst_143 : f32 to vector<24x24xf32>
    %396 = arith.mulf %395, %357 : vector<24x24xf32>
    %397 = arith.addf %394, %396 : vector<24x24xf32>
    %cst_144 = arith.constant dense<0x7F800000> : vector<24xf32>
    %398 = vector.multi_reduction <minimumf>, %397, %cst_144 [0] : vector<24x24xf32> to vector<24xf32>
    %399 = vector.shape_cast %398 : vector<24xf32> to vector<1x24xf32>
    %400 = vector.broadcast %399 : vector<1x24xf32> to vector<24x24xf32>
    %401 = arith.subf %400, %397 : vector<24x24xf32>
    %402 = math.exp %401 : vector<24x24xf32>
    %cst_145 = arith.constant dense<0.000000e+00> : vector<24xf32>
    %403 = vector.multi_reduction <add>, %402, %cst_145 [0] : vector<24x24xf32> to vector<24xf32>
    %404 = vector.shape_cast %403 : vector<24xf32> to vector<1x24xf32>
    %405 = vector.broadcast %4 : vector<24x1xf32> to vector<24x24xf32>
    %406 = arith.mulf %405, %402 : vector<24x24xf32>
    %cst_146 = arith.constant dense<0.000000e+00> : vector<24xf32>
    %407 = vector.multi_reduction <add>, %406, %cst_146 [0] : vector<24x24xf32> to vector<24xf32>
    %408 = vector.shape_cast %407 : vector<24xf32> to vector<1x24xf32>
    %409 = arith.divf %408, %404 : vector<1x24xf32>
    %c0_147 = arith.constant 0 : index
    %c20 = arith.constant 20 : index
    %c0_148 = arith.constant 0 : index
    %410 = vector.load %arg5[%c0_147, %c20, %c0_148] : memref<1x24x24xf32, #tpu.memory_space<vmem>>, vector<1x1x24xf32>
    %411 = vector.shape_cast %410 : vector<1x1x24xf32> to vector<1x24xf32>
    %412 = vector.shape_cast %409 : vector<1x24xf32> to vector<1x1x24xf32>
    tpu.vector_store %arg5[%c0_147, %c20, %c0_148], %412 {strides = array<i32>} : memref<1x24x24xf32, #tpu.memory_space<vmem>>, vector<1x1x24xf32>,
    %413 = vector.extract_strided_slice %9 {offsets = [72, 0], sizes = [8, 24], strides = [1, 1]} : vector<80x24xf32> to vector<8x24xf32>
    %cst_149 = arith.constant dense<0.000000e+00> : vector<24x24xf32>
    %414 = tpu.matmul %2, %413, %cst_149 {dimension_numbers = #tpu.dot_dimension_numbers<[1], [0], [0], [1], [0, 0, 1, 1], [], []>} : vector<24x8xf32>, vector<8x24xf32>, vector<24x24xf32> -> vector<24x24xf32>
    %cst_150 = arith.constant 0.333333343 : f32
    %415 = vector.broadcast %cst_150 : f32 to vector<24x24xf32>
    %416 = arith.mulf %415, %300 : vector<24x24xf32>
    %cst_151 = arith.constant 0.666666686 : f32
    %417 = vector.broadcast %cst_151 : f32 to vector<24x24xf32>
    %418 = arith.mulf %417, %357 : vector<24x24xf32>
    %419 = arith.addf %416, %418 : vector<24x24xf32>
    %cst_152 = arith.constant dense<0x7F800000> : vector<24xf32>
    %420 = vector.multi_reduction <minimumf>, %419, %cst_152 [0] : vector<24x24xf32> to vector<24xf32>
    %421 = vector.shape_cast %420 : vector<24xf32> to vector<1x24xf32>
    %422 = vector.broadcast %421 : vector<1x24xf32> to vector<24x24xf32>
    %423 = arith.subf %422, %419 : vector<24x24xf32>
    %424 = math.exp %423 : vector<24x24xf32>
    %cst_153 = arith.constant dense<0.000000e+00> : vector<24xf32>
    %425 = vector.multi_reduction <add>, %424, %cst_153 [0] : vector<24x24xf32> to vector<24xf32>
    %426 = vector.shape_cast %425 : vector<24xf32> to vector<1x24xf32>
    %427 = vector.broadcast %4 : vector<24x1xf32> to vector<24x24xf32>
    %428 = arith.mulf %427, %424 : vector<24x24xf32>
    %cst_154 = arith.constant dense<0.000000e+00> : vector<24xf32>
    %429 = vector.multi_reduction <add>, %428, %cst_154 [0] : vector<24x24xf32> to vector<24xf32>
    %430 = vector.shape_cast %429 : vector<24xf32> to vector<1x24xf32>
    %431 = arith.divf %430, %426 : vector<1x24xf32>
    %c0_155 = arith.constant 0 : index
    %c21 = arith.constant 21 : index
    %c0_156 = arith.constant 0 : index
    %432 = vector.load %arg5[%c0_155, %c21, %c0_156] : memref<1x24x24xf32, #tpu.memory_space<vmem>>, vector<1x1x24xf32>
    %433 = vector.shape_cast %432 : vector<1x1x24xf32> to vector<1x24xf32>
    %434 = vector.shape_cast %431 : vector<1x24xf32> to vector<1x1x24xf32>
    tpu.vector_store %arg5[%c0_155, %c21, %c0_156], %434 {strides = array<i32>} : memref<1x24x24xf32, #tpu.memory_space<vmem>>, vector<1x1x24xf32>,
    %cst_157 = arith.constant dense<0x7F800000> : vector<24xf32>
    %435 = vector.multi_reduction <minimumf>, %357, %cst_157 [0] : vector<24x24xf32> to vector<24xf32>
    %436 = vector.shape_cast %435 : vector<24xf32> to vector<1x24xf32>
    %437 = vector.broadcast %436 : vector<1x24xf32> to vector<24x24xf32>
    %438 = arith.subf %437, %357 : vector<24x24xf32>
    %439 = math.exp %438 : vector<24x24xf32>
    %cst_158 = arith.constant dense<0.000000e+00> : vector<24xf32>
    %440 = vector.multi_reduction <add>, %439, %cst_158 [0] : vector<24x24xf32> to vector<24xf32>
    %441 = vector.shape_cast %440 : vector<24xf32> to vector<1x24xf32>
    %442 = vector.broadcast %4 : vector<24x1xf32> to vector<24x24xf32>
    %443 = arith.mulf %442, %439 : vector<24x24xf32>
    %cst_159 = arith.constant dense<0.000000e+00> : vector<24xf32>
    %444 = vector.multi_reduction <add>, %443, %cst_159 [0] : vector<24x24xf32> to vector<24xf32>
    %445 = vector.shape_cast %444 : vector<24xf32> to vector<1x24xf32>
    %446 = arith.divf %445, %441 : vector<1x24xf32>
    %c0_160 = arith.constant 0 : index
    %c22 = arith.constant 22 : index
    %c0_161 = arith.constant 0 : index
    %447 = vector.load %arg5[%c0_160, %c22, %c0_161] : memref<1x24x24xf32, #tpu.memory_space<vmem>>, vector<1x1x24xf32>
    %448 = vector.shape_cast %447 : vector<1x1x24xf32> to vector<1x24xf32>
    %449 = vector.shape_cast %446 : vector<1x24xf32> to vector<1x1x24xf32>
    tpu.vector_store %arg5[%c0_160, %c22, %c0_161], %449 {strides = array<i32>} : memref<1x24x24xf32, #tpu.memory_space<vmem>>, vector<1x1x24xf32>,
    %cst_162 = arith.constant 0.666666686 : f32
    %450 = vector.broadcast %cst_162 : f32 to vector<24x24xf32>
    %451 = arith.mulf %450, %357 : vector<24x24xf32>
    %cst_163 = arith.constant 0.333333343 : f32
    %452 = vector.broadcast %cst_163 : f32 to vector<24x24xf32>
    %453 = arith.mulf %452, %414 : vector<24x24xf32>
    %454 = arith.addf %451, %453 : vector<24x24xf32>
    %cst_164 = arith.constant dense<0x7F800000> : vector<24xf32>
    %455 = vector.multi_reduction <minimumf>, %454, %cst_164 [0] : vector<24x24xf32> to vector<24xf32>
    %456 = vector.shape_cast %455 : vector<24xf32> to vector<1x24xf32>
    %457 = vector.broadcast %456 : vector<1x24xf32> to vector<24x24xf32>
    %458 = arith.subf %457, %454 : vector<24x24xf32>
    %459 = math.exp %458 : vector<24x24xf32>
    %cst_165 = arith.constant dense<0.000000e+00> : vector<24xf32>
    %460 = vector.multi_reduction <add>, %459, %cst_165 [0] : vector<24x24xf32> to vector<24xf32>
    %461 = vector.shape_cast %460 : vector<24xf32> to vector<1x24xf32>
    %462 = vector.broadcast %4 : vector<24x1xf32> to vector<24x24xf32>
    %463 = arith.mulf %462, %459 : vector<24x24xf32>
    %cst_166 = arith.constant dense<0.000000e+00> : vector<24xf32>
    %464 = vector.multi_reduction <add>, %463, %cst_166 [0] : vector<24x24xf32> to vector<24xf32>
    %465 = vector.shape_cast %464 : vector<24xf32> to vector<1x24xf32>
    %466 = arith.divf %465, %461 : vector<1x24xf32>
    %c0_167 = arith.constant 0 : index
    %c23 = arith.constant 23 : index
    %c0_168 = arith.constant 0 : index
    %467 = vector.load %arg5[%c0_167, %c23, %c0_168] : memref<1x24x24xf32, #tpu.memory_space<vmem>>, vector<1x1x24xf32>
    %468 = vector.shape_cast %467 : vector<1x1x24xf32> to vector<1x24xf32>
    %469 = vector.shape_cast %466 : vector<1x24xf32> to vector<1x1x24xf32>
    tpu.vector_store %arg5[%c0_167, %c23, %c0_168], %469 {strides = array<i32>} : memref<1x24x24xf32, #tpu.memory_space<vmem>>, vector<1x1x24xf32>,
    return
  }
  func.func @transform_0(%arg0: i32, %arg1: i32) -> (i32, i32, i32, i32) {
    %c0_i32 = arith.constant 0 : i32
    %c0_i32_0 = arith.constant 0 : i32
    %c0_i32_1 = arith.constant 0 : i32
    %c0_i32_2 = arith.constant 0 : i32
    return %arg0, %c0_i32, %c0_i32_0, %c0_i32_1 : i32, i32, i32, i32
  }
  func.func @transform_1(%arg0: i32, %arg1: i32) -> (i32, i32) {
    %c0_i32 = arith.constant 0 : i32
    %c0_i32_0 = arith.constant 0 : i32
    %c0_i32_1 = arith.constant 0 : i32
    return %c0_i32, %c0_i32_0 : i32, i32
  }
  func.func @transform_2(%arg0: i32, %arg1: i32) -> (i32, i32) {
    %c0_i32 = arith.constant 0 : i32
    %c0_i32_0 = arith.constant 0 : i32
    %c0_i32_1 = arith.constant 0 : i32
    return %c0_i32, %c0_i32_0 : i32, i32
  }
  func.func @transform_3(%arg0: i32, %arg1: i32) -> (i32, i32, i32) {
    %c0_i32 = arith.constant 0 : i32
    %c0_i32_0 = arith.constant 0 : i32
    return %arg0, %arg1, %c0_i32 : i32, i32, i32
  }
}

</mosaic_0001>

<bundles_post_ra>
// kernel: disp_forward.1
= control target key start
LH: loop header
LB: loop body
LE: loop exit
PB: predicated region body
PF: predicated region fallthrough
CT: control target
= control target key end

     0   :  { %s3043_s12 = smov 0   ;;  %s3045_s13 = smov 0   ;;  %s4225_s0 = inlined_call_operand.vmem [shape: f32[2,18,8,8], index: 0, kind: input, shape index: {}]   ;;  %s4226_s1 = inlined_call_operand.vmem [shape: f32[8,24], index: 1, kind: input, shape index: {}]   ;;  %s4227_s2 = inlined_call_operand.vmem [shape: f32[24,8], index: 2, kind: input, shape index: {}]   ;;  %s4228_s3 = inlined_call_operand.vmem [shape: f32[2,48,24], index: 3, kind: output, shape index: {}]  }
   0x1   :  { %s3047_s14 = smov 0   ;;  %s3049_s15 = smov 0  }
   0x2   :  { %s3051_s16 = smov 0  }
   0x3 LB: > { %s22_s17 = sadd.s32 1, %s3011_s14  ;;  %s25_s18 = sadd.s32 1, %s3015_s15  ;;  %s3019_s16 = sphi %s3051_s16, %s13_s16   ;;  %s3015_s15 = sphi %s3049_s15, %s4251_s15   ;;  %s3011_s14 = sphi %s3047_s14, %s4250_s14   ;;  %s3007_s13 = sphi %s3045_s13, %s4249_s13   ;;  %s3003_s12 = sphi %s3043_s12, %s4248_s12  }
   0x4   : > { %p23_p0 = scmp.ge.s32.totalorder %s22_s17, 2  ;;  %p2519_p1 = scmp.ge.s32.totalorder %s3019_s16, 1 }
   0x5   : > { %p151_p2 = scmp.lt.s32.totalorder %s3019_s16, 5 }
   0x6   : > { %s4253_s17 = smov (%p23_p0, %s22_s17), 0  ;;  %s4255_s18 = smov (!%p23_p0, %s25_s18), %s3015_s15 }
   0x7   : > { %p152_p3 = pnand %p2519_p1, %p151_p2  ;;  %p27_p4 = scmp.ge.s32.totalorder %s4255_s18, 2 }
   0x9   : > { %s4257_s18 = smov (%p27_p4, %s4255_s18), 0  ;;  %155 = sbr.rel (%p152_p3) target bundleno = 806 (0x326), region = 32 }
  0x10   : > { %v195_v0 = vld [vmem:[%s4226_s1] sm:$0xff]  ;;  %p179_p5 = scmp.lt.s32.totalorder %s3007_s13, 1  ;;  %s2566_s22 = sshll.u32 %s3003_s12, 6  ;;  %vm218_vm0 = vcmask 64512   ;;  %v3021_v11 = vmov 0.0   ;;  %vm3022_vm1 = vmmov 0   ;;  %v199_v27 = vlaneseq }
  0x11   : > { %2618 = vmatprep.subr.mxu0 %v195_v0  ;;  %2635 = vmatprep.subr.mxu1 %v3021_v11  ;;  %v3104_v13 = vld [vmem:[%s4227_s2] sm:$0xff]  ;;  %v3114_v16 = vld [vmem:[%s4227_s2 + $0x8] sm:$0xff]  ;;  %v3128_v18 = vld [vmem:[%s4227_s2 + $0x10] sm:$0xff]  ;;  %vm622_vm2 = vcmask 195584   ;;  %s184_s6 = smul.u32 3, %s3003_s12  ;;  %vm670_vm3 = vcmask 188416  }
  0x12   : > { %2619 = vmatpush3.msra.mxu0 %v195_v0  ;;  %s4259_s13 = smov (!%p179_p5, %s3007_s13), 1  ;;  %2637 = vmatprep.mubr.msk.f32.mxu1 %vm3022_vm1, %v3021_v11  ;;  %v200_v32 = vshrl.u32 %v199_v27, 7 }
  0x13   : > { %s2745_s21 = smul.u32 144, %s4259_s13  ;;  %2657 = vmatprep.subr.mxu0 %v3021_v11  ;;  %p3486_p6 = scmp.lt.s32.totalorder %s184_s6, 5 }
  0x14   : > { %v201_v40 = vadd.s32 8, %v200_v32  ;;  %v202_v41 = vadd.s32 16, %v200_v32  ;;  %v3268_v54 = vcvt.s32.f32 %v200_v32  ;;  %s2746_s8 = smul.u32 6, %s4259_s13 }
  0x15   : > { %s183_s25 = scalar_lea.vmem %s4225_s0, %s2745_s21  ;;  %s4261_s6 = smov (!%p3486_p6, %s184_s6), 5 }
  0x16   : > { %s207_s26 = scalar_lea.vmem %s183_s25, %s2566_s22  ;;  %v3281_v62 = vcvt.s32.f32 %v201_v40  ;;  %v3283_v63 = vcvt.s32.f32 %v202_v41  ;;  %s3509_s9 = sadd.s32 %s2746_s8, %s4261_s6 }
  0x17   : > { %v208_v1 = vld [vmem:[%s207_s26] sm:$0xff]  ;;  %v209_v2 = vld [vmem:[%s207_s26 + $0x8] sm:$0xff]  ;;  %v210_v3 = vld [vmem:[%s207_s26 + $0x10] sm:$0xff]  ;;  %s2521_s10 = sshll.u32 %s3509_s9, 3 }
  0x18   : > { %2620 = vmatprep.mubr.msk.f32.mxu0 %vm218_vm0, %v208_v1  ;;  %v211_v4 = vld [vmem:[%s207_s26 + $0x18] sm:$0xff]  ;;  %v212_v5 = vld [vmem:[%s207_s26 + $0x20] sm:$0xff]  ;;  %v213_v6 = vld [vmem:[%s207_s26 + $0x28] sm:$0xff]  ;;  %s3528_s13 = scalar_lea.vmem %s4228_s3, %s2521_s10 }
  0x19   : > { %2621 = vmatmul.mubr.msk.f32.vlgmr.msra.gmra.mrb[0].mxu0 %vm218_vm0, %v209_v2  ;;  %v214_v7 = vld [vmem:[%s207_s26 + $0x30] sm:$0xff]  ;;  %v215_v8 = vld [vmem:[%s207_s26 + $0x38] sm:$0xff]  ;;  %v216_v9 = vld [vmem:[%s207_s26 + $0x40] sm:$0xff] }
  0x1a   : > { %2623 = vmatprep.mubr.msk.f32.mxu0 %vm218_vm0, %v210_v3  ;;  %v217_v10 = vld [vmem:[%s207_s26 + $0x48] sm:$0xff] }
  0x1d   : > { %2624 = vmatmul.mubr.msk.f32.gmra.mrb[2].mxu0 %vm218_vm0, %v211_v4 }
  0x1e   : > { %2626 = vmatprep.mubr.msk.f32.mxu0 %vm218_vm0, %v212_v5 }
  0x21   : > { %2627 = vmatmul.mubr.msk.f32.gmra.mrb[4].mxu0 %vm218_vm0, %v213_v6 }
  0x22   : > { %2629 = vmatprep.mubr.msk.f32.mxu0 %vm218_vm0, %v214_v7 }
  0x25   : > { %2630 = vmatmul.mubr.msk.f32.gmra.mrb[6].mxu0 %vm218_vm0, %v215_v8 }
  0x26   : > { %2632 = vmatprep.mubr.msk.f32.mxu0 %vm218_vm0, %v216_v9 }
  0x29   : > { %2633 = vmatmul.mubr.msk.f32.gmra.mrb[8].mxu0 %vm218_vm0, %v217_v10 }
  0x2a   : > { %2659 = vmatprep.mubr.msk.f32.mxu0 %vm3022_vm1, %v3021_v11 }
  0xec   : > { %v2622_v12 = vpop.f32.mrb[0].mxu0 }
  0xed   : > { %v315_v14 = vpop.f32.mrb[1].mxu0 }
  0xee   : > { %2636 = vmatpush3.msra.mxu1 %v315_v14 }
  0xef   : > { %2638 = vmatmul.mubr.msk.f32.vlgmr.msra.gmra.mrb[0].mxu1 %vm218_vm0, %v3104_v13  ;;  %2646 = vmatprep.subr.mxu1 %v3021_v11 }
  0xf0   : > { %v2625_v15 = vpop.f32.mrb[2].mxu0  ;;  %2647 = vmatpush3.msra.mxu1 %v2622_v12  ;;  %2640 = vmatprep.mubr.msk.f32.mxu1 %vm3022_vm1, %v3021_v11 }
  0xf1   : > { %v325_v17 = vpop.f32.mrb[3].mxu0  ;;  %2668 = vmatprep.subr.mxu1 %v3021_v11 }
  0xf2   : > { %2658 = vmatpush3.msra.mxu0 %v325_v17 }
  0xf3   : > { %2641 = vmatmul.mubr.msk.f32.gmra.mrb[2].mxu1 %vm218_vm0, %v3114_v16  ;;  %2660 = vmatmul.mubr.msk.f32.vlgmr.msra.gmra.mrb[10].mxu0 %vm218_vm0, %v3104_v13 }
  0xf4   : > { %2643 = vmatprep.mubr.msk.f32.mxu1 %vm3022_vm1, %v3021_v11  ;;  %2662 = vmatprep.mubr.msk.f32.mxu0 %vm3022_vm1, %v3021_v11  ;;  %v2628_v19 = vpop.f32.mrb[4].mxu0 }
  0xf5   : > { %v335_v20 = vpop.f32.mrb[5].mxu0  ;;  %2679 = vmatprep.subr.mxu0 %v3021_v11 }
  0xf6   : > { %2680 = vmatpush3.msra.mxu0 %v335_v20 }
  0xf7   : > { %2644 = vmatmul.mubr.msk.f32.gmra.mrb[4].mxu1 %vm218_vm0, %v3128_v18  ;;  %2663 = vmatmul.mubr.msk.f32.gmra.mrb[12].mxu0 %vm218_vm0, %v3114_v16 }
  0xf8   : > { %2648 = vmatprep.mubr.msk.f32.mxu1 %vm3022_vm1, %v3021_v11  ;;  %2665 = vmatprep.mubr.msk.f32.mxu0 %vm3022_vm1, %v3021_v11  ;;  %v2631_v21 = vpop.f32.mrb[6].mxu0 }
  0xf9   : > { %v345_v22 = vpop.f32.mrb[7].mxu0  ;;  %2701 = vmatprep.subr.mxu0 %v3021_v11 }
  0xfb   : > { %2649 = vmatmul.mubr.msk.f32.vlgmr.msra.gmra.mrb[6].mxu1 %vm218_vm0, %v3104_v13  ;;  %2666 = vmatmul.mubr.msk.f32.gmra.mrb[14].mxu0 %vm218_vm0, %v3128_v18 }
  0xfc   : > { %2669 = vmatpush3.msra.mxu1 %v2625_v15  ;;  %2651 = vmatprep.mubr.msk.f32.mxu1 %vm3022_vm1, %v3021_v11  ;;  %v2634_v23 = vpop.f32.mrb[8].mxu0 }
  0xfd   : > { %2681 = vmatprep.mubr.msk.f32.mxu0 %vm3022_vm1, %v3021_v11  ;;  %2690 = vmatprep.subr.mxu1 %v3021_v11  ;;  %v355_v24 = vpop.f32.mrb[9].mxu0 }
  0xff   : > { %2652 = vmatmul.mubr.msk.f32.gmra.mrb[8].mxu1 %vm218_vm0, %v3114_v16  ;;  %2682 = vmatmul.mubr.msk.f32.vlgmr.msra.gmra.mrb[16].mxu0 %vm218_vm0, %v3104_v13 }
 0x100   : > { %2654 = vmatprep.mubr.msk.f32.mxu1 %vm3022_vm1, %v3021_v11  ;;  %2684 = vmatprep.mubr.msk.f32.mxu0 %vm3022_vm1, %v3021_v11 }
 0x101   : > { %2702 = vmatpush3.msra.mxu0 %v345_v22 }
 0x102   : > { %2723 = vmatprep.subr.mxu0 %v3021_v11 }
 0x103   : > { %2655 = vmatmul.mubr.msk.f32.gmra.mrb[10].mxu1 %vm218_vm0, %v3128_v18  ;;  %2685 = vmatmul.mubr.msk.f32.gmra.mrb[18].mxu0 %vm218_vm0, %v3114_v16 }
 0x104   : > { %2670 = vmatprep.mubr.msk.f32.mxu1 %vm3022_vm1, %v3021_v11  ;;  %2687 = vmatprep.mubr.msk.f32.mxu0 %vm3022_vm1, %v3021_v11 }
 0x107   : > { %2671 = vmatmul.mubr.msk.f32.vlgmr.msra.gmra.mrb[12].mxu1 %vm218_vm0, %v3104_v13  ;;  %2688 = vmatmul.mubr.msk.f32.gmra.mrb[20].mxu0 %vm218_vm0, %v3128_v18 }
 0x108   : > { %2691 = vmatpush3.msra.mxu1 %v2628_v19  ;;  %2673 = vmatprep.mubr.msk.f32.mxu1 %vm3022_vm1, %v3021_v11 }
 0x109   : > { %2703 = vmatprep.mubr.msk.f32.mxu0 %vm3022_vm1, %v3021_v11  ;;  %2712 = vmatprep.subr.mxu1 %v3021_v11 }
 0x10b   : > { %2674 = vmatmul.mubr.msk.f32.gmra.mrb[14].mxu1 %vm218_vm0, %v3114_v16  ;;  %2704 = vmatmul.mubr.msk.f32.vlgmr.msra.gmra.mrb[22].mxu0 %vm218_vm0, %v3104_v13 }
 0x10c   : > { %2676 = vmatprep.mubr.msk.f32.mxu1 %vm3022_vm1, %v3021_v11  ;;  %2706 = vmatprep.mubr.msk.f32.mxu0 %vm3022_vm1, %v3021_v11 }
 0x10d   : > { %2724 = vmatpush3.msra.mxu0 %v355_v24 }
 0x10f   : > { %2677 = vmatmul.mubr.msk.f32.gmra.mrb[16].mxu1 %vm218_vm0, %v3128_v18  ;;  %2707 = vmatmul.mubr.msk.f32.gmra.mrb[24].mxu0 %vm218_vm0, %v3114_v16 }
 0x110   : > { %2692 = vmatprep.mubr.msk.f32.mxu1 %vm3022_vm1, %v3021_v11  ;;  %2709 = vmatprep.mubr.msk.f32.mxu0 %vm3022_vm1, %v3021_v11 }
 0x113   : > { %2693 = vmatmul.mubr.msk.f32.vlgmr.msra.gmra.mrb[18].mxu1 %vm218_vm0, %v3104_v13  ;;  %2710 = vmatmul.mubr.msk.f32.gmra.mrb[26].mxu0 %vm218_vm0, %v3128_v18 }
 0x114   : > { %2713 = vmatpush3.msra.mxu1 %v2631_v21  ;;  %2695 = vmatprep.mubr.msk.f32.mxu1 %vm3022_vm1, %v3021_v11 }
 0x115   : > { %2725 = vmatprep.mubr.msk.f32.mxu0 %vm3022_vm1, %v3021_v11  ;;  %2734 = vmatprep.subr.mxu1 %v3021_v11 }
 0x117   : > { %2696 = vmatmul.mubr.msk.f32.gmra.mrb[20].mxu1 %vm218_vm0, %v3114_v16  ;;  %2726 = vmatmul.mubr.msk.f32.vlgmr.msra.gmra.mrb[28].mxu0 %vm218_vm0, %v3104_v13 }
 0x118   : > { %2698 = vmatprep.mubr.msk.f32.mxu1 %vm3022_vm1, %v3021_v11  ;;  %2728 = vmatprep.mubr.msk.f32.mxu0 %vm3022_vm1, %v3021_v11 }
 0x11b   : > { %2699 = vmatmul.mubr.msk.f32.gmra.mrb[22].mxu1 %vm218_vm0, %v3128_v18  ;;  %2729 = vmatmul.mubr.msk.f32.gmra.mrb[30].mxu0 %vm218_vm0, %v3114_v16 }
 0x11c   : > { %2714 = vmatprep.mubr.msk.f32.mxu1 %vm3022_vm1, %v3021_v11  ;;  %2731 = vmatprep.mubr.msk.f32.mxu0 %vm3022_vm1, %v3021_v11 }
 0x11f   : > { %2715 = vmatmul.mubr.msk.f32.vlgmr.msra.gmra.mrb[24].mxu1 %vm218_vm0, %v3104_v13  ;;  %2732 = vmatmul.mubr.msk.f32.gmra.mrb[32].mxu0 %vm218_vm0, %v3128_v18 }
 0x120   : > { %2735 = vmatpush3.msra.mxu1 %v2634_v23  ;;  %2717 = vmatprep.mubr.msk.f32.mxu1 %vm3022_vm1, %v3021_v11 }
 0x123   : > { %2718 = vmatmul.mubr.msk.f32.gmra.mrb[26].mxu1 %vm218_vm0, %v3114_v16 }
 0x124   : > { %2720 = vmatprep.mubr.msk.f32.mxu1 %vm3022_vm1, %v3021_v11 }
 0x127   : > { %2721 = vmatmul.mubr.msk.f32.gmra.mrb[28].mxu1 %vm218_vm0, %v3128_v18 }
 0x128   : > { %2736 = vmatprep.mubr.msk.f32.mxu1 %vm3022_vm1, %v3021_v11 }
 0x12b   : > { %2737 = vmatmul.mubr.msk.f32.vlgmr.msra.gmra.mrb[30].mxu1 %vm218_vm0, %v3104_v13 }
 0x12c   : > { %2739 = vmatprep.mubr.msk.f32.mxu1 %vm3022_vm1, %v3021_v11 }
 0x12f   : > { %2740 = vmatmul.mubr.msk.f32.gmra.mrb[32].mxu1 %vm218_vm0, %v3114_v16 }
 0x130   : > { %2742 = vmatprep.mubr.msk.f32.mxu1 %vm3022_vm1, %v3021_v11 }
 0x133   : > { %2743 = vmatmul.mubr.msk.f32.gmra.mrb[34].mxu1 %vm218_vm0, %v3128_v18 }
 0x1c2   : > { %v439_v25 = vpop.f32.mrb[0].mxu1 }
 0x1c3   : > { %v2639_v26 = vpop.f32.mrb[1].mxu1  ;;  %v613_v42 = vmul.f32 0.33333334, %v439_v25 }
 0x1c6   : > { %v444_v28 = vpop.f32.mrb[2].mxu1  ;;  %v3240_v29 = vpop.f32.mrb[10].mxu0 }
 0x1c7   : > { %v2642_v30 = vpop.f32.mrb[3].mxu1  ;;  %v2661_v31 = vpop.f32.mrb[11].mxu0  ;;  %v911_v33 = vsel %vm622_vm2, %v3240_v29, inf  ;;  %v3249_v43 = vmul.f32 0.33333334, %v3240_v29 }
 0x1c8   : > { %v3252_v44 = vmul.f32 0.6666667, %v3240_v29  ;;  %v614_v45 = vmul.f32 0.33333334, %v444_v28 }
 0x1ca   : > { %v449_v34 = vpop.f32.mrb[4].mxu1  ;;  %v3244_v35 = vpop.f32.mrb[12].mxu0 }
 0x1cb   : > { %v2645_v36 = vpop.f32.mrb[5].mxu1  ;;  %v912_v37 = vsel %vm622_vm2, %v3244_v35, inf  ;;  %v2664_v39 = vpop.f32.mrb[13].mxu0  ;;  %v615_v46 = vmul.f32 0.33333334, %v449_v34 }
 0x1cc   : > { %v914_v38 = vmin.f32 %v911_v33, %v912_v37  ;;  %v3263_v52 = vmul.f32 0.33333334, %v3244_v35  ;;  %v3266_v53 = vmul.f32 0.6666667, %v3244_v35 }
 0x1ce   : > { %v3254_v47 = vpop.f32.mrb[6].mxu1  ;;  %v3256_v48 = vpop.f32.mrb[14].mxu0 }
 0x1cf   : > { %v616_v49 = vmul.f32 0.6666667, %v3254_v47  ;;  %v854_v50 = vmul.f32 0.33333334, %v3254_v47  ;;  %v913_v51 = vsel %vm622_vm2, %v3256_v48, inf  ;;  %v2650_v56 = vpop.f32.mrb[7].mxu1 }
 0x1d0   : > { %v915_v55 = vmin.f32 %v914_v38, %v913_v51  ;;  %v2667_v57 = vpop.f32.mrb[15].mxu0  ;;  %v3279_v61 = vmul.f32 0.33333334, %v3256_v48  ;;  %v3286_v0 = vmul.f32 0.6666667, %v3256_v48  ;;  %v672_v5 = vsel %vm622_vm2, %v3254_v47, inf }
 0x1d1   : > { %v3270_v58 = vadd.f32 %v616_v49, %v613_v42  ;;  %v3273_v59 = vadd.f32 %v3249_v43, %v616_v49  ;;  %v3276_v60 = vadd.f32 %v3252_v44, %v854_v50 }
 0x1d2   : > { %v916_v1 = vrot.slane %v915_v55, 4  ;;  %v3288_v2 = vpop.f32.mrb[8].mxu1  ;;  %v3290_v3 = vpop.f32.mrb[16].mxu0 }
 0x1d3   : > { %v623_v4 = vsel %vm622_vm2, %v3270_v58, inf  ;;  %v726_v6 = vsel %vm622_vm2, %v3273_v59, inf  ;;  %v617_v7 = vmul.f32 0.6666667, %v3288_v2  ;;  %v2653_v8 = vpop.f32.mrb[9].mxu1  ;;  %v3301_v9 = vsel %vm622_vm2, %v3276_v60, inf }
 0x1d4   : > { %v917_v10 = vmin.f32 %v915_v55, %v916_v1  ;;  %v673_v11 = vsel %vm622_vm2, %v3288_v2, inf  ;;  %v855_v12 = vmul.f32 0.33333334, %v3288_v2  ;;  %v2683_v13 = vpop.f32.mrb[17].mxu0  ;;  %v3312_v17 = vmul.f32 0.33333334, %v3290_v3 }
 0x1d5   : > { %v3306_v14 = vadd.f32 %v617_v7, %v614_v45  ;;  %v675_v15 = vmin.f32 %v672_v5, %v673_v11  ;;  %v3309_v16 = vadd.f32 %v3263_v52, %v617_v7  ;;  %v3320_v21 = vmul.f32 0.6666667, %v3290_v3 }
 0x1d6   : > { %4234 = vst [vmem:[#allocation2_spill] sm:$0xff] %v3312_v17  ;;  %v918_v18 = vrot.slane %v917_v10, 2  ;;  %v3315_v19 = vadd.f32 %v3266_v53, %v855_v12  ;;  %v3317_v20 = vpop.f32.mrb[10].mxu1  ;;  %v3324_v22 = vsel %vm622_vm2, %v3290_v3, inf  ;;  %v3326_v23 = vpop.f32.mrb[18].mxu0 }
 0x1d7   : > { %4235 = vst [vmem:[#allocation3_spill] sm:$0xff] %v3320_v21  ;;  %v624_v24 = vsel %vm622_vm2, %v3306_v14, inf  ;;  %v727_v25 = vsel %vm622_vm2, %v3309_v16, inf  ;;  %v618_v26 = vmul.f32 0.6666667, %v3317_v20  ;;  %v674_v27 = vsel %vm622_vm2, %v3317_v20, inf }
 0x1d8   : > { %v2656_v28 = vpop.f32.mrb[11].mxu1  ;;  %v919_v30 = vmin.f32 %v917_v10, %v918_v18  ;;  %v626_v31 = vmin.f32 %v623_v4, %v624_v24  ;;  %v729_v32 = vmin.f32 %v726_v6, %v727_v25  ;;  %v864_v33 = vsel %vm622_vm2, %v3315_v19, inf  ;;  %v2686_v34 = vpop.f32.mrb[19].mxu0 }
 0x1d9   : > { %v866_v36 = vmin.f32 %v3301_v9, %v864_v33  ;;  %v3338_v37 = vadd.f32 %v618_v26, %v615_v46  ;;  %v676_v38 = vmin.f32 %v675_v15, %v674_v27  ;;  %v3341_v39 = vadd.f32 %v3279_v61, %v618_v26 }
 0x1da   : > { %v920_v40 = vrot.slane %v919_v30, 1  ;;  %v856_v41 = vmul.f32 0.33333334, %v3317_v20  ;;  %v3345_v42 = vmul.f32 0.33333334, %v3326_v23  ;;  %v3349_v45 = vsel %vm622_vm2, %v3326_v23, inf }
 0x1db   : > { %v625_v49 = vsel %vm622_vm2, %v3338_v37, inf  ;;  %v677_v50 = vrot.slane %v676_v38, 4  ;;  %v728_v46 = vsel %vm622_vm2, %v3341_v39, inf  ;;  %v3356_v51 = vmul.f32 0.6666667, %v3326_v23  ;;  %v3358_v55 = vpop.f32.mrb[12].mxu1 }
 0x1dc   : > { %v921_v56 = vmin.f32 %v919_v30, %v920_v40  ;;  %v627_v57 = vmin.f32 %v626_v31, %v625_v49  ;;  %v730_v1 = vmin.f32 %v729_v32, %v728_v46  ;;  %v3361_v4 = vadd.f32 %v3286_v0, %v856_v41  ;;  %v3363_v5 = vpop.f32.mrb[20].mxu0  ;;  %v2672_v6 = vpop.f32.mrb[13].mxu1 }
 0x1dd   : > { %v678_v7 = vmin.f32 %v676_v38, %v677_v50  ;;  %v959_v9 = vmul.f32 0.33333334, %v3358_v55  ;;  %v1093_v10 = vmul.f32 0.6666667, %v3358_v55  ;;  %v2689_v11 = vpop.f32.mrb[21].mxu0 }
 0x1de   : > { %v922_v12 = vsub.f32 %v921_v56, %v3240_v29  ;;  %v923_v13 = vsub.f32 %v921_v56, %v3244_v35  ;;  %v924_v15 = vsub.f32 %v921_v56, %v3256_v48  ;;  %v628_v18 = vrot.slane %v627_v57, 4  ;;  %v3372_v24 = vpop.f32.mrb[14].mxu1  ;;  %v3374_v25 = vpop.f32.mrb[22].mxu0 }
 0x1df   : > { %v679_v26 = vrot.slane %v678_v7, 2  ;;  %v731_v27 = vrot.slane %v730_v1, 4  ;;  %v865_v28 = vsel %vm622_vm2, %v3361_v4, inf  ;;  %v3379_v30 = vadd.f32 %v959_v9, %v3252_v44  ;;  %v2675_v31 = vpop.f32.mrb[15].mxu1  ;;  %v2705_v32 = vpop.f32.mrb[23].mxu0 }
 0x1e0   : > { %v925_v29 = vmul.f32 1.442695, %v922_v12  ;;  %v927_v33 = vmul.f32 1.442695, %v923_v13  ;;  %v929_v35 = vmul.f32 1.442695, %v924_v15  ;;  %v629_v34 = vmin.f32 %v627_v57, %v628_v18 }
 0x1e1   : > { %v680_v48 = vmin.f32 %v678_v7, %v679_v26  ;;  %v732_v38 = vmin.f32 %v730_v1, %v731_v27  ;;  %v867_v40 = vmin.f32 %v866_v36, %v865_v28  ;;  %v3383_v41 = vsel %vm622_vm2, %v3379_v30, inf }
 0x1e2   : > { %2789 = vpow2.f32 %v925_v29  ;;  %v630_v49 = vrot.slane %v629_v34, 2  ;;  %v3386_v50 = vadd.f32 %v1093_v10, %v3249_v43  ;;  %v3390_v44 = vsel %vm622_vm2, %v3358_v55, inf  ;;  %v3392_v46 = vpop.f32.mrb[16].mxu1  ;;  %v3394_v56 = vpop.f32.mrb[24].mxu0 }
 0x1e3   : > { %2791 = vpow2.f32 %v927_v33  ;;  %v681_v57 = vrot.slane %v680_v48, 1  ;;  %v733_v36 = vrot.slane %v732_v38, 2  ;;  %v868_v1 = vrot.slane %v867_v40, 4  ;;  %v2678_v6 = vpop.f32.mrb[17].mxu1  ;;  %v2708_v7 = vpop.f32.mrb[25].mxu0 }
 0x1e4   : > { %2793 = vpow2.f32 %v929_v35  ;;  %v631_v11 = vmin.f32 %v629_v34, %v630_v49  ;;  %v3398_v43 = vsel %vm622_vm2, %v3386_v50, inf  ;;  %v3401_v12 = vadd.f32 %v3312_v17, %v1093_v10 }
 0x1e5   : > { %v682_v13 = vmin.f32 %v680_v48, %v681_v57  ;;  %v734_v15 = vmin.f32 %v732_v38, %v733_v36  ;;  %v869_v18 = vmin.f32 %v867_v40, %v868_v1  ;;  %v3404_v26 = vadd.f32 %v3320_v21, %v959_v9 }
 0x1e6   : > { %v632_v27 = vrot.slane %v631_v11, 1  ;;  %v3408_v28 = vsel %vm622_vm2, %v3401_v12, inf  ;;  %v3411_v31 = vmul.f32 0.33333334, %v3363_v5  ;;  %v3414_v32 = vmul.f32 0.6666667, %v3363_v5 }
 0x1e7   : > { %v683_v10 = vsub.f32 %v682_v13, %v3254_v47  ;;  %v684_v29 = vsub.f32 %v682_v13, %v3288_v2  ;;  %v685_v33 = vsub.f32 %v682_v13, %v3317_v20  ;;  %v735_v35 = vrot.slane %v734_v15, 1  ;;  %v3419_v9 = vpop.f32.mrb[18].mxu1  ;;  %v3421_v34 = vpop.f32.mrb[26].mxu0 }
 0x1e8   : > { %4236 = vst [vmem:[#allocation4_spill] sm:$0xff] %v3421_v34  ;;  %v633_v48 = vmin.f32 %v631_v11, %v632_v27  ;;  %v870_v38 = vrot.slane %v869_v18, 2  ;;  %v3425_v40 = vsel %vm622_vm2, %v3404_v26, inf  ;;  %v1385_v49 = vsel %vm622_vm2, %v3363_v5, inf  ;;  %v2694_v57 = vpop.f32.mrb[19].mxu1  ;;  %v2711_v47 = vpop.f32.mrb[27].mxu0 }
 0x1e9   : > { %v686_v36 = vmul.f32 1.442695, %v683_v10  ;;  %v688_v2 = vmul.f32 1.442695, %v684_v29  ;;  %v690_v1 = vmul.f32 1.442695, %v685_v33  ;;  %v736_v20 = vmin.f32 %v734_v15, %v735_v35 }
 0x1ea   : > { %v634_v6 = vsub.f32 %v633_v48, %v3270_v58  ;;  %v635_v7 = vsub.f32 %v633_v48, %v3306_v14  ;;  %v636_v11 = vsub.f32 %v633_v48, %v3338_v37  ;;  %v871_v13 = vmin.f32 %v869_v18, %v870_v38  ;;  %v3432_v27 = vpop.f32.mrb[20].mxu1 }
 0x1eb   : > { %4237 = vst [vmem:[#allocation5_spill] sm:$0xff] %v3432_v27  ;;  %2795 = vpow2.f32 %v686_v36  ;;  %v737_v8 = vsub.f32 %v736_v20, %v3273_v59  ;;  %v738_v34 = vsub.f32 %v736_v20, %v3309_v16  ;;  %v739_v57 = vsub.f32 %v736_v20, %v3341_v39  ;;  %v2697_v10 = vpop.f32.mrb[21].mxu1 }
 0x1ec   : > { %v2790_v29 = vpop.eup %2789  ;;  %v637_v33 = vmul.f32 1.442695, %v634_v6  ;;  %v639_v15 = vmul.f32 1.442695, %v635_v7  ;;  %v641_v35 = vmul.f32 1.442695, %v636_v11  ;;  %2797 = vpow2.f32 %v688_v2 }
 0x1ed   : > { %v2792_v58 = vpop.eup %2791  ;;  %v931_v14 = vsel %vm622_vm2, %v2790_v29, 0.0  ;;  %v942_v37 = vmul.f32 %v2790_v29, %v3268_v54  ;;  %2799 = vpow2.f32 %v690_v1  ;;  %v740_v18 = vmul.f32 1.442695, %v737_v8 }
 0x1ee   : > { %v2794_v48 = vpop.eup %2793  ;;  %v932_v59 = vsel %vm622_vm2, %v2792_v58, 0.0  ;;  %v943_v16 = vmul.f32 %v2792_v58, %v3281_v62  ;;  %2801 = vpow2.f32 %v637_v33  ;;  %v742_v39 = vmul.f32 1.442695, %v738_v34  ;;  %v3441_v38 = vpop.f32.mrb[22].mxu1 }
 0x1ef   : > { %4238 = vst [vmem:[#allocation6_spill] sm:$0xff] %v3441_v38  ;;  %v933_v47 = vadd.f32 %v932_v59, %v931_v14  ;;  %v934_v36 = vsel %vm622_vm2, %v2794_v48, 0.0  ;;  %v944_v2 = vmul.f32 %v2794_v48, %v3283_v63  ;;  %v945_v20 = vsel %vm622_vm2, %v942_v37, 0.0  ;;  %v2700_v6 = vpop.f32.mrb[23].mxu1 }
 0x1f0   : > { %v946_v1 = vsel %vm622_vm2, %v943_v16, 0.0  ;;  %2803 = vpow2.f32 %v639_v15  ;;  %v744_v8 = vmul.f32 1.442695, %v739_v57  ;;  %v872_v7 = vrot.slane %v871_v13, 1 }
 0x1f1   : > { %v935_v11 = vadd.f32 %v934_v36, %v933_v47  ;;  %v947_v10 = vadd.f32 %v946_v1, %v945_v20  ;;  %v948_v29 = vsel %vm622_vm2, %v944_v2, 0.0  ;;  %2805 = vpow2.f32 %v641_v35 }
 0x1f2   : > { %2807 = vpow2.f32 %v740_v18  ;;  %v3448_v34 = vmin.f32 %v871_v13, %v872_v7  ;;  %v4239_v33 = vmin.f32 %v3324_v22, %v3349_v45  ;;  %v3456_v14 = vmul.f32 0.33333334, %v3372_v24 }
 0x1f3   : > { %v936_v15 = vrot.slane %v935_v11, 4  ;;  %v949_v57 = vadd.f32 %v948_v29, %v947_v10  ;;  %2809 = vpow2.f32 %v742_v39  ;;  %v3459_v37 = vmul.f32 0.6666667, %v3372_v24 }
 0x1f4   : > { %v3453_v58 = vmin.f32 %v4239_v33, %v1385_v49  ;;  %2811 = vpow2.f32 %v744_v8  ;;  %v874_v13 = vsub.f32 %v3448_v34, %v3276_v60  ;;  %v875_v35 = vsub.f32 %v3448_v34, %v3315_v19 }
 0x1f5   : > { %v2796_v45 = vpop.eup %2795  ;;  %v937_v49 = vadd.f32 %v936_v15, %v935_v11  ;;  %v950_v18 = vrot.slane %v949_v57, 4  ;;  %v3470_v59 = vadd.f32 %v3456_v14, %v3266_v53 }
 0x1f6   : > { %v2798_v16 = vpop.eup %2797  ;;  %v692_v39 = vsel %vm622_vm2, %v2796_v45, 0.0  ;;  %v703_v60 = vmul.f32 %v2796_v45, %v3268_v54  ;;  %v877_v47 = vmul.f32 1.442695, %v874_v13  ;;  %v3475_v19 = vmul.f32 1.442695, %v875_v35 }
 0x1f7   : > { %v2800_v36 = vpop.eup %2799  ;;  %v938_v2 = vrot.slane %v937_v49, 2  ;;  %v951_v20 = vadd.f32 %v950_v18, %v949_v57  ;;  %v693_v6 = vsel %vm622_vm2, %v2798_v16, 0.0  ;;  %v704_v1 = vmul.f32 %v2798_v16, %v3281_v62 }
 0x1f8   : > { %v2802_v8 = vpop.eup %2801  ;;  %v694_v53 = vadd.f32 %v693_v6, %v692_v39  ;;  %v695_v7 = vsel %vm622_vm2, %v2800_v36, 0.0  ;;  %v705_v11 = vmul.f32 %v2800_v36, %v3283_v63  ;;  %v706_v10 = vsel %vm622_vm2, %v703_v60, 0.0 }
 0x1f9   : > { %v939_v29 = vadd.f32 %v938_v2, %v937_v49  ;;  %v952_v33 = vrot.slane %v951_v20, 2  ;;  %v643_v15 = vsel %vm622_vm2, %v2802_v8, 0.0  ;;  %v654_v13 = vmul.f32 %v2802_v8, %v3268_v54 }
 0x1fa   : > { %v2804_v35 = vpop.eup %2803  ;;  %v696_v57 = vadd.f32 %v695_v7, %v694_v53  ;;  %v707_v45 = vsel %vm622_vm2, %v704_v1, 0.0  ;;  %v709_v18 = vsel %vm622_vm2, %v705_v11, 0.0  ;;  %2813 = vpow2.f32 %v877_v47 }
 0x1fb   : > { %v2806_v16 = vpop.eup %2805  ;;  %v940_v49 = vrot.slane %v939_v29, 1  ;;  %v953_v39 = vadd.f32 %v952_v33, %v951_v20  ;;  %v644_v60 = vsel %vm622_vm2, %v2804_v35, 0.0  ;;  %v655_v36 = vmul.f32 %v2804_v35, %v3281_v62 }
 0x1fc   : > { %v2808_v2 = vpop.eup %2807  ;;  %v645_v6 = vadd.f32 %v644_v60, %v643_v15  ;;  %v646_v8 = vsel %vm622_vm2, %v2806_v16, 0.0  ;;  %v656_v53 = vmul.f32 %v2806_v16, %v3283_v63  ;;  %v657_v1 = vsel %vm622_vm2, %v654_v13, 0.0 }
 0x1fd   : > { %v2810_v7 = vpop.eup %2809  ;;  %v941_v47 = vadd.f32 %v940_v49, %v939_v29  ;;  %v954_v11 = vrot.slane %v953_v39, 1  ;;  %v658_v48 = vsel %vm622_vm2, %v655_v36, 0.0  ;;  %v697_v22 = vrot.slane %v696_v57, 4 }
 0x1fe   : > { %v2812_v20 = vpop.eup %2811  ;;  %v647_v33 = vadd.f32 %v646_v8, %v645_v6  ;;  %v659_v35 = vadd.f32 %v658_v48, %v657_v1  ;;  %v660_v15 = vsel %vm622_vm2, %v656_v53, 0.0  ;;  %v708_v60 = vadd.f32 %v707_v45, %v706_v10 }
 0x1ff   : > { %v955_v38 = vadd.f32 %v954_v11, %v953_v39  ;;  %2815 = vrcp.f32 %v941_v47  ;;  %v698_v16 = vadd.f32 %v697_v22, %v696_v57  ;;  %v746_v13 = vsel %vm622_vm2, %v2808_v2, 0.0 }
 0x200   : > { %v648_v29 = vrot.slane %v647_v33, 4  ;;  %v661_v49 = vadd.f32 %v660_v15, %v659_v35  ;;  %v710_v27 = vadd.f32 %v709_v18, %v708_v60  ;;  %v747_v36 = vsel %vm622_vm2, %v2810_v7, 0.0 }
 0x201   : > { %v699_v17 = vrot.slane %v698_v16, 2  ;;  %v748_v21 = vadd.f32 %v747_v36, %v746_v13  ;;  %v749_v6 = vsel %vm622_vm2, %v2812_v20, 0.0  ;;  %v757_v48 = vmul.f32 %v2808_v2, %v3268_v54 }
 0x202   : > { %v649_v8 = vadd.f32 %v648_v29, %v647_v33  ;;  %v662_v10 = vrot.slane %v661_v49, 4  ;;  %v711_v45 = vrot.slane %v710_v27, 4  ;;  %v758_v39 = vmul.f32 %v2810_v7, %v3281_v62 }
 0x203   : > { %v700_v22 = vadd.f32 %v699_v17, %v698_v16  ;;  %v750_v57 = vadd.f32 %v749_v6, %v748_v21  ;;  %v759_v18 = vmul.f32 %v2812_v20, %v3283_v63  ;;  %v760_v53 = vsel %vm622_vm2, %v757_v48, 0.0  ;;  %v3517_v21 = vpop.f32.mrb[28].mxu0 }
 0x204   : > { %v2814_v1 = vpop.eup %2813  ;;  %v650_v47 = vrot.slane %v649_v8, 2  ;;  %v663_v11 = vadd.f32 %v662_v10, %v661_v49  ;;  %v712_v35 = vadd.f32 %v711_v45, %v710_v27  ;;  %v761_v2 = vsel %vm622_vm2, %v758_v39, 0.0  ;;  %v2727_v6 = vpop.f32.mrb[29].mxu0 }
 0x205   : > { %v701_v33 = vrot.slane %v700_v22, 1  ;;  %v751_v15 = vrot.slane %v750_v57, 4  ;;  %v762_v60 = vadd.f32 %v761_v2, %v760_v53  ;;  %v763_v7 = vsel %vm622_vm2, %v759_v18, 0.0 }
 0x206   : > { %v651_v13 = vadd.f32 %v650_v47, %v649_v8  ;;  %v664_v29 = vrot.slane %v663_v11, 2  ;;  %v713_v17 = vrot.slane %v712_v35, 2  ;;  %2817 = vpow2.f32 %v3475_v19  ;;  %v3523_v8 = vpop.f32.mrb[30].mxu0 }
 0x207   : > { %v702_v20 = vadd.f32 %v701_v33, %v700_v22  ;;  %v752_v16 = vadd.f32 %v751_v15, %v750_v57  ;;  %v764_v36 = vadd.f32 %v763_v7, %v762_v60  ;;  %v4241_v27 = vsub.f32 %v3448_v34, %v3361_v4  ;;  %v2730_v34 = vpop.f32.mrb[31].mxu0 }
 0x208   : > { %v652_v48 = vrot.slane %v651_v13, 1  ;;  %v665_v10 = vadd.f32 %v664_v29, %v663_v11  ;;  %v714_v45 = vadd.f32 %v713_v17, %v712_v35  ;;  %v883_v39 = vsel %vm622_vm2, %v2814_v1, 0.0 }
 0x209   : > { %v881_v49 = vmul.f32 1.442695, %v4241_v27  ;;  %v2816_v18 = vpop.eup %2815  ;;  %2819 = vrcp.f32 %v702_v20  ;;  %v753_v19 = vrot.slane %v752_v16, 2  ;;  %v765_v22 = vrot.slane %v764_v36, 4 }
 0x20a   : > { %v894_v4 = vmul.f32 %v2814_v1, %v3268_v54  ;;  %v957_v57 = vmul.f32 %v2816_v18, %v955_v38  ;;  %v653_v53 = vadd.f32 %v652_v48, %v651_v13  ;;  %v666_v47 = vrot.slane %v665_v10, 1 }
 0x20b   : > { %v715_v11 = vrot.slane %v714_v45, 1  ;;  %v754_v35 = vadd.f32 %v753_v19, %v752_v16  ;;  %v766_v2 = vadd.f32 %v765_v22, %v764_v36  ;;  %2821 = vpow2.f32 %v881_v49 }
 0x20c   : > { %v897_v33 = vsel %vm622_vm2, %v894_v4, 0.0  ;;  %958 = vst.msk [vmem:[%s3528_s13 + $0x4] sm:$0x1] %vm670_vm3, %v957_v57  ;;  %v667_v15 = vadd.f32 %v666_v47, %v665_v10  ;;  %2823 = vrcp.f32 %v653_v53  ;;  %v4242_v7 = vrot.slane %v3453_v58, 4 }
 0x20d   : > { %v716_v60 = vadd.f32 %v715_v11, %v714_v45  ;;  %v755_v1 = vrot.slane %v754_v35, 1  ;;  %v767_v17 = vrot.slane %v766_v2, 2  ;;  %v966_v38 = vsel %vm622_vm2, %v3470_v59, inf }
 0x20e   : > { %v1389_v29 = vmin.f32 %v3453_v58, %v4242_v7  ;;  %v3541_v13 = vadd.f32 %v3459_v37, %v3263_v52  ;;  %v968_v16 = vmin.f32 %v3383_v41, %v966_v38  ;;  %v1148_v36 = vsel %vm622_vm2, %v3372_v24, inf }
 0x20f   : > { %v3548_v27 = vadd.f32 %v3345_v42, %v3459_v37  ;;  %v756_v58 = vadd.f32 %v755_v1, %v754_v35  ;;  %v768_v49 = vadd.f32 %v767_v17, %v766_v2  ;;  %v1150_v48 = vmin.f32 %v3390_v44, %v1148_v36 }
 0x210   : > { %v1390_v20 = vrot.slane %v1389_v29, 2  ;;  %v3552_v6 = vsel %vm622_vm2, %v3541_v13, inf  ;;  %v2818_v52 = vpop.eup %2817  ;;  %v3563_v37 = vadd.f32 %v3356_v51, %v3456_v14  ;;  %v961_v11 = vmul.f32 0.33333334, %v3392_v46 }
 0x211   : > { %v1102_v41 = vmin.f32 %v3398_v43, %v3552_v6  ;;  %v3559_v45 = vsel %vm622_vm2, %v3548_v27, inf  ;;  %v769_v18 = vrot.slane %v768_v49, 1  ;;  %2825 = vrcp.f32 %v756_v58 }
 0x212   : > { %v1391_v10 = vmin.f32 %v1389_v29, %v1390_v20  ;;  %v884_v19 = vsel %vm622_vm2, %v2818_v52, 0.0  ;;  %v895_v22 = vmul.f32 %v2818_v52, %v3281_v62  ;;  %v1204_v34 = vmin.f32 %v3408_v28, %v3559_v45 }
 0x213   : > { %v885_v44 = vadd.f32 %v884_v19, %v883_v39  ;;  %v3571_v43 = vsel %vm622_vm2, %v3563_v37, inf  ;;  %v2820_v57 = vpop.eup %2819  ;;  %v770_v53 = vadd.f32 %v769_v18, %v768_v49  ;;  %v1095_v7 = vmul.f32 0.6666667, %v3392_v46 }
 0x214   : > { %v1392_v4 = vrot.slane %v1391_v10, 1  ;;  %v898_v14 = vsel %vm622_vm2, %v895_v22, 0.0  ;;  %v1338_v47 = vmin.f32 %v3425_v40, %v3571_v43  ;;  %v718_v35 = vmul.f32 %v2820_v57, %v716_v60  ;;  %v3589_v40 = vpop.f32.mrb[24].mxu1 }
 0x215   : > { %v899_v39 = vadd.f32 %v898_v14, %v897_v33  ;;  %v2822_v28 = vpop.eup %2821  ;;  %v3579_v29 = vadd.f32 %v961_v11, %v3286_v0  ;;  %v1149_v1 = vsel %vm622_vm2, %v3392_v46, inf  ;;  %v3584_v17 = vadd.f32 %v3414_v32, %v961_v11  ;;  %v2716_v58 = vpop.f32.mrb[25].mxu1 }
 0x216   : > { %v1393_v2 = vmin.f32 %v1391_v10, %v1392_v4  ;;  %v3587_v38 = vmul.f32 0.33333334, %v3374_v25  ;;  %v2824_v33 = vpop.eup %2823  ;;  %719 = vst.msk [vmem:[%s3528_s13 + $0x1] sm:$0x1] %vm670_vm3, %v718_v35  ;;  %v886_v60 = vsel %vm622_vm2, %v2822_v28, 0.0  ;;  %v896_v0 = vmul.f32 %v2822_v28, %v3283_v63 }
 0x217   : > { %v669_v49 = vmul.f32 %v2824_v33, %v667_v15  ;;  %v887_v6 = vadd.f32 %v886_v60, %v885_v44  ;;  %v967_v10 = vsel %vm622_vm2, %v3579_v29, inf  ;;  %v3606_v15 = vpop.f32.mrb[32].mxu0  ;;  %v1151_v44 = vmin.f32 %v1150_v48, %v1149_v1 }
 0x218   : > { %v1394_v20 = vsub.f32 %v1393_v2, %v3290_v3  ;;  %v1395_v36 = vsub.f32 %v1393_v2, %v3326_v23  ;;  %v1396_v52 = vsub.f32 %v1393_v2, %v3363_v5  ;;  %v900_v45 = vsel %vm622_vm2, %v896_v0, 0.0  ;;  %v2733_v14 = vpop.f32.mrb[33].mxu0 }
 0x219   : > { %v969_v22 = vmin.f32 %v968_v16, %v967_v10  ;;  %671 = vst.msk [vmem:[%s3528_s13] sm:$0x1] %vm670_vm3, %v669_v49  ;;  %v888_v4 = vrot.slane %v887_v6, 4  ;;  %v901_v43 = vadd.f32 %v900_v45, %v899_v39  ;;  %v3604_v23 = vadd.f32 %v1095_v7, %v3279_v61 }
 0x21a   : > { %v1397_v18 = vmul.f32 1.442695, %v1394_v20  ;;  %v1399_v19 = vmul.f32 1.442695, %v1395_v36  ;;  %v1401_v3 = vmul.f32 1.442695, %v1396_v52  ;;  %v3609_v57 = vadd.f32 %v3411_v31, %v1095_v7 }
 0x21b   : > { %v970_v5 = vrot.slane %v969_v22, 4  ;;  %v2826_v11 = vpop.eup %2825  ;;  %v889_v16 = vadd.f32 %v888_v4, %v887_v6  ;;  %v902_v35 = vrot.slane %v901_v43, 4  ;;  %v1101_v39 = vsel %vm622_vm2, %v3604_v23, inf }
 0x21c   : > { %2827 = vpow2.f32 %v1397_v18  ;;  %v772_v2 = vmul.f32 %v2826_v11, %v770_v53  ;;  %v1103_v28 = vmin.f32 %v1102_v41, %v1101_v39  ;;  %v1152_v0 = vrot.slane %v1151_v44, 4 }
 0x21d   : > { %2829 = vpow2.f32 %v1399_v19  ;;  %v971_v61 = vmin.f32 %v969_v22, %v970_v5  ;;  %v890_v33 = vrot.slane %v889_v16, 2  ;;  %v903_v60 = vadd.f32 %v902_v35, %v901_v43 }
 0x21e   : > { %2831 = vpow2.f32 %v1401_v3  ;;  %v1203_v48 = vsel %vm622_vm2, %v3609_v57, inf  ;;  %773 = vst.msk [vmem:[%s3528_s13 + $0x2] sm:$0x1] %vm670_vm3, %v772_v2  ;;  %v1104_v1 = vrot.slane %v1103_v28, 4  ;;  %v1337_v36 = vsel %vm622_vm2, %v3584_v17, inf }
 0x21f   : > { %v972_v7 = vrot.slane %v971_v61, 2  ;;  %v1205_v20 = vmin.f32 %v1204_v34, %v1203_v48  ;;  %v891_v58 = vadd.f32 %v890_v33, %v889_v16  ;;  %v904_v49 = vrot.slane %v903_v60, 2  ;;  %v3633_v48 = vpop.f32.mrb[26].mxu1 }
 0x220   : > { %v1153_v53 = vmin.f32 %v1151_v44, %v1152_v0  ;;  %v1339_v6 = vmin.f32 %v1338_v47, %v1337_v36  ;;  %v1105_v41 = vmin.f32 %v1103_v28, %v1104_v1  ;;  %v3620_v45 = vmul.f32 0.6666667, %v3374_v25 }
 0x221   : > { %v973_v52 = vmin.f32 %v971_v61, %v972_v7  ;;  %v1206_v10 = vrot.slane %v1205_v20, 4  ;;  %v892_v18 = vrot.slane %v891_v58, 1  ;;  %v905_v19 = vadd.f32 %v904_v49, %v903_v60  ;;  %v2719_v49 = vpop.f32.mrb[27].mxu1 }
 0x222   : > { %v1154_v22 = vrot.slane %v1153_v53, 2  ;;  %v1340_v4 = vrot.slane %v1339_v6, 4  ;;  %v1106_v3 = vrot.slane %v1105_v41, 2  ;;  %v3624_v5 = vsel %vm622_vm2, %v3374_v25, inf }
 0x223   : > { %v974_v43 = vrot.slane %v973_v52, 1  ;;  %v1207_v34 = vmin.f32 %v1205_v20, %v1206_v10  ;;  %v893_v14 = vadd.f32 %v892_v18, %v891_v58  ;;  %v906_v44 = vrot.slane %v905_v19, 1 }
 0x224   : > { %v1155_v47 = vmin.f32 %v1153_v53, %v1154_v22  ;;  %v3626_v11 = vmin.f32 %v1339_v6, %v1340_v4  ;;  %v1107_v39 = vmin.f32 %v1105_v41, %v1106_v3  ;;  %v3629_v61 = vmul.f32 0.33333334, %v3394_v56 }
 0x225   : > { %v975_v35 = vmin.f32 %v973_v52, %v974_v43  ;;  %v1208_v2 = vrot.slane %v1207_v34, 2  ;;  %v907_v33 = vadd.f32 %v906_v44, %v905_v19  ;;  %2833 = vrcp.f32 %v893_v14 }
 0x226   : > { %v2828_v16 = vpop.eup %2827  ;;  %v1108_v3 = vrot.slane %v1107_v39, 1  ;;  %v1156_v44 = vrot.slane %v1155_v47, 1 }
 0x227   : > { %v2830_v28 = vpop.eup %2829  ;;  %v1403_v60 = vsel %vm622_vm2, %v2828_v16, 0.0  ;;  %v1414_v0 = vmul.f32 %v2828_v16, %v3268_v54  ;;  %v976_v36 = vsub.f32 %v975_v35, %v3379_v30  ;;  %v977_v58 = vsub.f32 %v975_v35, %v3470_v59  ;;  %v3645_v59 = vpop.f32.mrb[28].mxu1 }
 0x228   : > { %v2832_v7 = vpop.eup %2831  ;;  %v1404_v1 = vsel %vm622_vm2, %v2830_v28, 0.0  ;;  %v1415_v20 = vmul.f32 %v2830_v28, %v3281_v62  ;;  %v978_v18 = vsub.f32 %v975_v35, %v3579_v29  ;;  %v1209_v16 = vmin.f32 %v1207_v34, %v1208_v2  ;;  %v2722_v28 = vpop.f32.mrb[29].mxu1 }
 0x229   : > { %v1405_v53 = vadd.f32 %v1404_v1, %v1403_v60  ;;  %v1406_v6 = vsel %vm622_vm2, %v2832_v7, 0.0  ;;  %v1416_v52 = vmul.f32 %v2832_v7, %v3283_v63  ;;  %v1417_v41 = vsel %vm622_vm2, %v1414_v0, 0.0 }
 0x22a   : > { %v1418_v10 = vsel %vm622_vm2, %v1415_v20, 0.0  ;;  %v979_v19 = vmul.f32 1.442695, %v976_v36  ;;  %v981_v22 = vmul.f32 1.442695, %v977_v58  ;;  %v1109_v7 = vmin.f32 %v1107_v39, %v1108_v3 }
 0x22b   : > { %v1407_v4 = vadd.f32 %v1406_v6, %v1405_v53  ;;  %v1419_v43 = vadd.f32 %v1418_v10, %v1417_v41  ;;  %v1420_v30 = vsel %vm622_vm2, %v1416_v52, 0.0  ;;  %v983_v14 = vmul.f32 1.442695, %v978_v18 }
 0x22c   : > { %2835 = vpow2.f32 %v979_v19  ;;  %v1157_v29 = vmin.f32 %v1155_v47, %v1156_v44  ;;  %v1210_v35 = vrot.slane %v1209_v16, 1  ;;  %v1342_v1 = vrot.slane %v3626_v11, 2 }
 0x22d   : > { %v1408_v60 = vrot.slane %v1407_v4, 4  ;;  %v1421_v0 = vadd.f32 %v1420_v30, %v1419_v43  ;;  %2837 = vpow2.f32 %v981_v22  ;;  %v1110_v58 = vsub.f32 %v1109_v7, %v3386_v50 }
 0x22e   : > { %2839 = vpow2.f32 %v983_v14  ;;  %v1111_v49 = vsub.f32 %v1109_v7, %v3541_v13  ;;  %v1112_v53 = vsub.f32 %v1109_v7, %v3604_v23  ;;  %v1158_v34 = vsub.f32 %v1157_v29, %v3358_v55 }
 0x22f   : > { %v1409_v20 = vadd.f32 %v1408_v60, %v1407_v4  ;;  %v1422_v36 = vrot.slane %v1421_v0, 4  ;;  %v1159_v2 = vsub.f32 %v1157_v29, %v3372_v24  ;;  %v1160_v39 = vsub.f32 %v1157_v29, %v3392_v46  ;;  %v2834_v6 = vpop.eup %2833 }
 0x230   : > { %v1113_v41 = vmul.f32 1.442695, %v1110_v58  ;;  %v1115_v10 = vmul.f32 1.442695, %v1111_v49  ;;  %v909_v18 = vmul.f32 %v2834_v6, %v907_v33  ;;  %v1117_v19 = vmul.f32 1.442695, %v1112_v53 }
 0x231   : > { %v1410_v47 = vrot.slane %v1409_v20, 2  ;;  %v1423_v52 = vadd.f32 %v1422_v36, %v1421_v0  ;;  %v1161_v22 = vmul.f32 1.442695, %v1158_v34  ;;  %v1163_v50 = vmul.f32 1.442695, %v1159_v2 }
 0x232   : > { %2841 = vpow2.f32 %v1113_v41  ;;  %v1165_v23 = vmul.f32 1.442695, %v1160_v39  ;;  %910 = vst.msk [vmem:[%s3528_s13 + $0x3] sm:$0x1] %vm670_vm3, %v909_v18  ;;  %v1211_v55 = vmin.f32 %v1209_v16, %v1210_v35  ;;  %v1343_v24 = vmin.f32 %v3626_v11, %v1342_v1 }
 0x233   : > { %v1411_v4 = vadd.f32 %v1410_v47, %v1409_v20  ;;  %v1424_v13 = vrot.slane %v1423_v52, 2  ;;  %2843 = vpow2.f32 %v1115_v10  ;;  %v3658_v46 = vmul.f32 0.6666667, %v3394_v56 }
 0x234   : > { %2845 = vpow2.f32 %v1117_v19  ;;  %v3662_v33 = vsel %vm622_vm2, %v3394_v56, inf  ;;  %v1212_v14 = vsub.f32 %v1211_v55, %v3401_v12  ;;  %v1213_v44 = vsub.f32 %v1211_v55, %v3548_v27 }
 0x235   : > { %v1412_v43 = vrot.slane %v1411_v4, 1  ;;  %v1425_v30 = vadd.f32 %v1424_v13, %v1423_v52  ;;  %2847 = vpow2.f32 %v1161_v22  ;;  %v1214_v16 = vsub.f32 %v1211_v55, %v3609_v57 }
 0x236   : > { %v2836_v3 = vpop.eup %2835  ;;  %2849 = vpow2.f32 %v1163_v50  ;;  %v1215_v20 = vmul.f32 1.442695, %v1212_v14  ;;  %v1217_v2 = vmul.f32 1.442695, %v1213_v44  ;;  %v1344_v47 = vrot.slane %v1343_v24, 1 }
 0x237   : > { %v2838_v28 = vpop.eup %2837  ;;  %v1413_v11 = vadd.f32 %v1412_v43, %v1411_v4  ;;  %v1426_v60 = vrot.slane %v1425_v30, 1  ;;  %v985_v0 = vsel %vm622_vm2, %v2836_v3, 0.0  ;;  %v996_v7 = vmul.f32 %v2836_v3, %v3268_v54 }
 0x238   : > { %v2840_v29 = vpop.eup %2839  ;;  %v986_v35 = vsel %vm622_vm2, %v2838_v28, 0.0  ;;  %v997_v1 = vmul.f32 %v2838_v28, %v3281_v62  ;;  %v1219_v6 = vmul.f32 1.442695, %v1214_v16  ;;  %v1858_v52 = vmin.f32 %v3624_v5, %v3662_v33 }
 0x239   : > { %v1427_v36 = vadd.f32 %v1426_v60, %v1425_v30  ;;  %2851 = vrcp.f32 %v1413_v11  ;;  %v987_v12 = vadd.f32 %v986_v35, %v985_v0  ;;  %v988_v27 = vsel %vm622_vm2, %v2840_v29, 0.0 }
 0x23a   : > { %v998_v57 = vmul.f32 %v2840_v29, %v3283_v63  ;;  %v999_v58 = vsel %vm622_vm2, %v996_v7, 0.0  ;;  %v1000_v49 = vsel %vm622_vm2, %v997_v1, 0.0  ;;  %2853 = vpow2.f32 %v1165_v23 }
 0x23b   : > { %v989_v53 = vadd.f32 %v988_v27, %v987_v12  ;;  %v1001_v34 = vadd.f32 %v1000_v49, %v999_v58  ;;  %2855 = vpow2.f32 %v1215_v20  ;;  %v3679_v19 = vmul.f32 0.33333334, %v3419_v9 }
 0x23c   : > { %v1002_v39 = vsel %vm622_vm2, %v998_v57, 0.0  ;;  %v2842_v41 = vpop.eup %2841  ;;  %2857 = vpow2.f32 %v1217_v2  ;;  %v3683_v13 = vmin.f32 %v1343_v24, %v1344_v47 }
 0x23d   : > { %v990_v10 = vrot.slane %v989_v53, 4  ;;  %v1003_v18 = vadd.f32 %v1002_v39, %v1001_v34  ;;  %v2844_v22 = vpop.eup %2843  ;;  %v1119_v50 = vsel %vm622_vm2, %v2842_v41, 0.0  ;;  %v1130_v4 = vmul.f32 %v2842_v41, %v3268_v54 }
 0x23e   : > { %2859 = vpow2.f32 %v1219_v6  ;;  %v2846_v23 = vpop.eup %2845  ;;  %v1120_v30 = vsel %vm622_vm2, %v2844_v22, 0.0  ;;  %v1131_v3 = vmul.f32 %v2844_v22, %v3281_v62 }
 0x23f   : > { %v991_v55 = vadd.f32 %v990_v10, %v989_v53  ;;  %v1004_v43 = vrot.slane %v1003_v18, 4  ;;  %v2848_v14 = vpop.eup %2847  ;;  %v1121_v44 = vadd.f32 %v1120_v30, %v1119_v50  ;;  %v1122_v16 = vsel %vm622_vm2, %v2846_v23, 0.0 }
 0x240   : > { %v1132_v28 = vmul.f32 %v2846_v23, %v3283_v63  ;;  %v1133_v11 = vsel %vm622_vm2, %v1130_v4, 0.0  ;;  %v1134_v24 = vsel %vm622_vm2, %v1131_v3, 0.0  ;;  %v1167_v7 = vsel %vm622_vm2, %v2848_v14, 0.0  ;;  %v2850_v29 = vpop.eup %2849 }
 0x241   : > { %v992_v60 = vrot.slane %v991_v55, 2  ;;  %v1005_v0 = vadd.f32 %v1004_v43, %v1003_v18  ;;  %v1123_v35 = vadd.f32 %v1122_v16, %v1121_v44  ;;  %v1135_v1 = vadd.f32 %v1134_v24, %v1133_v11 }
 0x242   : > { %v1136_v20 = vsel %vm622_vm2, %v1132_v28, 0.0  ;;  %v1178_v12 = vmul.f32 %v2848_v14, %v3268_v54  ;;  %v1168_v49 = vsel %vm622_vm2, %v2850_v29, 0.0  ;;  %v1179_v53 = vmul.f32 %v2850_v29, %v3281_v62 }
 0x243   : > { %v2852_v27 = vpop.eup %2851  ;;  %v993_v57 = vadd.f32 %v992_v60, %v991_v55  ;;  %v1006_v58 = vrot.slane %v1005_v0, 2  ;;  %v1124_v39 = vrot.slane %v1123_v35, 4  ;;  %v1137_v6 = vadd.f32 %v1136_v20, %v1135_v1 }
 0x244   : > { %v2854_v34 = vpop.eup %2853  ;;  %v1429_v2 = vmul.f32 %v2852_v27, %v1427_v36  ;;  %v1169_v47 = vadd.f32 %v1168_v49, %v1167_v7  ;;  %v1181_v43 = vsel %vm622_vm2, %v1178_v12, 0.0  ;;  %v1182_v14 = vsel %vm622_vm2, %v1179_v53, 0.0 }
 0x245   : > { %v2856_v41 = vpop.eup %2855  ;;  %v994_v10 = vrot.slane %v993_v57, 1  ;;  %v1007_v18 = vadd.f32 %v1006_v58, %v1005_v0  ;;  %v1170_v22 = vsel %vm622_vm2, %v2854_v34, 0.0  ;;  %v1180_v50 = vmul.f32 %v2854_v34, %v3283_v63 }
 0x246   : > { %1430 = vst.msk [vmem:[%s3528_s13 + $0xa] sm:$0x1] %vm670_vm3, %v1429_v2  ;;  %v1125_v4 = vadd.f32 %v1124_v39, %v1123_v35  ;;  %v1138_v23 = vrot.slane %v1137_v6, 4  ;;  %v1171_v55 = vadd.f32 %v1170_v22, %v1169_v47  ;;  %v2858_v30 = vpop.eup %2857  ;;  %v1183_v0 = vadd.f32 %v1182_v14, %v1181_v43 }
 0x247   : > { %v995_v3 = vadd.f32 %v994_v10, %v993_v57  ;;  %v1008_v36 = vrot.slane %v1007_v18, 1  ;;  %v1184_v44 = vsel %vm622_vm2, %v1180_v50, 0.0  ;;  %v1221_v7 = vsel %vm622_vm2, %v2856_v41, 0.0 }
 0x248   : > { %v2860_v16 = vpop.eup %2859  ;;  %v1126_v28 = vrot.slane %v1125_v4, 2  ;;  %v1139_v11 = vadd.f32 %v1138_v23, %v1137_v6  ;;  %v1172_v60 = vrot.slane %v1171_v55, 4  ;;  %v1222_v29 = vsel %vm622_vm2, %v2858_v30, 0.0 }
 0x249   : > { %v1009_v24 = vadd.f32 %v1008_v36, %v1007_v18  ;;  %2861 = vrcp.f32 %v995_v3  ;;  %v1185_v12 = vadd.f32 %v1184_v44, %v1183_v0  ;;  %v1223_v27 = vadd.f32 %v1222_v29, %v1221_v7 }
 0x24a   : > { %v1127_v35 = vadd.f32 %v1126_v28, %v1125_v4  ;;  %v1140_v1 = vrot.slane %v1139_v11, 2  ;;  %v1173_v20 = vadd.f32 %v1172_v60, %v1171_v55  ;;  %v1224_v57 = vsel %vm622_vm2, %v2860_v16, 0.0  ;;  %v3711_v55 = vpop.f32.mrb[30].mxu1 }
 0x24b   : > { %v1232_v58 = vmul.f32 %v2856_v41, %v3268_v54  ;;  %v1233_v49 = vmul.f32 %v2858_v30, %v3281_v62  ;;  %v1186_v39 = vrot.slane %v1185_v12, 4  ;;  %v1225_v6 = vadd.f32 %v1224_v57, %v1223_v27  ;;  %v2738_v36 = vpop.f32.mrb[31].mxu1 }
 0x24c   : > { %v1128_v53 = vrot.slane %v1127_v35, 1  ;;  %v1141_v34 = vadd.f32 %v1140_v1, %v1139_v11  ;;  %v1174_v2 = vrot.slane %v1173_v20, 2  ;;  %v1234_v47 = vmul.f32 %v2860_v16, %v3283_v63  ;;  %v4243_v1 = vld [vmem:[#allocation3_spill] sm:$0xff] }
 0x24d   : > { %v1235_v10 = vsel %vm622_vm2, %v1232_v58, 0.0  ;;  %v1236_v18 = vsel %vm622_vm2, %v1233_v49, 0.0  ;;  %v1187_v23 = vadd.f32 %v1186_v39, %v1185_v12  ;;  %v1226_v41 = vrot.slane %v1225_v6, 4 }
 0x24e   : > { %v1129_v22 = vadd.f32 %v1128_v53, %v1127_v35  ;;  %v1142_v50 = vrot.slane %v1141_v34, 1  ;;  %v1175_v4 = vadd.f32 %v1174_v2, %v1173_v20  ;;  %v1237_v43 = vadd.f32 %v1236_v18, %v1235_v10 }
 0x24f   : > { %v1238_v30 = vsel %vm622_vm2, %v1234_v47, 0.0  ;;  %v1346_v3 = vsub.f32 %v3683_v13, %v3404_v26  ;;  %v1188_v16 = vrot.slane %v1187_v23, 2  ;;  %v1227_v28 = vadd.f32 %v1226_v41, %v1225_v6  ;;  %v3724_v26 = vpop.f32.mrb[32].mxu1  ;;  %v4245_v41 = vld [vmem:[#allocation4_spill] sm:$0xff] }
 0x250   : > { %v1143_v14 = vadd.f32 %v1142_v50, %v1141_v34  ;;  %2863 = vrcp.f32 %v1129_v22  ;;  %v1176_v44 = vrot.slane %v1175_v4, 1  ;;  %v1239_v11 = vadd.f32 %v1238_v30, %v1237_v43  ;;  %v4244_v22 = vld [vmem:[#allocation2_spill] sm:$0xff] }
 0x251   : > { %v1347_v60 = vsub.f32 %v3683_v13, %v3563_v37  ;;  %v1348_v0 = vsub.f32 %v3683_v13, %v3584_v17  ;;  %v1189_v29 = vadd.f32 %v1188_v16, %v1187_v23  ;;  %v1349_v35 = vmul.f32 1.442695, %v1346_v3  ;;  %v2741_v13 = vpop.f32.mrb[33].mxu1 }
 0x252   : > { %v1177_v7 = vadd.f32 %v1176_v44, %v1175_v4  ;;  %v3722_v20 = vadd.f32 %v3679_v19, %v4243_v1  ;;  %v1228_v27 = vrot.slane %v1227_v28, 2  ;;  %v1240_v57 = vrot.slane %v1239_v11, 4 }
 0x253   : > { %v2862_v12 = vpop.eup %2861  ;;  %v1351_v58 = vmul.f32 1.442695, %v1347_v60  ;;  %v1353_v49 = vmul.f32 1.442695, %v1348_v0  ;;  %v1190_v37 = vrot.slane %v1189_v29, 1  ;;  %v3735_v47 = vsel %vm622_vm2, %v3419_v9, inf }
 0x254   : > { %v1011_v53 = vmul.f32 %v2862_v12, %v1009_v24  ;;  %2865 = vrcp.f32 %v1177_v7  ;;  %v3728_v17 = vsel %vm622_vm2, %v3722_v20, inf  ;;  %v1229_v34 = vadd.f32 %v1228_v27, %v1227_v28  ;;  %v4246_v60 = vld [vmem:[#allocation5_spill] sm:$0xff] }
 0x255   : > { %v1241_v2 = vadd.f32 %v1240_v57, %v1239_v11  ;;  %2867 = vpow2.f32 %v1349_v35  ;;  %v1565_v39 = vmul.f32 0.6666667, %v3419_v9  ;;  %v1191_v6 = vadd.f32 %v1190_v37, %v1189_v29 }
 0x256   : > { %1012 = vst.msk [vmem:[%s3528_s13 + $0x5] sm:$0x1] %vm670_vm3, %v1011_v53  ;;  %2869 = vpow2.f32 %v1351_v58  ;;  %v3739_v24 = vadd.f32 %v3620_v45, %v3679_v19  ;;  %v1230_v10 = vrot.slane %v1229_v34, 1  ;;  %v3752_v43 = vmul.f32 0.33333334, %v4245_v41  ;;  %v4247_v58 = vld [vmem:[#allocation6_spill] sm:$0xff] }
 0x257   : > { %v1242_v18 = vrot.slane %v1241_v2, 2  ;;  %2871 = vpow2.f32 %v1353_v49  ;;  %v3742_v50 = vadd.f32 %v1565_v39, %v4244_v22  ;;  %v3745_v4 = vadd.f32 %v3587_v38, %v1565_v39 }
 0x258   : > { %v3749_v23 = vsel %vm622_vm2, %v3739_v24, inf  ;;  %v3755_v30 = vmul.f32 0.6666667, %v4245_v41  ;;  %v1231_v19 = vadd.f32 %v1230_v10, %v1229_v34  ;;  %v1857_v44 = vsel %vm622_vm2, %v4245_v41, inf }
 0x259   : > { %v1243_v3 = vadd.f32 %v1242_v18, %v1241_v2  ;;  %v3759_v36 = vsel %vm622_vm2, %v3742_v50, inf  ;;  %v3765_v28 = vsel %vm622_vm2, %v3745_v4, inf  ;;  %v1859_v11 = vmin.f32 %v1858_v52, %v1857_v44 }
 0x25a   : > { %v2864_v16 = vpop.eup %2863  ;;  %v1432_v0 = vmul.f32 0.33333334, %v4246_v60  ;;  %v1566_v7 = vmul.f32 0.6666667, %v4246_v60  ;;  %2873 = vrcp.f32 %v1231_v19  ;;  %v1620_v1 = vsel %vm622_vm2, %v4246_v60, inf }
 0x25b   : > { %v1145_v29 = vmul.f32 %v2864_v16, %v1143_v14  ;;  %v1244_v35 = vrot.slane %v1243_v3, 1  ;;  %v1860_v12 = vrot.slane %v1859_v11, 4  ;;  %v1622_v5 = vmin.f32 %v3735_v47, %v1620_v1 }
 0x25c   : > { %v3775_v27 = vadd.f32 %v1432_v0, %v3356_v51  ;;  %v3778_v57 = vadd.f32 %v1566_v7, %v3345_v42  ;;  %v3784_v52 = vadd.f32 %v3629_v61, %v1566_v7  ;;  %v3787_v14 = vadd.f32 %v3658_v46, %v1432_v0 }
 0x25d   : > { %1146 = vst.msk [vmem:[%s3528_s13 + $0x6] sm:$0x1] %vm670_vm3, %v1145_v29  ;;  %v1245_v33 = vadd.f32 %v1244_v35, %v1243_v3  ;;  %v3790_v49 = vmul.f32 0.33333334, %v4247_v58  ;;  %v1861_v51 = vmin.f32 %v1859_v11, %v1860_v12  ;;  %v1567_v13 = vmul.f32 0.6666667, %v4247_v58 }
 0x25e   : > { %v2866_v53 = vpop.eup %2865  ;;  %v1438_v42 = vsel %vm622_vm2, %v3775_v27, inf  ;;  %v1572_v37 = vsel %vm622_vm2, %v3778_v57, inf  ;;  %v1674_v10 = vsel %vm622_vm2, %v3784_v52, inf }
 0x25f   : > { %v2868_v34 = vpop.eup %2867  ;;  %v1193_v2 = vmul.f32 %v2866_v53, %v1191_v6  ;;  %v1440_v39 = vmin.f32 %v3728_v17, %v1438_v42  ;;  %v1574_v47 = vmin.f32 %v3759_v36, %v1572_v37  ;;  %v1862_v3 = vrot.slane %v1861_v51, 2 }
 0x260   : > { %v2870_v18 = vpop.eup %2869  ;;  %v1355_v22 = vsel %vm622_vm2, %v2868_v34, 0.0  ;;  %v1366_v19 = vmul.f32 %v2868_v34, %v3268_v54  ;;  %v1676_v44 = vmin.f32 %v3765_v28, %v1674_v10  ;;  %v3810_v36 = vsel %vm622_vm2, %v3787_v14, inf }
 0x261   : > { %v2872_v16 = vpop.eup %2871  ;;  %1194 = vst.msk [vmem:[%s3528_s13 + $0x7] sm:$0x1] %vm670_vm3, %v1193_v2  ;;  %v1356_v6 = vsel %vm622_vm2, %v2870_v18, 0.0  ;;  %v1367_v17 = vmul.f32 %v2870_v18, %v3281_v62  ;;  %v3814_v11 = vadd.f32 %v3790_v49, %v3414_v32  ;;  %v1863_v1 = vmin.f32 %v1861_v51, %v1862_v3 }
 0x262   : > { %v1357_v0 = vadd.f32 %v1356_v6, %v1355_v22  ;;  %v1358_v7 = vsel %vm622_vm2, %v2872_v16, 0.0  ;;  %v1368_v28 = vmul.f32 %v2872_v16, %v3283_v63  ;;  %v1369_v29 = vsel %vm622_vm2, %v1366_v19, 0.0 }
 0x263   : > { %v1370_v35 = vsel %vm622_vm2, %v1367_v17, 0.0  ;;  %v1810_v12 = vmin.f32 %v3749_v23, %v3810_v36  ;;  %v1439_v53 = vsel %vm622_vm2, %v3814_v11, inf  ;;  %v1864_v10 = vrot.slane %v1863_v1, 1 }
 0x264   : > { %v1359_v42 = vadd.f32 %v1358_v7, %v1357_v0  ;;  %v1371_v37 = vadd.f32 %v1370_v35, %v1369_v29  ;;  %v1372_v32 = vsel %vm622_vm2, %v1368_v28, 0.0  ;;  %v1441_v34 = vmin.f32 %v1440_v39, %v1439_v53  ;;  %v2874_v2 = vpop.eup %2873 }
 0x265   : > { %v3826_v18 = vadd.f32 %v1567_v13, %v3411_v31  ;;  %v1621_v51 = vsel %vm622_vm2, %v4247_v58, inf  ;;  %v3831_v22 = vadd.f32 %v3752_v43, %v1567_v13  ;;  %v1247_v23 = vmul.f32 %v2874_v2, %v1245_v33 }
 0x266   : > { %v1360_v19 = vrot.slane %v1359_v42, 4  ;;  %v1373_v3 = vadd.f32 %v1372_v32, %v1371_v37  ;;  %v1442_v16 = vrot.slane %v1441_v34, 4  ;;  %v1865_v6 = vmin.f32 %v1863_v1, %v1864_v10 }
 0x267   : > { %v1573_v17 = vsel %vm622_vm2, %v3826_v18, inf  ;;  %v1623_v39 = vmin.f32 %v1622_v5, %v1621_v51  ;;  %v1675_v36 = vsel %vm622_vm2, %v3831_v22, inf  ;;  %1248 = vst.msk [vmem:[%s3528_s13 + $0x8] sm:$0x1] %vm670_vm3, %v1247_v23 }
 0x268   : > { %v1361_v31 = vadd.f32 %v1360_v19, %v1359_v42  ;;  %v1374_v0 = vrot.slane %v1373_v3, 4  ;;  %v1443_v7 = vmin.f32 %v1441_v34, %v1442_v16  ;;  %v1575_v28 = vmin.f32 %v1574_v47, %v1573_v17  ;;  %v3842_v47 = vpop.f32.mrb[34].mxu1 }
 0x269   : > { %v1866_v13 = vsub.f32 %v1865_v6, %v3374_v25  ;;  %v1867_v33 = vsub.f32 %v1865_v6, %v3394_v56  ;;  %v1868_v29 = vsub.f32 %v1865_v6, %v4245_v41  ;;  %v1624_v35 = vrot.slane %v1623_v39, 4 }
 0x26a   : > { %v1362_v1 = vrot.slane %v1361_v31, 2  ;;  %v1375_v53 = vadd.f32 %v1374_v0, %v1373_v3  ;;  %v1444_v37 = vrot.slane %v1443_v7, 2  ;;  %v1576_v5 = vrot.slane %v1575_v28, 4  ;;  %v2744_v3 = vpop.f32.mrb[35].mxu1 }
 0x26b   : > { %v1869_v32 = vmul.f32 1.442695, %v1866_v13  ;;  %v1871_v2 = vmul.f32 1.442695, %v1867_v33  ;;  %v1873_v10 = vmul.f32 1.442695, %v1868_v29  ;;  %v1625_v51 = vmin.f32 %v1623_v39, %v1624_v35 }
 0x26c   : > { %v1363_v23 = vadd.f32 %v1362_v1, %v1361_v31  ;;  %v1376_v42 = vrot.slane %v1375_v53, 2  ;;  %v1445_v19 = vmin.f32 %v1443_v7, %v1444_v37  ;;  %v1577_v34 = vmin.f32 %v1575_v28, %v1576_v5 }
 0x26d   : > { %2875 = vpow2.f32 %v1869_v32  ;;  %v1626_v25 = vrot.slane %v1625_v51, 2  ;;  %v1677_v56 = vmin.f32 %v1676_v44, %v1675_v36  ;;  %v3846_v41 = vadd.f32 %v3755_v30, %v3790_v49 }
 0x26e   : > { %v1364_v16 = vrot.slane %v1363_v23, 1  ;;  %v1377_v6 = vadd.f32 %v1376_v42, %v1375_v53  ;;  %2877 = vpow2.f32 %v1871_v2  ;;  %v1446_v17 = vrot.slane %v1445_v19, 1 }
 0x26f   : > { %2879 = vpow2.f32 %v1873_v10  ;;  %v1578_v39 = vrot.slane %v1577_v34, 2  ;;  %v1627_v31 = vmin.f32 %v1625_v51, %v1626_v25  ;;  %v1678_v0 = vrot.slane %v1677_v56, 4 }
 0x270   : > { %v1365_v7 = vadd.f32 %v1364_v16, %v1363_v23  ;;  %v1378_v28 = vrot.slane %v1377_v6, 1  ;;  %v1447_v13 = vmin.f32 %v1445_v19, %v1446_v17  ;;  %v1809_v33 = vsel %vm622_vm2, %v3846_v41, inf }
 0x271   : > { %v1579_v44 = vmin.f32 %v1577_v34, %v1578_v39  ;;  %v1628_v36 = vrot.slane %v1627_v31, 1  ;;  %v1679_v29 = vmin.f32 %v1677_v56, %v1678_v0  ;;  %v1811_v49 = vmin.f32 %v1810_v12, %v1809_v33 }
 0x272   : > { %2881 = vrcp.f32 %v1365_v7  ;;  %v1448_v35 = vsub.f32 %v1447_v13, %v3722_v20  ;;  %v1449_v1 = vsub.f32 %v1447_v13, %v3775_v27  ;;  %v1450_v53 = vsub.f32 %v1447_v13, %v3814_v11 }
 0x273   : > { %v1580_v37 = vrot.slane %v1579_v44, 1  ;;  %v1629_v5 = vmin.f32 %v1627_v31, %v1628_v36  ;;  %v1680_v32 = vrot.slane %v1679_v29, 2  ;;  %v1379_v2 = vadd.f32 %v1378_v28, %v1377_v6 }
 0x274   : > { %v1451_v10 = vmul.f32 1.442695, %v1448_v35  ;;  %v1453_v51 = vmul.f32 1.442695, %v1449_v1  ;;  %v1812_v23 = vrot.slane %v1811_v49, 4 }
 0x275   : > { %v1455_v42 = vmul.f32 1.442695, %v1450_v53  ;;  %v1581_v19 = vmin.f32 %v1579_v44, %v1580_v37  ;;  %v1630_v34 = vsub.f32 %v1629_v5, %v3419_v9  ;;  %v1631_v12 = vsub.f32 %v1629_v5, %v4246_v60 }
 0x276   : > { %2883 = vpow2.f32 %v1451_v10  ;;  %v1632_v20 = vsub.f32 %v1629_v5, %v4247_v58  ;;  %v1681_v25 = vmin.f32 %v1679_v29, %v1680_v32  ;;  %v3856_v27 = vmin.f32 %v1811_v49, %v1812_v23 }
 0x277   : > { %v2876_v11 = vpop.eup %2875  ;;  %2885 = vpow2.f32 %v1453_v51  ;;  %v1582_v56 = vsub.f32 %v1581_v19, %v3742_v50  ;;  %v1583_v3 = vsub.f32 %v1581_v19, %v3778_v57  ;;  %v1584_v16 = vsub.f32 %v1581_v19, %v3826_v18 }
 0x278   : > { %v2878_v6 = vpop.eup %2877  ;;  %v1875_v17 = vsel %vm622_vm2, %v2876_v11, 0.0  ;;  %v1886_v9 = vmul.f32 %v2876_v11, %v3268_v54  ;;  %2887 = vpow2.f32 %v1455_v42  ;;  %v1633_v60 = vmul.f32 1.442695, %v1630_v34 }
 0x279   : > { %v2880_v39 = vpop.eup %2879  ;;  %v1876_v58 = vsel %vm622_vm2, %v2878_v6, 0.0  ;;  %v1887_v31 = vmul.f32 %v2878_v6, %v3281_v62  ;;  %v1585_v0 = vmul.f32 1.442695, %v1582_v56  ;;  %v1587_v7 = vmul.f32 1.442695, %v1583_v3 }
 0x27a   : > { %v1877_v28 = vadd.f32 %v1876_v58, %v1875_v17  ;;  %v1878_v50 = vsel %vm622_vm2, %v2880_v39, 0.0  ;;  %v1888_v57 = vmul.f32 %v2880_v39, %v3283_v63  ;;  %v1889_v18 = vsel %vm622_vm2, %v1886_v9, 0.0 }
 0x27b   : > { %v1890_v13 = vsel %vm622_vm2, %v1887_v31, 0.0  ;;  %2889 = vpow2.f32 %v1585_v0  ;;  %v1589_v33 = vmul.f32 1.442695, %v1584_v16  ;;  %v1635_v44 = vmul.f32 1.442695, %v1631_v12 }
 0x27c   : > { %v2882_v36 = vpop.eup %2881  ;;  %v1879_v29 = vadd.f32 %v1878_v50, %v1877_v28  ;;  %v1891_v49 = vadd.f32 %v1890_v13, %v1889_v18  ;;  %v1892_v35 = vsel %vm622_vm2, %v1888_v57, 0.0  ;;  %2891 = vpow2.f32 %v1587_v7 }
 0x27d   : > { %v1381_v1 = vmul.f32 %v2882_v36, %v1379_v2  ;;  %2893 = vpow2.f32 %v1589_v33  ;;  %v1637_v53 = vmul.f32 1.442695, %v1632_v20  ;;  %v1682_v37 = vrot.slane %v1681_v25, 1 }
 0x27e   : > { %v1880_v5 = vrot.slane %v1879_v29, 4  ;;  %v1893_v32 = vadd.f32 %v1892_v35, %v1891_v49  ;;  %2895 = vpow2.f32 %v1633_v60  ;;  %v3872_v10 = vsel %vm622_vm2, %v3517_v21, inf }
 0x27f   : > { %1382 = vst.msk [vmem:[%s3528_s13 + $0x9] sm:$0x1] %vm670_vm3, %v1381_v1  ;;  %2897 = vpow2.f32 %v1635_v44  ;;  %v3876_v51 = vmin.f32 %v1681_v25, %v1682_v37  ;;  %v1814_v23 = vrot.slane %v3856_v27, 2  ;;  %v3880_v42 = vmul.f32 0.33333334, %v3517_v21 }
 0x280   : > { %v2884_v2 = vpop.eup %2883  ;;  %v1881_v19 = vadd.f32 %v1880_v5, %v1879_v29  ;;  %v1894_v34 = vrot.slane %v1893_v32, 4  ;;  %2899 = vpow2.f32 %v1637_v53  ;;  %v3883_v12 = vmul.f32 0.33333334, %v3523_v8 }
 0x281   : > { %v2886_v20 = vpop.eup %2885  ;;  %v1457_v11 = vsel %vm622_vm2, %v2884_v2, 0.0  ;;  %v1468_v56 = vmul.f32 %v2884_v2, %v3268_v54  ;;  %v1684_v25 = vsub.f32 %v3876_v51, %v3745_v4  ;;  %v1685_v3 = vsub.f32 %v3876_v51, %v3784_v52 }
 0x282   : > { %v2888_v16 = vpop.eup %2887  ;;  %v1882_v6 = vrot.slane %v1881_v19, 2  ;;  %v1895_v17 = vadd.f32 %v1894_v34, %v1893_v32  ;;  %v1458_v9 = vsel %vm622_vm2, %v2886_v20, 0.0  ;;  %v1469_v60 = vmul.f32 %v2886_v20, %v3281_v62 }
 0x283   : > { %v1459_v39 = vadd.f32 %v1458_v9, %v1457_v11  ;;  %v1460_v58 = vsel %vm622_vm2, %v2888_v16, 0.0  ;;  %v1470_v31 = vmul.f32 %v2888_v16, %v3283_v63  ;;  %v1471_v0 = vsel %vm622_vm2, %v1468_v56, 0.0 }
 0x284   : > { %v1883_v7 = vadd.f32 %v1882_v6, %v1881_v19  ;;  %v1896_v28 = vrot.slane %v1895_v17, 2  ;;  %v1472_v4 = vsel %vm622_vm2, %v1469_v60, 0.0  ;;  %v1686_v50 = vsub.f32 %v3876_v51, %v3831_v22 }
 0x285   : > { %v2890_v57 = vpop.eup %2889  ;;  %v1461_v18 = vadd.f32 %v1460_v58, %v1459_v39  ;;  %v1473_v13 = vadd.f32 %v1472_v4, %v1471_v0  ;;  %v1474_v33 = vsel %vm622_vm2, %v1470_v31, 0.0  ;;  %v3901_v44 = vmin.f32 %v3856_v27, %v1814_v23 }
 0x286   : > { %v2892_v36 = vpop.eup %2891  ;;  %v1884_v29 = vrot.slane %v1883_v7, 1  ;;  %v1897_v49 = vadd.f32 %v1896_v28, %v1895_v17  ;;  %v1591_v35 = vsel %vm622_vm2, %v2890_v57, 0.0  ;;  %v1602_v1 = vmul.f32 %v2890_v57, %v3268_v54 }
 0x287   : > { %v2894_v53 = vpop.eup %2893  ;;  %v1462_v37 = vrot.slane %v1461_v18, 4  ;;  %v1475_v5 = vadd.f32 %v1474_v33, %v1473_v13  ;;  %v1592_v32 = vsel %vm622_vm2, %v2892_v36, 0.0  ;;  %v1603_v2 = vmul.f32 %v2892_v36, %v3281_v62 }
 0x288   : > { %v2896_v19 = vpop.eup %2895  ;;  %v1885_v34 = vadd.f32 %v1884_v29, %v1883_v7  ;;  %v1593_v20 = vadd.f32 %v1592_v32, %v1591_v35  ;;  %v1594_v27 = vsel %vm622_vm2, %v2894_v53, 0.0  ;;  %v1687_v23 = vmul.f32 1.442695, %v1684_v25 }
 0x289   : > { %v2898_v11 = vpop.eup %2897  ;;  %v1463_v56 = vadd.f32 %v1462_v37, %v1461_v18  ;;  %v1476_v16 = vrot.slane %v1475_v5, 4  ;;  %v1604_v6 = vmul.f32 %v2894_v53, %v3283_v63  ;;  %v1605_v17 = vsel %vm622_vm2, %v1602_v1, 0.0 }
 0x28a   : > { %v2900_v9 = vpop.eup %2899  ;;  %v1898_v60 = vrot.slane %v1897_v49, 1  ;;  %2901 = vrcp.f32 %v1885_v34  ;;  %v1595_v39 = vadd.f32 %v1594_v27, %v1593_v20  ;;  %v1606_v58 = vsel %vm622_vm2, %v1603_v2, 0.0 }
 0x28b   : > { %v1464_v31 = vrot.slane %v1463_v56, 2  ;;  %v1477_v0 = vadd.f32 %v1476_v16, %v1475_v5  ;;  %v1607_v7 = vadd.f32 %v1606_v58, %v1605_v17  ;;  %v1608_v28 = vsel %vm622_vm2, %v1604_v6, 0.0 }
 0x28c   : > { %v1596_v4 = vrot.slane %v1595_v39, 4  ;;  %v1639_v25 = vsel %vm622_vm2, %v2896_v19, 0.0  ;;  %v1640_v57 = vsel %vm622_vm2, %v2898_v11, 0.0  ;;  %v1642_v18 = vsel %vm622_vm2, %v2900_v9, 0.0 }
 0x28d   : > { %v1465_v13 = vadd.f32 %v1464_v31, %v1463_v56  ;;  %v1478_v33 = vrot.slane %v1477_v0, 2  ;;  %v1609_v36 = vadd.f32 %v1608_v28, %v1607_v7  ;;  %v1641_v29 = vadd.f32 %v1640_v57, %v1639_v25 }
 0x28e   : > { %v1597_v35 = vadd.f32 %v1596_v4, %v1595_v39  ;;  %v1650_v1 = vmul.f32 %v2896_v19, %v3268_v54  ;;  %v1651_v53 = vmul.f32 %v2898_v11, %v3281_v62  ;;  %v1652_v37 = vmul.f32 %v2900_v9, %v3283_v63 }
 0x28f   : > { %v1466_v5 = vrot.slane %v1465_v13, 1  ;;  %v1479_v32 = vadd.f32 %v1478_v33, %v1477_v0  ;;  %v1610_v2 = vrot.slane %v1609_v36, 4  ;;  %v1643_v34 = vadd.f32 %v1642_v18, %v1641_v29 }
 0x290   : > { %v1899_v20 = vadd.f32 %v1898_v60, %v1897_v49  ;;  %v1598_v27 = vrot.slane %v1597_v35, 2  ;;  %v1653_v16 = vsel %vm622_vm2, %v1650_v1, 0.0  ;;  %v1654_v56 = vsel %vm622_vm2, %v1651_v53, 0.0 }
 0x291   : > { %v1467_v6 = vadd.f32 %v1466_v5, %v1465_v13  ;;  %v1611_v17 = vadd.f32 %v1610_v2, %v1609_v36  ;;  %v1644_v58 = vrot.slane %v1643_v34, 4  ;;  %v1656_v39 = vsel %vm622_vm2, %v1652_v37, 0.0 }
 0x292   : > { %v1599_v19 = vadd.f32 %v1598_v27, %v1597_v35  ;;  %v1655_v31 = vadd.f32 %v1654_v56, %v1653_v16  ;;  %2903 = vpow2.f32 %v1687_v23  ;;  %v1689_v11 = vmul.f32 1.442695, %v1685_v3 }
 0x293   : > { %v1480_v9 = vrot.slane %v1479_v32, 1  ;;  %2905 = vrcp.f32 %v1467_v6  ;;  %v1612_v49 = vrot.slane %v1611_v17, 2  ;;  %v1645_v60 = vadd.f32 %v1644_v58, %v1643_v34 }
 0x294   : > { %v2902_v0 = vpop.eup %2901  ;;  %v1600_v7 = vrot.slane %v1599_v19, 1  ;;  %v1657_v28 = vadd.f32 %v1656_v39, %v1655_v31  ;;  %2907 = vpow2.f32 %v1689_v11  ;;  %v1691_v4 = vmul.f32 1.442695, %v1686_v50 }
 0x295   : > { %v1901_v25 = vmul.f32 %v2902_v0, %v1899_v20  ;;  %v1613_v57 = vadd.f32 %v1612_v49, %v1611_v17  ;;  %v1646_v23 = vrot.slane %v1645_v60, 2  ;;  %v1816_v18 = vrot.slane %v3901_v44, 1 }
 0x296   : > { %v1601_v52 = vadd.f32 %v1600_v7, %v1599_v19  ;;  %v1658_v3 = vrot.slane %v1657_v28, 4  ;;  %2909 = vpow2.f32 %v1691_v4  ;;  %v2328_v13 = vsel %vm622_vm2, %v3523_v8, inf }
 0x297   : > { %1902 = vst.msk [vmem:[%s3528_s13 + $0x10] sm:$0x1] %vm670_vm3, %v1901_v25  ;;  %v1614_v33 = vrot.slane %v1613_v57, 1  ;;  %v1647_v36 = vadd.f32 %v1646_v23, %v1645_v60  ;;  %v1817_v29 = vmin.f32 %v3901_v44, %v1816_v18  ;;  %v2330_v22 = vmin.f32 %v3872_v10, %v2328_v13 }
 0x298   : > { %2911 = vrcp.f32 %v1601_v52  ;;  %v1659_v51 = vadd.f32 %v1658_v3, %v1657_v28  ;;  %v3935_v50 = vmul.f32 0.33333334, %v3589_v40  ;;  %v2037_v35 = vmul.f32 0.6666667, %v3589_v40 }
 0x299   : > { %v1481_v1 = vadd.f32 %v1480_v9, %v1479_v32  ;;  %v1648_v53 = vrot.slane %v1647_v36, 1  ;;  %v1818_v37 = vsub.f32 %v1817_v29, %v3739_v24  ;;  %v1819_v5 = vsub.f32 %v1817_v29, %v3787_v14 }
 0x29a   : > { %v1660_v2 = vrot.slane %v1659_v51, 2  ;;  %v1820_v34 = vsub.f32 %v1817_v29, %v3846_v41  ;;  %v3943_v44 = vadd.f32 %v3935_v50, %v3620_v45  ;;  %v3946_v10 = vadd.f32 %v2037_v35, %v3587_v38 }
 0x29b   : > { %v1615_v20 = vadd.f32 %v1614_v33, %v1613_v57  ;;  %v1649_v27 = vadd.f32 %v1648_v53, %v1647_v36  ;;  %v1821_v16 = vmul.f32 1.442695, %v1818_v37  ;;  %v1823_v56 = vmul.f32 1.442695, %v1819_v5 }
 0x29c   : > { %v2904_v32 = vpop.eup %2903  ;;  %v1661_v6 = vadd.f32 %v1660_v2, %v1659_v51  ;;  %v1825_v17 = vmul.f32 1.442695, %v1820_v34  ;;  %v3950_v24 = vsel %vm622_vm2, %v3943_v44, inf  ;;  %v3954_v14 = vsel %vm622_vm2, %v3589_v40, inf }
 0x29d   : > { %v2906_v45 = vpop.eup %2905  ;;  %2913 = vrcp.f32 %v1649_v27  ;;  %v1693_v38 = vsel %vm622_vm2, %v2904_v32, 0.0  ;;  %v1704_v41 = vmul.f32 %v2904_v32, %v3268_v54  ;;  %v3959_v58 = vadd.f32 %v3880_v42, %v2037_v35 }
 0x29e   : > { %v2908_v39 = vpop.eup %2907  ;;  %v1483_v19 = vmul.f32 %v2906_v45, %v1481_v1  ;;  %v1662_v31 = vrot.slane %v1661_v6, 1  ;;  %2915 = vpow2.f32 %v1821_v16  ;;  %v3963_v11 = vsel %vm622_vm2, %v3946_v10, inf }
 0x29f   : > { %v1694_v9 = vsel %vm622_vm2, %v2908_v39, 0.0  ;;  %v1705_v49 = vmul.f32 %v2908_v39, %v3281_v62  ;;  %v1707_v60 = vsel %vm622_vm2, %v1704_v41, 0.0  ;;  %2917 = vpow2.f32 %v1823_v56 }
 0x2a0   : > { %v2910_v0 = vpop.eup %2909  ;;  %1484 = vst.msk [vmem:[%s3528_s13 + $0xb] sm:$0x1] %vm670_vm3, %v1483_v19  ;;  %v1663_v42 = vadd.f32 %v1662_v31, %v1661_v6  ;;  %v1695_v7 = vadd.f32 %v1694_v9, %v1693_v38  ;;  %2919 = vpow2.f32 %v1825_v17  ;;  %v3972_v28 = vsel %vm622_vm2, %v3959_v58, inf }
 0x2a1   : > { %v1696_v4 = vsel %vm622_vm2, %v2910_v0, 0.0  ;;  %v1706_v25 = vmul.f32 %v2910_v0, %v3283_v63  ;;  %v1708_v57 = vsel %vm622_vm2, %v1705_v49, 0.0  ;;  %v2329_v23 = vsel %vm622_vm2, %v3606_v15, inf }
 0x2a2   : > { %v2912_v18 = vpop.eup %2911  ;;  %v1697_v52 = vadd.f32 %v1696_v4, %v1695_v7  ;;  %v1709_v3 = vadd.f32 %v1708_v57, %v1707_v60  ;;  %v2331_v13 = vmin.f32 %v2330_v22, %v2329_v23  ;;  %v3980_v33 = vmul.f32 0.33333334, %v3633_v48 }
 0x2a3   : > { %v1617_v36 = vmul.f32 %v2912_v18, %v1615_v20  ;;  %v1710_v29 = vsel %vm622_vm2, %v1706_v25, 0.0  ;;  %v2038_v51 = vmul.f32 0.6666667, %v3633_v48  ;;  %v3986_v35 = vsel %vm622_vm2, %v3633_v48, inf }
 0x2a4   : > { %v1698_v1 = vrot.slane %v1697_v52, 4  ;;  %v1711_v53 = vadd.f32 %v1710_v29, %v1709_v3  ;;  %v2332_v37 = vrot.slane %v2331_v13, 4  ;;  %v3990_v5 = vadd.f32 %v3980_v33, %v3658_v46 }
 0x2a5   : > { %1618 = vst.msk [vmem:[%s3528_s13 + $0xc] sm:$0x1] %vm670_vm3, %v1617_v36  ;;  %v3995_v22 = vadd.f32 %v2038_v51, %v3629_v61  ;;  %v2094_v2 = vmin.f32 %v3954_v14, %v3986_v35  ;;  %v4000_v34 = vadd.f32 %v3883_v12, %v2038_v51  ;;  %v4003_v20 = vmul.f32 0.33333334, %v3645_v59 }
 0x2a6   : > { %v1699_v27 = vadd.f32 %v1698_v1, %v1697_v52  ;;  %v1712_v16 = vrot.slane %v1711_v53, 4  ;;  %v2333_v56 = vmin.f32 %v2331_v13, %v2332_v37  ;;  %v1910_v46 = vsel %vm622_vm2, %v3990_v5, inf }
 0x2a7   : > { %v2914_v32 = vpop.eup %2913  ;;  %v1912_v61 = vmin.f32 %v3950_v24, %v1910_v46  ;;  %v2044_v6 = vsel %vm622_vm2, %v3995_v22, inf  ;;  %v4012_v12 = vsel %vm622_vm2, %v4000_v34, inf  ;;  %v4016_v17 = vadd.f32 %v4003_v20, %v3755_v30 }
 0x2a8   : > { %v2916_v14 = vpop.eup %2915  ;;  %v1665_v45 = vmul.f32 %v2914_v32, %v1663_v42  ;;  %v1700_v38 = vrot.slane %v1699_v27, 2  ;;  %v1713_v41 = vadd.f32 %v1712_v16, %v1711_v53  ;;  %v2334_v39 = vrot.slane %v2333_v56, 2 }
 0x2a9   : > { %v2918_v19 = vpop.eup %2917  ;;  %v1827_v31 = vsel %vm622_vm2, %v2916_v14, 0.0  ;;  %v1838_v24 = vmul.f32 %v2916_v14, %v3268_v54  ;;  %v2046_v9 = vmin.f32 %v3963_v11, %v2044_v6  ;;  %v2148_v49 = vmin.f32 %v3972_v28, %v4012_v12 }
 0x2aa   : > { %v2920_v60 = vpop.eup %2919  ;;  %1666 = vst.msk [vmem:[%s3528_s13 + $0xd] sm:$0x1] %vm670_vm3, %v1665_v45  ;;  %v1701_v30 = vadd.f32 %v1700_v38, %v1699_v27  ;;  %v1714_v0 = vrot.slane %v1713_v41, 2  ;;  %v1828_v42 = vsel %vm622_vm2, %v2918_v19, 0.0  ;;  %v1839_v7 = vmul.f32 %v2918_v19, %v3281_v62 }
 0x2ab   : > { %v1829_v4 = vadd.f32 %v1828_v42, %v1827_v31  ;;  %v1830_v25 = vsel %vm622_vm2, %v2920_v60, 0.0  ;;  %v1840_v57 = vmul.f32 %v2920_v60, %v3283_v63  ;;  %v1841_v23 = vsel %vm622_vm2, %v1838_v24, 0.0 }
 0x2ac   : > { %v1702_v11 = vrot.slane %v1701_v30, 1  ;;  %v1715_v18 = vadd.f32 %v1714_v0, %v1713_v41  ;;  %v1842_v52 = vsel %vm622_vm2, %v1839_v7, 0.0  ;;  %v2335_v3 = vmin.f32 %v2333_v56, %v2334_v39 }
 0x2ad   : > { %v1831_v13 = vadd.f32 %v1830_v25, %v1829_v4  ;;  %v1843_v36 = vadd.f32 %v1842_v52, %v1841_v23  ;;  %v2141_v29 = vmul.f32 0.33333334, %v3606_v15  ;;  %v1911_v51 = vsel %vm622_vm2, %v4016_v17, inf }
 0x2ae   : > { %v1703_v35 = vadd.f32 %v1702_v11, %v1701_v30  ;;  %v1844_v1 = vsel %vm622_vm2, %v1840_v57, 0.0  ;;  %v2336_v53 = vrot.slane %v2335_v3, 1  ;;  %v1913_v37 = vmin.f32 %v1912_v61, %v1911_v51 }
 0x2af   : > { %v1832_v27 = vrot.slane %v1831_v13, 4  ;;  %v1845_v16 = vadd.f32 %v1844_v1, %v1843_v36  ;;  %v2039_v46 = vmul.f32 0.6666667, %v3645_v59  ;;  %v2093_v32 = vsel %vm622_vm2, %v3645_v59, inf }
 0x2b0   : > { %v1716_v56 = vrot.slane %v1715_v18, 1  ;;  %2921 = vrcp.f32 %v1703_v35  ;;  %v2337_v6 = vmin.f32 %v2335_v3, %v2336_v53  ;;  %v1914_v14 = vrot.slane %v1913_v37, 4 }
 0x2b1   : > { %v1833_v45 = vadd.f32 %v1832_v27, %v1831_v13  ;;  %v1846_v38 = vrot.slane %v1845_v16, 4  ;;  %v4039_v41 = vadd.f32 %v2039_v46, %v3752_v43  ;;  %v2095_v39 = vmin.f32 %v2094_v2, %v2093_v32 }
 0x2b2   : > { %v2338_v19 = vsub.f32 %v2337_v6, %v3517_v21  ;;  %v2339_v61 = vsub.f32 %v2337_v6, %v3523_v8  ;;  %v2340_v31 = vsub.f32 %v2337_v6, %v3606_v15  ;;  %v1915_v24 = vmin.f32 %v1913_v37, %v1914_v14 }
 0x2b3   : > { %v1834_v60 = vrot.slane %v1833_v45, 2  ;;  %v1847_v30 = vadd.f32 %v1846_v38, %v1845_v16  ;;  %v2045_v0 = vsel %vm622_vm2, %v4039_v41, inf  ;;  %v2096_v42 = vrot.slane %v2095_v39, 4 }
 0x2b4   : > { %v2341_v7 = vmul.f32 1.442695, %v2338_v19  ;;  %v2343_v4 = vmul.f32 1.442695, %v2339_v61  ;;  %v2345_v25 = vmul.f32 1.442695, %v2340_v31  ;;  %v2047_v57 = vmin.f32 %v2046_v9, %v2045_v0 }
 0x2b5   : > { %v1835_v43 = vadd.f32 %v1834_v60, %v1833_v45  ;;  %v1848_v23 = vrot.slane %v1847_v30, 2  ;;  %v1916_v2 = vrot.slane %v1915_v24, 2  ;;  %v2097_v11 = vmin.f32 %v2095_v39, %v2096_v42 }
 0x2b6   : > { %2923 = vpow2.f32 %v2341_v7  ;;  %v2048_v52 = vrot.slane %v2047_v57, 4  ;;  %v4046_v3 = vadd.f32 %v2141_v29, %v2039_v46  ;;  %v2273_v13 = vmul.f32 0.6666667, %v3517_v21 }
 0x2b7   : > { %v1836_v36 = vrot.slane %v1835_v43, 1  ;;  %v1849_v51 = vadd.f32 %v1848_v23, %v1847_v30  ;;  %2925 = vpow2.f32 %v2343_v4  ;;  %v1917_v35 = vmin.f32 %v1915_v24, %v1916_v2 }
 0x2b8   : > { %2927 = vpow2.f32 %v2345_v25  ;;  %v2049_v1 = vmin.f32 %v2047_v57, %v2048_v52  ;;  %v2098_v53 = vrot.slane %v2097_v11, 2  ;;  %v2147_v9 = vsel %vm622_vm2, %v4046_v3, inf }
 0x2b9   : > { %v1717_v37 = vadd.f32 %v1716_v56, %v1715_v18  ;;  %v1837_v27 = vadd.f32 %v1836_v36, %v1835_v43  ;;  %v1918_v16 = vrot.slane %v1917_v35, 1  ;;  %v2149_v29 = vmin.f32 %v2148_v49, %v2147_v9 }
 0x2ba   : > { %v2922_v46 = vpop.eup %2921  ;;  %v2050_v21 = vrot.slane %v2049_v1, 2  ;;  %v2099_v32 = vmin.f32 %v2097_v11, %v2098_v53  ;;  %v4055_v6 = vadd.f32 %v2273_v13, %v3935_v50  ;;  %v2375_v14 = vmul.f32 0.33333334, %v3711_v55 }
 0x2bb   : > { %v1719_v45 = vmul.f32 %v2922_v46, %v1717_v37  ;;  %v1850_v38 = vrot.slane %v1849_v51, 1  ;;  %2929 = vrcp.f32 %v1837_v27  ;;  %v1919_v39 = vmin.f32 %v1917_v35, %v1918_v16 }
 0x2bc   : > { %v2051_v18 = vmin.f32 %v2049_v1, %v2050_v21  ;;  %v2100_v56 = vrot.slane %v2099_v32, 1  ;;  %v2150_v19 = vrot.slane %v2149_v29, 4  ;;  %v4063_v61 = vadd.f32 %v2375_v14, %v2273_v13 }
 0x2bd   : > { %1720 = vst.msk [vmem:[%s3528_s13 + $0xe] sm:$0x1] %vm670_vm3, %v1719_v45  ;;  %v1920_v28 = vsub.f32 %v1919_v39, %v3943_v44  ;;  %v1921_v12 = vsub.f32 %v1919_v39, %v3990_v5  ;;  %v1922_v49 = vsub.f32 %v1919_v39, %v4016_v17  ;;  %v4066_v24 = vmul.f32 0.6666667, %v3523_v8 }
 0x2be   : > { %v2052_v50 = vrot.slane %v2051_v18, 1  ;;  %v2101_v31 = vmin.f32 %v2099_v32, %v2100_v56  ;;  %v2151_v55 = vmin.f32 %v2149_v29, %v2150_v19  ;;  %v1851_v60 = vadd.f32 %v1850_v38, %v1849_v51 }
 0x2bf   : > { %v1923_v30 = vmul.f32 1.442695, %v1920_v28  ;;  %v1925_v0 = vmul.f32 1.442695, %v1921_v12  ;;  %v1927_v42 = vmul.f32 1.442695, %v1922_v49  ;;  %v4087_v39 = vadd.f32 %v4066_v24, %v3980_v33 }
 0x2c0   : > { %v2924_v7 = vpop.eup %2923  ;;  %v2053_v4 = vmin.f32 %v2051_v18, %v2052_v50  ;;  %v2102_v44 = vsub.f32 %v2101_v31, %v3589_v40  ;;  %v2103_v5 = vsub.f32 %v2101_v31, %v3633_v48  ;;  %v2104_v17 = vsub.f32 %v2101_v31, %v3645_v59 }
 0x2c1   : > { %v2926_v25 = vpop.eup %2925  ;;  %v2347_v57 = vsel %vm622_vm2, %v2924_v7, 0.0  ;;  %v2358_v43 = vmul.f32 %v2924_v7, %v3268_v54  ;;  %2931 = vpow2.f32 %v1923_v30  ;;  %v2152_v8 = vrot.slane %v2151_v55, 2 }
 0x2c2   : > { %v2928_v23 = vpop.eup %2927  ;;  %v2348_v2 = vsel %vm622_vm2, %v2926_v25, 0.0  ;;  %v2359_v11 = vmul.f32 %v2926_v25, %v3281_v62  ;;  %2933 = vpow2.f32 %v1925_v0  ;;  %v2054_v52 = vsub.f32 %v2053_v4, %v3946_v10 }
 0x2c3   : > { %v2349_v40 = vadd.f32 %v2348_v2, %v2347_v57  ;;  %v2350_v48 = vsel %vm622_vm2, %v2928_v23, 0.0  ;;  %v2360_v59 = vmul.f32 %v2928_v23, %v3283_v63  ;;  %v2361_v13 = vsel %vm622_vm2, %v2358_v43, 0.0 }
 0x2c4   : > { %v2362_v36 = vsel %vm622_vm2, %v2359_v11, 0.0  ;;  %2935 = vpow2.f32 %v1927_v42  ;;  %v2055_v51 = vsub.f32 %v2053_v4, %v3995_v22  ;;  %v2056_v35 = vsub.f32 %v2053_v4, %v4039_v41 }
 0x2c5   : > { %v2930_v1 = vpop.eup %2929  ;;  %v2351_v53 = vadd.f32 %v2350_v48, %v2349_v40  ;;  %v2363_v9 = vadd.f32 %v2362_v36, %v2361_v13  ;;  %v2364_v10 = vsel %vm622_vm2, %v2360_v59, 0.0  ;;  %v2057_v37 = vmul.f32 1.442695, %v2054_v52 }
 0x2c6   : > { %v1853_v27 = vmul.f32 %v2930_v1, %v1851_v60  ;;  %v2059_v16 = vmul.f32 1.442695, %v2055_v51  ;;  %v2061_v29 = vmul.f32 1.442695, %v2056_v35  ;;  %v2105_v46 = vmul.f32 1.442695, %v2102_v44 }
 0x2c7   : > { %v2352_v21 = vrot.slane %v2351_v53, 4  ;;  %v2365_v32 = vadd.f32 %v2364_v10, %v2363_v9  ;;  %2937 = vpow2.f32 %v2057_v37  ;;  %v2107_v14 = vmul.f32 1.442695, %v2103_v5 }
 0x2c8   : > { %1854 = vst.msk [vmem:[%s3528_s13 + $0xf] sm:$0x1] %vm670_vm3, %v1853_v27  ;;  %2939 = vpow2.f32 %v2059_v16  ;;  %v2109_v22 = vmul.f32 1.442695, %v2104_v17  ;;  %v2153_v45 = vmin.f32 %v2151_v55, %v2152_v8  ;;  %v4090_v12 = vmul.f32 0.33333334, %v3724_v26 }
 0x2c9   : > { %v2353_v41 = vadd.f32 %v2352_v21, %v2351_v53  ;;  %v2366_v38 = vrot.slane %v2365_v32, 4  ;;  %2941 = vpow2.f32 %v2061_v29  ;;  %v4109_v2 = vmul.f32 0.6666667, %v3606_v15 }
 0x2ca   : > { %2943 = vpow2.f32 %v2105_v46  ;;  %v2154_v18 = vrot.slane %v2153_v45, 1  ;;  %v4113_v48 = vsel %vm622_vm2, %v4087_v39, inf }
 0x2cb   : > { %v2932_v56 = vpop.eup %2931  ;;  %v2354_v19 = vrot.slane %v2353_v41, 2  ;;  %v2367_v28 = vadd.f32 %v2366_v38, %v2365_v32  ;;  %2945 = vpow2.f32 %v2107_v14 }
 0x2cc   : > { %v2934_v49 = vpop.eup %2933  ;;  %v1929_v50 = vsel %vm622_vm2, %v2932_v56, 0.0  ;;  %v1940_v31 = vmul.f32 %v2932_v56, %v3268_v54  ;;  %2947 = vpow2.f32 %v2109_v22  ;;  %v4094_v55 = vmin.f32 %v2153_v45, %v2154_v18 }
 0x2cd   : > { %v2355_v60 = vadd.f32 %v2354_v19, %v2353_v41  ;;  %v2368_v33 = vrot.slane %v2367_v28, 2  ;;  %v1930_v30 = vsel %vm622_vm2, %v2934_v49, 0.0  ;;  %v1941_v0 = vmul.f32 %v2934_v49, %v3281_v62 }
 0x2ce   : > { %v2936_v42 = vpop.eup %2935  ;;  %v1931_v7 = vadd.f32 %v1930_v30, %v1929_v50  ;;  %v1943_v4 = vsel %vm622_vm2, %v1940_v31, 0.0  ;;  %v2156_v26 = vsub.f32 %v4094_v55, %v3959_v58  ;;  %v2157_v44 = vsub.f32 %v4094_v55, %v4000_v34 }
 0x2cf   : > { %v2356_v5 = vrot.slane %v2355_v60, 1  ;;  %v2369_v17 = vadd.f32 %v2368_v33, %v2367_v28  ;;  %v1932_v25 = vsel %vm622_vm2, %v2936_v42, 0.0  ;;  %v1942_v57 = vmul.f32 %v2936_v42, %v3283_v63 }
 0x2d0   : > { %v1933_v43 = vadd.f32 %v1932_v25, %v1931_v7  ;;  %v1944_v8 = vsel %vm622_vm2, %v1941_v0, 0.0  ;;  %v2158_v23 = vsub.f32 %v4094_v55, %v4046_v3  ;;  %v2159_v40 = vmul.f32 1.442695, %v2156_v26 }
 0x2d1   : > { %v2938_v11 = vpop.eup %2937  ;;  %v2357_v58 = vadd.f32 %v2356_v5, %v2355_v60  ;;  %v1945_v52 = vadd.f32 %v1944_v8, %v1943_v4  ;;  %v1946_v36 = vsel %vm622_vm2, %v1942_v57, 0.0  ;;  %v2370_v53 = vrot.slane %v2369_v17, 1 }
 0x2d2   : > { %v2940_v59 = vpop.eup %2939  ;;  %v1934_v13 = vrot.slane %v1933_v43, 4  ;;  %v2063_v51 = vsel %vm622_vm2, %v2938_v11, 0.0  ;;  %v2074_v35 = vmul.f32 %v2938_v11, %v3268_v54  ;;  %v2279_v34 = vsel %vm622_vm2, %v4055_v6, inf }
 0x2d3   : > { %v2942_v1 = vpop.eup %2941  ;;  %2949 = vrcp.f32 %v2357_v58  ;;  %v1947_v15 = vadd.f32 %v1946_v36, %v1945_v52  ;;  %v2064_v9 = vsel %vm622_vm2, %v2940_v59, 0.0  ;;  %v2075_v29 = vmul.f32 %v2940_v59, %v3281_v62 }
 0x2d4   : > { %v2944_v10 = vpop.eup %2943  ;;  %v1935_v37 = vadd.f32 %v1934_v13, %v1933_v43  ;;  %v2065_v27 = vadd.f32 %v2064_v9, %v2063_v51  ;;  %v2066_v16 = vsel %vm622_vm2, %v2942_v1, 0.0  ;;  %v2076_v32 = vmul.f32 %v2942_v1, %v3283_v63 }
 0x2d5   : > { %v2946_v46 = vpop.eup %2945  ;;  %v1948_v21 = vrot.slane %v1947_v15, 4  ;;  %v2077_v14 = vsel %vm622_vm2, %v2074_v35, 0.0  ;;  %v2111_v22 = vsel %vm622_vm2, %v2944_v10, 0.0  ;;  %v2078_v18 = vsel %vm622_vm2, %v2075_v29, 0.0 }
 0x2d6   : > { %v2948_v45 = vpop.eup %2947  ;;  %v1936_v41 = vrot.slane %v1935_v37, 2  ;;  %v2067_v38 = vadd.f32 %v2066_v16, %v2065_v27  ;;  %v2112_v56 = vsel %vm622_vm2, %v2946_v46, 0.0  ;;  %v2079_v28 = vadd.f32 %v2078_v18, %v2077_v14 }
 0x2d7   : > { %v1949_v19 = vadd.f32 %v1948_v21, %v1947_v15  ;;  %v2080_v49 = vsel %vm622_vm2, %v2076_v32, 0.0  ;;  %v2113_v50 = vadd.f32 %v2112_v56, %v2111_v22  ;;  %v2114_v33 = vsel %vm622_vm2, %v2948_v45, 0.0 }
 0x2d8   : > { %v1937_v31 = vadd.f32 %v1936_v41, %v1935_v37  ;;  %v2068_v60 = vrot.slane %v2067_v38, 4  ;;  %v2122_v30 = vmul.f32 %v2944_v10, %v3268_v54  ;;  %v2081_v0 = vadd.f32 %v2080_v49, %v2079_v28 }
 0x2d9   : > { %v2115_v42 = vadd.f32 %v2114_v33, %v2113_v50  ;;  %v2123_v7 = vmul.f32 %v2946_v46, %v3281_v62  ;;  %2951 = vpow2.f32 %v2159_v40  ;;  %v2124_v5 = vmul.f32 %v2948_v45, %v3283_v63 }
 0x2da   : > { %v1938_v4 = vrot.slane %v1937_v31, 1  ;;  %v2069_v26 = vadd.f32 %v2068_v60, %v2067_v38  ;;  %v2125_v25 = vsel %vm622_vm2, %v2122_v30, 0.0  ;;  %v1950_v57 = vrot.slane %v1949_v19, 2 }
 0x2db   : > { %v2082_v43 = vrot.slane %v2081_v0, 4  ;;  %v2116_v8 = vrot.slane %v2115_v42, 4  ;;  %v2126_v11 = vsel %vm622_vm2, %v2123_v7, 0.0  ;;  %v2371_v58 = vadd.f32 %v2370_v53, %v2369_v17 }
 0x2dc   : > { %v1939_v52 = vadd.f32 %v1938_v4, %v1937_v31  ;;  %v2070_v59 = vrot.slane %v2069_v26, 2  ;;  %v2127_v13 = vadd.f32 %v2126_v11, %v2125_v25  ;;  %v2128_v40 = vsel %vm622_vm2, %v2124_v5, 0.0 }
 0x2dd   : > { %v2950_v36 = vpop.eup %2949  ;;  %v2083_v51 = vadd.f32 %v2082_v43, %v2081_v0  ;;  %v2117_v35 = vadd.f32 %v2116_v8, %v2115_v42  ;;  %v2161_v1 = vmul.f32 1.442695, %v2157_v44  ;;  %v1951_v37 = vadd.f32 %v1950_v57, %v1949_v19 }
 0x2de   : > { %v2373_v15 = vmul.f32 %v2950_v36, %v2371_v58  ;;  %2953 = vrcp.f32 %v1939_v52  ;;  %v2071_v9 = vadd.f32 %v2070_v59, %v2069_v26  ;;  %v2129_v10 = vadd.f32 %v2128_v40, %v2127_v13 }
 0x2df   : > { %v2084_v27 = vrot.slane %v2083_v51, 2  ;;  %v2118_v17 = vrot.slane %v2117_v35, 2  ;;  %2955 = vpow2.f32 %v2161_v1  ;;  %v2163_v29 = vmul.f32 1.442695, %v2158_v23 }
 0x2e0   : > { %2374 = vst.msk [vmem:[%s3528_s13 + $0x16] sm:$0x1] %vm670_vm3, %v2373_v15  ;;  %v2072_v53 = vrot.slane %v2071_v9, 1  ;;  %v2130_v16 = vrot.slane %v2129_v10, 4  ;;  %v2381_v46 = vsel %vm622_vm2, %v4063_v61, inf  ;;  %v2282_v21 = vmin.f32 %v2279_v34, %v4113_v48 }
 0x2e1   : > { %v2119_v44 = vadd.f32 %v2118_v17, %v2117_v35  ;;  %2957 = vpow2.f32 %v2163_v29  ;;  %v4149_v22 = vadd.f32 %v4090_v12, %v4066_v24  ;;  %v1952_v41 = vrot.slane %v1951_v37, 1 }
 0x2e2   : > { %v2073_v32 = vadd.f32 %v2072_v53, %v2071_v9  ;;  %v2131_v14 = vadd.f32 %v2130_v16, %v2129_v10  ;;  %v2085_v3 = vadd.f32 %v2084_v27, %v2083_v51  ;;  %v4153_v23 = vadd.f32 %v4109_v2, %v4003_v20 }
 0x2e3   : > { %v2952_v45 = vpop.eup %2951  ;;  %v2120_v55 = vrot.slane %v2119_v44, 1  ;;  %v2382_v48 = vsel %vm622_vm2, %v4149_v22, inf  ;;  %v2377_v18 = vmul.f32 0.33333334, %v3842_v47  ;;  %v1953_v20 = vadd.f32 %v1952_v41, %v1951_v37 }
 0x2e4   : > { %2959 = vrcp.f32 %v2073_v32  ;;  %v2132_v38 = vrot.slane %v2131_v14, 2  ;;  %v2384_v19 = vmin.f32 %v2381_v46, %v2382_v48  ;;  %v2281_v24 = vsel %vm622_vm2, %v4153_v23, inf }
 0x2e5   : > { %v2121_v56 = vadd.f32 %v2120_v55, %v2119_v44  ;;  %v2176_v12 = vmul.f32 %v2952_v45, %v3268_v54  ;;  %v2283_v28 = vmin.f32 %v2282_v21, %v2281_v24  ;;  %v4162_v49 = vadd.f32 %v2377_v18, %v4109_v2 }
 0x2e6   : > { %v2165_v50 = vsel %vm622_vm2, %v2952_v45, 0.0  ;;  %v2086_v60 = vrot.slane %v2085_v3, 1  ;;  %v2133_v33 = vadd.f32 %v2132_v38, %v2131_v14 }
 0x2e7   : > { %2961 = vrcp.f32 %v2121_v56  ;;  %v2284_v47 = vrot.slane %v2283_v28, 4  ;;  %v2383_v30 = vsel %vm622_vm2, %v4162_v49, inf  ;;  %v2179_v26 = vsel %vm622_vm2, %v2176_v12, 0.0 }
 0x2e8   : > { %v2954_v31 = vpop.eup %2953  ;;  %v2385_v7 = vmin.f32 %v2384_v19, %v2383_v30  ;;  %v2087_v8 = vadd.f32 %v2086_v60, %v2085_v3  ;;  %v2134_v11 = vrot.slane %v2133_v33, 1 }
 0x2e9   : > { %v2956_v0 = vpop.eup %2955  ;;  %v1955_v42 = vmul.f32 %v2954_v31, %v1953_v20  ;;  %v2285_v5 = vmin.f32 %v2283_v28, %v2284_v47 }
 0x2ea   : > { %v2166_v4 = vsel %vm622_vm2, %v2956_v0, 0.0  ;;  %v2177_v2 = vmul.f32 %v2956_v0, %v3281_v62  ;;  %v2386_v57 = vrot.slane %v2385_v7, 4  ;;  %v2135_v37 = vadd.f32 %v2134_v11, %v2133_v33 }
 0x2eb   : > { %1956 = vst.msk [vmem:[%s3528_s13 + $0x11] sm:$0x1] %vm670_vm3, %v1955_v42  ;;  %v2167_v25 = vadd.f32 %v2166_v4, %v2165_v50  ;;  %v2958_v43 = vpop.eup %2957  ;;  %v2286_v52 = vrot.slane %v2285_v5, 2 }
 0x2ec   : > { %v2180_v58 = vsel %vm622_vm2, %v2177_v2, 0.0  ;;  %v2168_v59 = vsel %vm622_vm2, %v2958_v43, 0.0  ;;  %v2178_v13 = vmul.f32 %v2958_v43, %v3283_v63  ;;  %v2387_v51 = vmin.f32 %v2385_v7, %v2386_v57 }
 0x2ed   : > { %v2181_v36 = vadd.f32 %v2180_v58, %v2179_v26  ;;  %v2169_v40 = vadd.f32 %v2168_v59, %v2167_v25  ;;  %v2287_v1 = vmin.f32 %v2285_v5, %v2286_v52 }
 0x2ee   : > { %v2960_v35 = vpop.eup %2959  ;;  %v2182_v9 = vsel %vm622_vm2, %v2178_v13, 0.0  ;;  %v2388_v10 = vrot.slane %v2387_v51, 2 }
 0x2ef   : > { %v2089_v15 = vmul.f32 %v2960_v35, %v2087_v8  ;;  %v2170_v27 = vrot.slane %v2169_v40, 4  ;;  %v2183_v17 = vadd.f32 %v2182_v9, %v2181_v36  ;;  %v2288_v53 = vrot.slane %v2287_v1, 1 }
 0x2f0   : > { %v2389_v29 = vmin.f32 %v2387_v51, %v2388_v10 }
 0x2f1   : > { %v2962_v16 = vpop.eup %2961  ;;  %2090 = vst.msk [vmem:[%s3528_s13 + $0x12] sm:$0x1] %vm670_vm3, %v2089_v15  ;;  %v2171_v44 = vadd.f32 %v2170_v27, %v2169_v40  ;;  %v2184_v46 = vrot.slane %v2183_v17, 4  ;;  %v2289_v21 = vmin.f32 %v2287_v1, %v2288_v53 }
 0x2f2   : > { %v2137_v34 = vmul.f32 %v2962_v16, %v2135_v37  ;;  %v2390_v32 = vrot.slane %v2389_v29, 1 }
 0x2f3   : > { %v2172_v14 = vrot.slane %v2171_v44, 2  ;;  %v2290_v45 = vsub.f32 %v2289_v21, %v4055_v6  ;;  %v2291_v41 = vsub.f32 %v2289_v21, %v4087_v39  ;;  %v2185_v3 = vadd.f32 %v2184_v46, %v2183_v17 }
 0x2f4   : > { %2138 = vst.msk [vmem:[%s3528_s13 + $0x13] sm:$0x1] %vm670_vm3, %v2137_v34  ;;  %v2292_v55 = vsub.f32 %v2289_v21, %v4153_v23  ;;  %v2391_v38 = vmin.f32 %v2389_v29, %v2390_v32 }
 0x2f5   : > { %v2173_v48 = vadd.f32 %v2172_v14, %v2171_v44  ;;  %v2293_v18 = vmul.f32 1.442695, %v2290_v45  ;;  %v2295_v56 = vmul.f32 1.442695, %v2291_v41  ;;  %v2186_v50 = vrot.slane %v2185_v3, 2 }
 0x2f6   : > { %v2297_v19 = vmul.f32 1.442695, %v2292_v55  ;;  %v2392_v24 = vsub.f32 %v2391_v38, %v4063_v61  ;;  %v2393_v12 = vsub.f32 %v2391_v38, %v4149_v22  ;;  %v2394_v28 = vsub.f32 %v2391_v38, %v4162_v49 }
 0x2f7   : > { %v2174_v20 = vrot.slane %v2173_v48, 1  ;;  %2963 = vpow2.f32 %v2293_v18  ;;  %v2187_v60 = vadd.f32 %v2186_v50, %v2185_v3 }
 0x2f8   : > { %2965 = vpow2.f32 %v2295_v56  ;;  %v2395_v6 = vmul.f32 1.442695, %v2392_v24  ;;  %v2397_v39 = vmul.f32 1.442695, %v2393_v12  ;;  %v2399_v23 = vmul.f32 1.442695, %v2394_v28 }
 0x2f9   : > { %v2175_v31 = vadd.f32 %v2174_v20, %v2173_v48  ;;  %2967 = vpow2.f32 %v2297_v19  ;;  %v2188_v33 = vrot.slane %v2187_v60, 1 }
 0x2fa   : > { %2969 = vpow2.f32 %v2395_v6 }
 0x2fb   : > { %2971 = vrcp.f32 %v2175_v31  ;;  %v2189_v4 = vadd.f32 %v2188_v33, %v2187_v60 }
 0x2fc   : > { %2973 = vpow2.f32 %v2397_v39 }
 0x2fd   : > { %2975 = vpow2.f32 %v2399_v23 }
 0x301   : > { %v2964_v61 = vpop.eup %2963 }
 0x302   : > { %v2966_v47 = vpop.eup %2965  ;;  %v2299_v22 = vsel %vm622_vm2, %v2964_v61, 0.0  ;;  %v2310_v49 = vmul.f32 %v2964_v61, %v3268_v54 }
 0x303   : > { %v2968_v30 = vpop.eup %2967  ;;  %v2300_v0 = vsel %vm622_vm2, %v2966_v47, 0.0  ;;  %v2311_v42 = vmul.f32 %v2966_v47, %v3281_v62 }
 0x304   : > { %v2970_v7 = vpop.eup %2969  ;;  %v2301_v2 = vadd.f32 %v2300_v0, %v2299_v22  ;;  %v2312_v26 = vmul.f32 %v2968_v30, %v3283_v63  ;;  %v2313_v5 = vsel %vm622_vm2, %v2310_v49, 0.0  ;;  %v2302_v57 = vsel %vm622_vm2, %v2968_v30, 0.0 }
 0x305   : > { %v2972_v25 = vpop.eup %2971  ;;  %v2314_v43 = vsel %vm622_vm2, %v2311_v42, 0.0  ;;  %v2401_v8 = vsel %vm622_vm2, %v2970_v7, 0.0  ;;  %v2412_v11 = vmul.f32 %v2970_v7, %v3268_v54 }
 0x306   : > { %v2974_v58 = vpop.eup %2973  ;;  %v2191_v52 = vmul.f32 %v2972_v25, %v2189_v4  ;;  %v2303_v59 = vadd.f32 %v2302_v57, %v2301_v2  ;;  %v2315_v13 = vadd.f32 %v2314_v43, %v2313_v5  ;;  %v2316_v51 = vsel %vm622_vm2, %v2312_v26, 0.0 }
 0x307   : > { %v2976_v36 = vpop.eup %2975  ;;  %v2402_v35 = vsel %vm622_vm2, %v2974_v58, 0.0  ;;  %v2413_v40 = vmul.f32 %v2974_v58, %v3281_v62  ;;  %v2415_v1 = vsel %vm622_vm2, %v2412_v11, 0.0 }
 0x308   : > { %2192 = vst.msk [vmem:[%s3528_s13 + $0x14] sm:$0x1] %vm670_vm3, %v2191_v52  ;;  %v2304_v15 = vrot.slane %v2303_v59, 4  ;;  %v2317_v9 = vadd.f32 %v2316_v51, %v2315_v13  ;;  %v2403_v10 = vadd.f32 %v2402_v35, %v2401_v8  ;;  %v2404_v54 = vsel %vm622_vm2, %v2976_v36, 0.0 }
 0x309   : > { %v2414_v37 = vmul.f32 %v2976_v36, %v3283_v63  ;;  %v2416_v27 = vsel %vm622_vm2, %v2413_v40, 0.0 }
 0x30a   : > { %v2305_v17 = vadd.f32 %v2304_v15, %v2303_v59  ;;  %v2318_v53 = vrot.slane %v2317_v9, 4  ;;  %v2405_v16 = vadd.f32 %v2404_v54, %v2403_v10  ;;  %v2417_v29 = vadd.f32 %v2416_v27, %v2415_v1 }
 0x30b   : > { %v2418_v34 = vsel %vm622_vm2, %v2414_v37, 0.0 }
 0x30c   : > { %v2306_v62 = vrot.slane %v2305_v17, 2  ;;  %v2406_v44 = vrot.slane %v2405_v16, 4  ;;  %v2419_v46 = vadd.f32 %v2418_v34, %v2417_v29  ;;  %v2319_v21 = vadd.f32 %v2318_v53, %v2317_v9 }
 0x30e   : > { %v2307_v32 = vadd.f32 %v2306_v62, %v2305_v17  ;;  %v2407_v14 = vadd.f32 %v2406_v44, %v2405_v16  ;;  %v2420_v45 = vrot.slane %v2419_v46, 4  ;;  %v2320_v55 = vrot.slane %v2319_v21, 2 }
 0x310   : > { %v2308_v41 = vrot.slane %v2307_v32, 1  ;;  %v2408_v3 = vrot.slane %v2407_v14, 2  ;;  %v2421_v63 = vadd.f32 %v2420_v45, %v2419_v46  ;;  %v2321_v56 = vadd.f32 %v2320_v55, %v2319_v21 }
 0x312   : > { %v2309_v38 = vadd.f32 %v2308_v41, %v2307_v32  ;;  %v2409_v48 = vadd.f32 %v2408_v3, %v2407_v14  ;;  %v2422_v19 = vrot.slane %v2421_v63, 2  ;;  %v2322_v12 = vrot.slane %v2321_v56, 1 }
 0x314   : > { %2977 = vrcp.f32 %v2309_v38  ;;  %v2410_v18 = vrot.slane %v2409_v48, 1  ;;  %v2423_v28 = vadd.f32 %v2422_v19, %v2421_v63  ;;  %v2323_v20 = vadd.f32 %v2322_v12, %v2321_v56 }
 0x316   : > { %v2411_v24 = vadd.f32 %v2410_v18, %v2409_v48  ;;  %v2424_v50 = vrot.slane %v2423_v28, 1 }
 0x318   : > { %2979 = vrcp.f32 %v2411_v24  ;;  %v2425_v31 = vadd.f32 %v2424_v50, %v2423_v28 }
 0x31e   : > { %v2978_v6 = vpop.eup %2977 }
 0x31f   : > { %v2325_v39 = vmul.f32 %v2978_v6, %v2323_v20 }
 0x321   : > { %2326 = vst.msk [vmem:[%s3528_s13 + $0x15] sm:$0x1] %vm670_vm3, %v2325_v39 }
 0x322   : > { %v2980_v23 = vpop.eup %2979 }
 0x323   : > { %v2427_v60 = vmul.f32 %v2980_v23, %v2425_v31 }
 0x325   : > { %2428 = vst.msk [vmem:[%s3528_s13 + $0x17] sm:$0x1] %vm670_vm3, %v2427_v60 }
 0x326 PF: > { %s13_s16 = sadd.s32 1, %s3019_s16   ;;  %s4248_s12 = smov %s3011_s14 }
 0x327   : > { %p10_p7 = scmp.ge.s32.totalorder %s13_s16, 6   ;;  %s4249_s13 = smov %s3015_s15 }
 0x328   : > { %s4250_s14 = smov %s4253_s17  ;;  %s4251_s15 = smov %s4257_s18 }
 0x329   :  { %12 = sbr.rel (!%p10_p7) target bundleno = 3 (0x3), region = 63 }

</bundles_post_ra>
